<compile_context>
chip_gen: v7x
topology: tpu7x:2x2x1
jax: 0.10.0
libtpu: 0.0.40
codegen_flags: <defaults>
</compile_context>

<pallas_src>
import math

import jax
import jax.numpy as jnp
from jax.experimental import pallas as pl
from jax.experimental.pallas import tpu as pltpu


# ----------------------------------------------------------------------------
# Fused forward kernel.
# ----------------------------------------------------------------------------
def _fused_forward_kernel(scene_ref,
                          n_wih_ref, n_whh_ref, n_b_ref,
                          e_wih_ref, e_whh_ref, e_b_ref,
                          d_wih_ref, d_whh_ref, d_b_ref,
                          h2p_w_ref, h2p_b_ref,
                          out_ref):
    NP, T, _ = scene_ref.shape
    H = n_whh_ref.shape[0] // 2          # encoder hidden size
    EP = d_whh_ref.shape[0] // 2         # (zero-padded) decoder hidden size

    def run_bilstm(x_steps, wih_ref_, whh_ref_, b_ref_, hp):
        """Merged bidirectional LSTM, fully unrolled.

        x_steps[s] is (B, 2*Din) = [x[s] | x[Tn-1-s]] (fwd input | reversed input).
        Returns (out_f, out_b): python lists where out_f[t] / out_b[t] are the
        forward / backward hidden states at ORIGINAL time index t, each (B, hp).
        """
        Tn = len(x_steps)
        B = x_steps[0].shape[0]
        wih = wih_ref_[...]              # (2*Din, 8*hp)  bf16
        whh = whh_ref_[...]              # (2*hp,  8*hp)  bf16
        bias = b_ref_[...]               # (1, 8*hp)      f32

        # Hoisted input projection + single bias broadcast: one batched matmul,
        # entirely off the serial recurrence path.
        x_all = jnp.concatenate(x_steps, axis=0).astype(wih.dtype)   # (Tn*B, 2Din)
        xw = jnp.dot(x_all, wih, preferred_element_type=jnp.float32) + bias

        h = jnp.zeros((B, 2 * hp), jnp.float32)   # [h_fwd | h_bwd]
        c = jnp.zeros((B, 2 * hp), jnp.float32)
        out_f = [None] * Tn
        out_b = [None] * Tn
        for s in range(Tn):                       # static unroll
            gates = xw[s * B:(s + 1) * B, :] + jnp.dot(
                h.astype(whh.dtype), whh, preferred_element_type=jnp.float32)
            # merged gate layout (i, f, o, g): one sigmoid stream + one tanh.
            sig = jax.nn.sigmoid(gates[:, 0:6 * hp])
            g_g = jnp.tanh(gates[:, 6 * hp:8 * hp])
            i_g = sig[:, 0 * hp:2 * hp]
            f_g = sig[:, 2 * hp:4 * hp]
            o_g = sig[:, 4 * hp:6 * hp]
            c = f_g * c + i_g * g_g
            h = o_g * jnp.tanh(c)
            out_f[s] = h[:, :hp]                  # fwd output at time s
            out_b[Tn - 1 - s] = h[:, hp:]         # bwd output at time Tn-1-s
        return out_f, out_b

    scene = scene_ref[...]                        # (NP, T, 2)
    current = scene[:, T - 1, :]                  # (NP, 2)

    # --- node history encoder over the trajectory ---------------------------
    x_node = [jnp.concatenate([scene[:, t, :], scene[:, T - 1 - t, :]], axis=-1)
              for t in range(T)]
    nf, nb = run_bilstm(x_node, n_wih_ref, n_whh_ref, n_b_ref, H)

    # --- edge encoder over pairwise deltas: deltas[i, j] = cur[j] - cur[i] ---
    def delta_step(j):
        return current[j:j + 1, :] - current      # (NP, 2)

    x_edge = [jnp.concatenate([delta_step(j), delta_step(NP - 1 - j)], axis=-1)
              for j in range(NP)]
    ef, eb = run_bilstm(x_edge, e_wih_ref, e_whh_ref, e_b_ref, H)
    # distruction[:, -1, :] = [fwd hidden at last step | bwd hidden at last idx]
    distr_last = jnp.concatenate([ef[NP - 1], eb[NP - 1]], axis=-1)   # (NP, 2H)

    # --- decoder over cat([lstm_out, distruction[:, -1:]], dim=time) --------
    catted = [jnp.concatenate([nf[t], nb[t]], axis=-1) for t in range(T)]
    catted.append(distr_last)                     # Tc = T + 1 steps of (NP, 2H)
    Tc = T + 1
    x_dec = [jnp.concatenate([catted[t], catted[Tc - 1 - t]], axis=-1)
             for t in range(Tc)]                  # (NP, 4H)
    df, db = run_bilstm(x_dec, d_wih_ref, d_whh_ref, d_b_ref, EP)

    # --- flatten decoder output + fused hidden2pose + residual epilogue -----
    pieces = []
    for t in range(Tc):
        pieces.append(df[t])                      # padded fwd hidden (NP, EP)
        pieces.append(db[t])                      # padded bwd hidden (NP, EP)
    dec_flat = jnp.concatenate(pieces, axis=-1)   # (NP, Tc*2*EP)

    w = h2p_w_ref[...]                            # (Tc*2*EP, target) f32
    b = h2p_b_ref[...]                            # (1, target)
    out_ref[...] = current + jnp.dot(dec_flat, w,
                                     preferred_element_type=jnp.float32) + b


# ----------------------------------------------------------------------------
# JAX wrapper: one pallas_call, everything VMEM resident, no grid/tiling.
# ----------------------------------------------------------------------------
def lstm_enc_delta_stacked_forward(scene, params):
    """scene: (num_peds, history_size, 2) -> (num_peds, 1, target_size)."""
    num_peds = scene.shape[0]
    target = params['h2p_w'].shape[1]
    vmem = pl.BlockSpec(memory_space=pltpu.MemorySpace.VMEM)
    tag = pl.pallas_call(
        _fused_forward_kernel,
        out_shape=jax.ShapeDtypeStruct((num_peds, target), jnp.float32),
        in_specs=[vmem] * 12,
        out_specs=vmem,
    )(scene,
      params['node']['wih'], params['node']['whh'], params['node']['b'],
      params['edge']['wih'], params['edge']['whh'], params['edge']['b'],
      params['dec']['wih'], params['dec']['whh'], params['dec']['b'],
      params['h2p_w'], params['h2p_b'])
    return tag[:, None, :]                        # (num_peds, 1, target)


# ----------------------------------------------------------------------------
# Parameter construction: PyTorch-layout raw params -> merged kernel layout.
# ----------------------------------------------------------------------------
def _init_raw_bilstm(key, input_size, hidden_size):
    """PyTorch nn.LSTM(bidirectional=True) parameter layout, U(-1/sqrt(H), +)."""
    ks = jax.random.split(key, 8)
    bound = 1.0 / math.sqrt(hidden_size)

    def u(k, shape):
        return jax.random.uniform(k, shape, jnp.float32, -bound, bound)

    H = hidden_size
    return dict(
        weight_ih_f=u(ks[0], (4 * H, input_size)),
        weight_hh_f=u(ks[1], (4 * H, H)),
        bias_ih_f=u(ks[2], (4 * H,)),
        bias_hh_f=u(ks[3], (4 * H,)),
        weight_ih_b=u(ks[4], (4 * H, input_size)),
        weight_hh_b=u(ks[5], (4 * H, H)),
        bias_ih_b=u(ks[6], (4 * H,)),
        bias_hh_b=u(ks[7], (4 * H,)),
    )


# Merged gate block order (i, f, o, g); PyTorch rows are ordered (i, f, g, o).
_GATE_ORDER = (0, 1, 3, 2)


def _merge_bilstm_params(raw, hidden_size, hidden_pad=None,
                         matmul_dtype=jnp.bfloat16):
    """Build the fused kernel's block weights from PyTorch-layout params.

    Column layout: merged gate block m in (i, f, o, g), direction d in
    (fwd, bwd) occupies columns [(2m+d)*Hp : (2m+d+1)*Hp].  Hidden units
    [H:Hp] are zero-padded and stay exactly zero through the recurrence
    (zero W_ih cols, W_hh rows/cols and bias => g_pad = tanh(0) = 0 =>
    c_pad = h_pad = 0 forever).
    """
    H = hidden_size
    HP = H if hidden_pad is None else hidden_pad
    D = raw['weight_ih_f'].shape[1]
    wih = jnp.zeros((2 * D, 8 * HP), jnp.float32)
    whh = jnp.zeros((2 * HP, 8 * HP), jnp.float32)
    b = jnp.zeros((1, 8 * HP), jnp.float32)
    for m, g in enumerate(_GATE_ORDER):
        fc = (2 * m) * HP                 # fwd column block for merged gate m
        bc = (2 * m + 1) * HP             # bwd column block for merged gate m
        rows = slice(g * H, (g + 1) * H)  # PyTorch rows for that gate
        wih = wih.at[0:D, fc:fc + H].set(raw['weight_ih_f'][rows, :].T)
        wih = wih.at[D:2 * D, bc:bc + H].set(raw['weight_ih_b'][rows, :].T)
        whh = whh.at[0:H, fc:fc + H].set(raw['weight_hh_f'][rows, :].T)
        whh = whh.at[HP:HP + H, bc:bc + H].set(raw['weight_hh_b'][rows, :].T)
        b = b.at[0, fc:fc + H].set(raw['bias_ih_f'][rows] + raw['bias_hh_f'][rows])
        b = b.at[0, bc:bc + H].set(raw['bias_ih_b'][rows] + raw['bias_hh_b'][rows])
    return dict(wih=wih.astype(matmul_dtype),
                whh=whh.astype(matmul_dtype),
                b=b)


def _pad_hidden2pose(w, b, emb, emb_pad, steps):
    """Re-index hidden2pose weights for the zero-padded decoder output layout."""
    target = w.shape[0]
    wt = w.T                                       # (steps*2*emb, target)
    wp = jnp.zeros((steps * 2 * emb_pad, target), jnp.float32)
    for t in range(steps):
        src = t * 2 * emb
        dst = t * 2 * emb_pad
        wp = wp.at[dst:dst + emb, :].set(wt[src:src + emb, :])
        wp = wp.at[dst + emb_pad:dst + emb_pad + emb, :].set(
            wt[src + emb:src + 2 * emb, :])
    return wp, b.reshape(1, target)


# ----------------------------------------------------------------------------
# Pure-JAX f32 reference of the PyTorch forward (for in-script verification).
# ----------------------------------------------------------------------------
def _ref_bilstm(x, raw, H):
    B = x.shape[0]

    def direction(wih, whh, bih, bhh, xs):
        h = jnp.zeros((B, H), jnp.float32)
        c = jnp.zeros((B, H), jnp.float32)
        outs = []
        for t in range(xs.shape[1]):
            gates = xs[:, t, :] @ wih.T + bih + h @ whh.T + bhh
            i = jax.nn.sigmoid(gates[:, 0:H])
            f = jax.nn.sigmoid(gates[:, H:2 * H])
            g = jnp.tanh(gates[:, 2 * H:3 * H])
            o = jax.nn.sigmoid(gates[:, 3 * H:4 * H])
            c = f * c + i * g
            h = o * jnp.tanh(c)
            outs.append(h)
        return jnp.stack(outs, axis=1)

    out_f = direction(raw['weight_ih_f'], raw['weight_hh_f'],
                      raw['bias_ih_f'], raw['bias_hh_f'], x)
    out_b = direction(raw['weight_ih_b'], raw['weight_hh_b'],
                      raw['bias_ih_b'], raw['bias_hh_b'], x[:, ::-1, :])[:, ::-1, :]
    return jnp.concatenate([out_f, out_b], axis=-1)


def _reference_forward(scene, node_raw, edge_raw, dec_raw, h2p_w, h2p_b, H, E):
    np_ = scene.shape[0]
    lstm_out = _ref_bilstm(scene, node_raw, H)
    current = scene[:, -1, :]
    deltas = current[None, :, :] - current[:, None, :]
    distr = _ref_bilstm(deltas, edge_raw, H)
    catted = jnp.concatenate([lstm_out, distr[:, -1:, :]], axis=1)
    decoded = _ref_bilstm(catted, dec_raw, E)
    dec_flat = decoded.reshape(np_, -1)
    return (current + dec_flat @ h2p_w.T + h2p_b)[:, None, :]


# ----------------------------------------------------------------------------
if __name__ == "__main__":
    lstm_hidden_dim = 32
    embedding_dim = 10
    embedding_pad = 32      # decoder hidden zero-padded so gate blocks are aligned
    target_size = 2
    num_peds = 8
    history_size = 8        # hidden2pose in_features = 9*2*E  =>  history+1 == 9

    key = jax.random.PRNGKey(0)
    k_scene, k1, k2, k3, k4, k5 = jax.random.split(key, 6)

    node_raw = _init_raw_bilstm(k1, 2, lstm_hidden_dim)
    edge_raw = _init_raw_bilstm(k2, 2, lstm_hidden_dim)
    dec_raw = _init_raw_bilstm(k3, 2 * lstm_hidden_dim, embedding_dim)

    lin_in = (history_size + 1) * 2 * embedding_dim
    lin_bound = 1.0 / math.sqrt(lin_in)
    h2p_w_raw = jax.random.uniform(k4, (target_size, lin_in), jnp.float32,
                                   -lin_bound, lin_bound)
    h2p_b_raw = jax.random.uniform(k5, (target_size,), jnp.float32,
                                   -lin_bound, lin_bound)

    h2p_w, h2p_b = _pad_hidden2pose(h2p_w_raw, h2p_b_raw, embedding_dim,
                                    embedding_pad, history_size + 1)
    params = dict(
        node=_merge_bilstm_params(node_raw, lstm_hidden_dim),
        edge=_merge_bilstm_params(edge_raw, lstm_hidden_dim),
        dec=_merge_bilstm_params(dec_raw, embedding_dim, embedding_pad),
        h2p_w=h2p_w,
        h2p_b=h2p_b,
    )

    scene = jax.random.normal(k_scene, (num_peds, history_size, 2), jnp.float32)

    fwd = jax.jit(lambda s: lstm_enc_delta_stacked_forward(s, params))
    out = fwd(scene)
    jax.block_until_ready(out)

    assert out.shape == (num_peds, 1, target_size), out.shape
    assert bool(jnp.all(jnp.isfinite(out)))

    # Verify against the pure-JAX f32 reference of the PyTorch forward; the
    # tolerance covers the bf16 matmul operands used inside the kernel.
    ref = _reference_forward(scene, node_raw, edge_raw, dec_raw,
                             h2p_w_raw, h2p_b_raw,
                             lstm_hidden_dim, embedding_dim)
    max_err = float(jnp.max(jnp.abs(out - ref)))
    assert max_err < 1e-1, max_err

    print("KERNEL_OK")
</pallas_src>

<mosaic_0001>
module attributes {stable_mosaic.version = 11 : i64} {
  func.func @_fused_forward_kernel(%arg0: memref<8x8x2xf32, #tpu.memory_space<vmem>>, %arg1: memref<4x256xbf16, #tpu.memory_space<vmem>>, %arg2: memref<64x256xbf16, #tpu.memory_space<vmem>>, %arg3: memref<1x256xf32, #tpu.memory_space<vmem>>, %arg4: memref<4x256xbf16, #tpu.memory_space<vmem>>, %arg5: memref<64x256xbf16, #tpu.memory_space<vmem>>, %arg6: memref<1x256xf32, #tpu.memory_space<vmem>>, %arg7: memref<128x256xbf16, #tpu.memory_space<vmem>>, %arg8: memref<64x256xbf16, #tpu.memory_space<vmem>>, %arg9: memref<1x256xf32, #tpu.memory_space<vmem>>, %arg10: memref<576x2xf32, #tpu.memory_space<vmem>>, %arg11: memref<1x2xf32, #tpu.memory_space<vmem>>, %arg12: memref<8x2xf32, #tpu.memory_space<vmem>>) attributes {dimension_semantics = [], scalar_prefetch = 0 : i64, scratch_operands = 0 : i64, tpu.core_type = #tpu.core_type<tc>} {
    %c0 = arith.constant 0 : index
    %c0_0 = arith.constant 0 : index
    %c0_1 = arith.constant 0 : index
    %0 = vector.load %arg0[%c0, %c0_0, %c0_1] : memref<8x8x2xf32, #tpu.memory_space<vmem>>, vector<8x8x2xf32>
    %1 = vector.extract_strided_slice %0 {offsets = [0, 7, 0], sizes = [8, 1, 2], strides = [1, 1, 1]} : vector<8x8x2xf32> to vector<8x1x2xf32>
    %2 = vector.shape_cast %1 : vector<8x1x2xf32> to vector<8x2xf32>
    %3 = vector.extract_strided_slice %0 {offsets = [0, 0, 0], sizes = [8, 1, 2], strides = [1, 1, 1]} : vector<8x8x2xf32> to vector<8x1x2xf32>
    %4 = vector.shape_cast %3 : vector<8x1x2xf32> to vector<8x2xf32>
    %5 = vector.extract_strided_slice %0 {offsets = [0, 7, 0], sizes = [8, 1, 2], strides = [1, 1, 1]} : vector<8x8x2xf32> to vector<8x1x2xf32>
    %6 = vector.shape_cast %5 : vector<8x1x2xf32> to vector<8x2xf32>
    %7 = tpu.concatenate %4, %6 in 1 : vector<8x2xf32>, vector<8x2xf32> -> vector<8x4xf32>
    %8 = vector.extract_strided_slice %0 {offsets = [0, 1, 0], sizes = [8, 1, 2], strides = [1, 1, 1]} : vector<8x8x2xf32> to vector<8x1x2xf32>
    %9 = vector.shape_cast %8 : vector<8x1x2xf32> to vector<8x2xf32>
    %10 = vector.extract_strided_slice %0 {offsets = [0, 6, 0], sizes = [8, 1, 2], strides = [1, 1, 1]} : vector<8x8x2xf32> to vector<8x1x2xf32>
    %11 = vector.shape_cast %10 : vector<8x1x2xf32> to vector<8x2xf32>
    %12 = tpu.concatenate %9, %11 in 1 : vector<8x2xf32>, vector<8x2xf32> -> vector<8x4xf32>
    %13 = vector.extract_strided_slice %0 {offsets = [0, 2, 0], sizes = [8, 1, 2], strides = [1, 1, 1]} : vector<8x8x2xf32> to vector<8x1x2xf32>
    %14 = vector.shape_cast %13 : vector<8x1x2xf32> to vector<8x2xf32>
    %15 = vector.extract_strided_slice %0 {offsets = [0, 5, 0], sizes = [8, 1, 2], strides = [1, 1, 1]} : vector<8x8x2xf32> to vector<8x1x2xf32>
    %16 = vector.shape_cast %15 : vector<8x1x2xf32> to vector<8x2xf32>
    %17 = tpu.concatenate %14, %16 in 1 : vector<8x2xf32>, vector<8x2xf32> -> vector<8x4xf32>
    %18 = vector.extract_strided_slice %0 {offsets = [0, 3, 0], sizes = [8, 1, 2], strides = [1, 1, 1]} : vector<8x8x2xf32> to vector<8x1x2xf32>
    %19 = vector.shape_cast %18 : vector<8x1x2xf32> to vector<8x2xf32>
    %20 = vector.extract_strided_slice %0 {offsets = [0, 4, 0], sizes = [8, 1, 2], strides = [1, 1, 1]} : vector<8x8x2xf32> to vector<8x1x2xf32>
    %21 = vector.shape_cast %20 : vector<8x1x2xf32> to vector<8x2xf32>
    %22 = tpu.concatenate %19, %21 in 1 : vector<8x2xf32>, vector<8x2xf32> -> vector<8x4xf32>
    %23 = vector.extract_strided_slice %0 {offsets = [0, 4, 0], sizes = [8, 1, 2], strides = [1, 1, 1]} : vector<8x8x2xf32> to vector<8x1x2xf32>
    %24 = vector.shape_cast %23 : vector<8x1x2xf32> to vector<8x2xf32>
    %25 = vector.extract_strided_slice %0 {offsets = [0, 3, 0], sizes = [8, 1, 2], strides = [1, 1, 1]} : vector<8x8x2xf32> to vector<8x1x2xf32>
    %26 = vector.shape_cast %25 : vector<8x1x2xf32> to vector<8x2xf32>
    %27 = tpu.concatenate %24, %26 in 1 : vector<8x2xf32>, vector<8x2xf32> -> vector<8x4xf32>
    %28 = vector.extract_strided_slice %0 {offsets = [0, 5, 0], sizes = [8, 1, 2], strides = [1, 1, 1]} : vector<8x8x2xf32> to vector<8x1x2xf32>
    %29 = vector.shape_cast %28 : vector<8x1x2xf32> to vector<8x2xf32>
    %30 = vector.extract_strided_slice %0 {offsets = [0, 2, 0], sizes = [8, 1, 2], strides = [1, 1, 1]} : vector<8x8x2xf32> to vector<8x1x2xf32>
    %31 = vector.shape_cast %30 : vector<8x1x2xf32> to vector<8x2xf32>
    %32 = tpu.concatenate %29, %31 in 1 : vector<8x2xf32>, vector<8x2xf32> -> vector<8x4xf32>
    %33 = vector.extract_strided_slice %0 {offsets = [0, 6, 0], sizes = [8, 1, 2], strides = [1, 1, 1]} : vector<8x8x2xf32> to vector<8x1x2xf32>
    %34 = vector.shape_cast %33 : vector<8x1x2xf32> to vector<8x2xf32>
    %35 = vector.extract_strided_slice %0 {offsets = [0, 1, 0], sizes = [8, 1, 2], strides = [1, 1, 1]} : vector<8x8x2xf32> to vector<8x1x2xf32>
    %36 = vector.shape_cast %35 : vector<8x1x2xf32> to vector<8x2xf32>
    %37 = tpu.concatenate %34, %36 in 1 : vector<8x2xf32>, vector<8x2xf32> -> vector<8x4xf32>
    %38 = vector.extract_strided_slice %0 {offsets = [0, 7, 0], sizes = [8, 1, 2], strides = [1, 1, 1]} : vector<8x8x2xf32> to vector<8x1x2xf32>
    %39 = vector.shape_cast %38 : vector<8x1x2xf32> to vector<8x2xf32>
    %40 = vector.extract_strided_slice %0 {offsets = [0, 0, 0], sizes = [8, 1, 2], strides = [1, 1, 1]} : vector<8x8x2xf32> to vector<8x1x2xf32>
    %41 = vector.shape_cast %40 : vector<8x1x2xf32> to vector<8x2xf32>
    %42 = tpu.concatenate %39, %41 in 1 : vector<8x2xf32>, vector<8x2xf32> -> vector<8x4xf32>
    %c0_2 = arith.constant 0 : index
    %c0_3 = arith.constant 0 : index
    %43 = vector.load %arg1[%c0_2, %c0_3] : memref<4x256xbf16, #tpu.memory_space<vmem>>, vector<4x256xbf16>
    %c0_4 = arith.constant 0 : index
    %c0_5 = arith.constant 0 : index
    %44 = vector.load %arg2[%c0_4, %c0_5] : memref<64x256xbf16, #tpu.memory_space<vmem>>, vector<64x256xbf16>
    %c0_6 = arith.constant 0 : index
    %c0_7 = arith.constant 0 : index
    %45 = vector.load %arg3[%c0_6, %c0_7] : memref<1x256xf32, #tpu.memory_space<vmem>>, vector<1x256xf32>
    %46 = tpu.concatenate %7, %12, %17, %22, %27, %32, %37, %42 in 0 : vector<8x4xf32>, vector<8x4xf32>, vector<8x4xf32>, vector<8x4xf32>, vector<8x4xf32>, vector<8x4xf32>, vector<8x4xf32>, vector<8x4xf32> -> vector<64x4xf32>
    %47 = arith.truncf %46 : vector<64x4xf32> to vector<64x4xbf16>
    %cst = arith.constant dense<0.000000e+00> : vector<64x256xf32>
    %48 = tpu.matmul %47, %43, %cst {dimension_numbers = #tpu.dot_dimension_numbers<[1], [0], [0], [1], [0, 0, 1, 1], [], []>} : vector<64x4xbf16>, vector<4x256xbf16>, vector<64x256xf32> -> vector<64x256xf32>
    %49 = vector.broadcast %45 : vector<1x256xf32> to vector<64x256xf32>
    %50 = arith.addf %48, %49 : vector<64x256xf32>
    %cst_8 = arith.constant 0.000000e+00 : f32
    %51 = vector.broadcast %cst_8 : f32 to vector<8x64xf32>
    %cst_9 = arith.constant 0.000000e+00 : f32
    %52 = vector.broadcast %cst_9 : f32 to vector<8x64xf32>
    %53 = vector.extract_strided_slice %50 {offsets = [0, 0], sizes = [8, 256], strides = [1, 1]} : vector<64x256xf32> to vector<8x256xf32>
    %54 = arith.truncf %51 : vector<8x64xf32> to vector<8x64xbf16>
    %cst_10 = arith.constant dense<0.000000e+00> : vector<8x256xf32>
    %55 = tpu.matmul %54, %44, %cst_10 {dimension_numbers = #tpu.dot_dimension_numbers<[1], [0], [0], [1], [0, 0, 1, 1], [], []>} : vector<8x64xbf16>, vector<64x256xbf16>, vector<8x256xf32> -> vector<8x256xf32>
    %56 = arith.addf %53, %55 : vector<8x256xf32>
    %57 = vector.extract_strided_slice %56 {offsets = [0, 0], sizes = [8, 192], strides = [1, 1]} : vector<8x256xf32> to vector<8x192xf32>
    %58 = arith.negf %57 : vector<8x192xf32>
    %59 = math.exp %58 : vector<8x192xf32>
    %cst_11 = arith.constant 1.000000e+00 : f32
    %60 = vector.broadcast %cst_11 : f32 to vector<8x192xf32>
    %61 = arith.addf %60, %59 : vector<8x192xf32>
    %62 = arith.divf %60, %61 : vector<8x192xf32>
    %63 = vector.extract_strided_slice %56 {offsets = [0, 192], sizes = [8, 64], strides = [1, 1]} : vector<8x256xf32> to vector<8x64xf32>
    %64 = math.tanh %63 : vector<8x64xf32>
    %65 = vector.extract_strided_slice %62 {offsets = [0, 0], sizes = [8, 64], strides = [1, 1]} : vector<8x192xf32> to vector<8x64xf32>
    %66 = vector.extract_strided_slice %62 {offsets = [0, 64], sizes = [8, 64], strides = [1, 1]} : vector<8x192xf32> to vector<8x64xf32>
    %67 = vector.extract_strided_slice %62 {offsets = [0, 128], sizes = [8, 64], strides = [1, 1]} : vector<8x192xf32> to vector<8x64xf32>
    %68 = arith.mulf %66, %52 : vector<8x64xf32>
    %69 = arith.mulf %65, %64 : vector<8x64xf32>
    %70 = arith.addf %68, %69 : vector<8x64xf32>
    %71 = math.tanh %70 : vector<8x64xf32>
    %72 = arith.mulf %67, %71 : vector<8x64xf32>
    %73 = vector.extract_strided_slice %72 {offsets = [0, 0], sizes = [8, 32], strides = [1, 1]} : vector<8x64xf32> to vector<8x32xf32>
    %74 = vector.extract_strided_slice %72 {offsets = [0, 32], sizes = [8, 32], strides = [1, 1]} : vector<8x64xf32> to vector<8x32xf32>
    %75 = vector.extract_strided_slice %50 {offsets = [8, 0], sizes = [8, 256], strides = [1, 1]} : vector<64x256xf32> to vector<8x256xf32>
    %76 = arith.truncf %72 : vector<8x64xf32> to vector<8x64xbf16>
    %cst_12 = arith.constant dense<0.000000e+00> : vector<8x256xf32>
    %77 = tpu.matmul %76, %44, %cst_12 {dimension_numbers = #tpu.dot_dimension_numbers<[1], [0], [0], [1], [0, 0, 1, 1], [], []>} : vector<8x64xbf16>, vector<64x256xbf16>, vector<8x256xf32> -> vector<8x256xf32>
    %78 = arith.addf %75, %77 : vector<8x256xf32>
    %79 = vector.extract_strided_slice %78 {offsets = [0, 0], sizes = [8, 192], strides = [1, 1]} : vector<8x256xf32> to vector<8x192xf32>
    %80 = arith.negf %79 : vector<8x192xf32>
    %81 = math.exp %80 : vector<8x192xf32>
    %cst_13 = arith.constant 1.000000e+00 : f32
    %82 = vector.broadcast %cst_13 : f32 to vector<8x192xf32>
    %83 = arith.addf %82, %81 : vector<8x192xf32>
    %84 = arith.divf %82, %83 : vector<8x192xf32>
    %85 = vector.extract_strided_slice %78 {offsets = [0, 192], sizes = [8, 64], strides = [1, 1]} : vector<8x256xf32> to vector<8x64xf32>
    %86 = math.tanh %85 : vector<8x64xf32>
    %87 = vector.extract_strided_slice %84 {offsets = [0, 0], sizes = [8, 64], strides = [1, 1]} : vector<8x192xf32> to vector<8x64xf32>
    %88 = vector.extract_strided_slice %84 {offsets = [0, 64], sizes = [8, 64], strides = [1, 1]} : vector<8x192xf32> to vector<8x64xf32>
    %89 = vector.extract_strided_slice %84 {offsets = [0, 128], sizes = [8, 64], strides = [1, 1]} : vector<8x192xf32> to vector<8x64xf32>
    %90 = arith.mulf %88, %70 : vector<8x64xf32>
    %91 = arith.mulf %87, %86 : vector<8x64xf32>
    %92 = arith.addf %90, %91 : vector<8x64xf32>
    %93 = math.tanh %92 : vector<8x64xf32>
    %94 = arith.mulf %89, %93 : vector<8x64xf32>
    %95 = vector.extract_strided_slice %94 {offsets = [0, 0], sizes = [8, 32], strides = [1, 1]} : vector<8x64xf32> to vector<8x32xf32>
    %96 = vector.extract_strided_slice %94 {offsets = [0, 32], sizes = [8, 32], strides = [1, 1]} : vector<8x64xf32> to vector<8x32xf32>
    %97 = vector.extract_strided_slice %50 {offsets = [16, 0], sizes = [8, 256], strides = [1, 1]} : vector<64x256xf32> to vector<8x256xf32>
    %98 = arith.truncf %94 : vector<8x64xf32> to vector<8x64xbf16>
    %cst_14 = arith.constant dense<0.000000e+00> : vector<8x256xf32>
    %99 = tpu.matmul %98, %44, %cst_14 {dimension_numbers = #tpu.dot_dimension_numbers<[1], [0], [0], [1], [0, 0, 1, 1], [], []>} : vector<8x64xbf16>, vector<64x256xbf16>, vector<8x256xf32> -> vector<8x256xf32>
    %100 = arith.addf %97, %99 : vector<8x256xf32>
    %101 = vector.extract_strided_slice %100 {offsets = [0, 0], sizes = [8, 192], strides = [1, 1]} : vector<8x256xf32> to vector<8x192xf32>
    %102 = arith.negf %101 : vector<8x192xf32>
    %103 = math.exp %102 : vector<8x192xf32>
    %cst_15 = arith.constant 1.000000e+00 : f32
    %104 = vector.broadcast %cst_15 : f32 to vector<8x192xf32>
    %105 = arith.addf %104, %103 : vector<8x192xf32>
    %106 = arith.divf %104, %105 : vector<8x192xf32>
    %107 = vector.extract_strided_slice %100 {offsets = [0, 192], sizes = [8, 64], strides = [1, 1]} : vector<8x256xf32> to vector<8x64xf32>
    %108 = math.tanh %107 : vector<8x64xf32>
    %109 = vector.extract_strided_slice %106 {offsets = [0, 0], sizes = [8, 64], strides = [1, 1]} : vector<8x192xf32> to vector<8x64xf32>
    %110 = vector.extract_strided_slice %106 {offsets = [0, 64], sizes = [8, 64], strides = [1, 1]} : vector<8x192xf32> to vector<8x64xf32>
    %111 = vector.extract_strided_slice %106 {offsets = [0, 128], sizes = [8, 64], strides = [1, 1]} : vector<8x192xf32> to vector<8x64xf32>
    %112 = arith.mulf %110, %92 : vector<8x64xf32>
    %113 = arith.mulf %109, %108 : vector<8x64xf32>
    %114 = arith.addf %112, %113 : vector<8x64xf32>
    %115 = math.tanh %114 : vector<8x64xf32>
    %116 = arith.mulf %111, %115 : vector<8x64xf32>
    %117 = vector.extract_strided_slice %116 {offsets = [0, 0], sizes = [8, 32], strides = [1, 1]} : vector<8x64xf32> to vector<8x32xf32>
    %118 = vector.extract_strided_slice %116 {offsets = [0, 32], sizes = [8, 32], strides = [1, 1]} : vector<8x64xf32> to vector<8x32xf32>
    %119 = vector.extract_strided_slice %50 {offsets = [24, 0], sizes = [8, 256], strides = [1, 1]} : vector<64x256xf32> to vector<8x256xf32>
    %120 = arith.truncf %116 : vector<8x64xf32> to vector<8x64xbf16>
    %cst_16 = arith.constant dense<0.000000e+00> : vector<8x256xf32>
    %121 = tpu.matmul %120, %44, %cst_16 {dimension_numbers = #tpu.dot_dimension_numbers<[1], [0], [0], [1], [0, 0, 1, 1], [], []>} : vector<8x64xbf16>, vector<64x256xbf16>, vector<8x256xf32> -> vector<8x256xf32>
    %122 = arith.addf %119, %121 : vector<8x256xf32>
    %123 = vector.extract_strided_slice %122 {offsets = [0, 0], sizes = [8, 192], strides = [1, 1]} : vector<8x256xf32> to vector<8x192xf32>
    %124 = arith.negf %123 : vector<8x192xf32>
    %125 = math.exp %124 : vector<8x192xf32>
    %cst_17 = arith.constant 1.000000e+00 : f32
    %126 = vector.broadcast %cst_17 : f32 to vector<8x192xf32>
    %127 = arith.addf %126, %125 : vector<8x192xf32>
    %128 = arith.divf %126, %127 : vector<8x192xf32>
    %129 = vector.extract_strided_slice %122 {offsets = [0, 192], sizes = [8, 64], strides = [1, 1]} : vector<8x256xf32> to vector<8x64xf32>
    %130 = math.tanh %129 : vector<8x64xf32>
    %131 = vector.extract_strided_slice %128 {offsets = [0, 0], sizes = [8, 64], strides = [1, 1]} : vector<8x192xf32> to vector<8x64xf32>
    %132 = vector.extract_strided_slice %128 {offsets = [0, 64], sizes = [8, 64], strides = [1, 1]} : vector<8x192xf32> to vector<8x64xf32>
    %133 = vector.extract_strided_slice %128 {offsets = [0, 128], sizes = [8, 64], strides = [1, 1]} : vector<8x192xf32> to vector<8x64xf32>
    %134 = arith.mulf %132, %114 : vector<8x64xf32>
    %135 = arith.mulf %131, %130 : vector<8x64xf32>
    %136 = arith.addf %134, %135 : vector<8x64xf32>
    %137 = math.tanh %136 : vector<8x64xf32>
    %138 = arith.mulf %133, %137 : vector<8x64xf32>
    %139 = vector.extract_strided_slice %138 {offsets = [0, 0], sizes = [8, 32], strides = [1, 1]} : vector<8x64xf32> to vector<8x32xf32>
    %140 = vector.extract_strided_slice %138 {offsets = [0, 32], sizes = [8, 32], strides = [1, 1]} : vector<8x64xf32> to vector<8x32xf32>
    %141 = vector.extract_strided_slice %50 {offsets = [32, 0], sizes = [8, 256], strides = [1, 1]} : vector<64x256xf32> to vector<8x256xf32>
    %142 = arith.truncf %138 : vector<8x64xf32> to vector<8x64xbf16>
    %cst_18 = arith.constant dense<0.000000e+00> : vector<8x256xf32>
    %143 = tpu.matmul %142, %44, %cst_18 {dimension_numbers = #tpu.dot_dimension_numbers<[1], [0], [0], [1], [0, 0, 1, 1], [], []>} : vector<8x64xbf16>, vector<64x256xbf16>, vector<8x256xf32> -> vector<8x256xf32>
    %144 = arith.addf %141, %143 : vector<8x256xf32>
    %145 = vector.extract_strided_slice %144 {offsets = [0, 0], sizes = [8, 192], strides = [1, 1]} : vector<8x256xf32> to vector<8x192xf32>
    %146 = arith.negf %145 : vector<8x192xf32>
    %147 = math.exp %146 : vector<8x192xf32>
    %cst_19 = arith.constant 1.000000e+00 : f32
    %148 = vector.broadcast %cst_19 : f32 to vector<8x192xf32>
    %149 = arith.addf %148, %147 : vector<8x192xf32>
    %150 = arith.divf %148, %149 : vector<8x192xf32>
    %151 = vector.extract_strided_slice %144 {offsets = [0, 192], sizes = [8, 64], strides = [1, 1]} : vector<8x256xf32> to vector<8x64xf32>
    %152 = math.tanh %151 : vector<8x64xf32>
    %153 = vector.extract_strided_slice %150 {offsets = [0, 0], sizes = [8, 64], strides = [1, 1]} : vector<8x192xf32> to vector<8x64xf32>
    %154 = vector.extract_strided_slice %150 {offsets = [0, 64], sizes = [8, 64], strides = [1, 1]} : vector<8x192xf32> to vector<8x64xf32>
    %155 = vector.extract_strided_slice %150 {offsets = [0, 128], sizes = [8, 64], strides = [1, 1]} : vector<8x192xf32> to vector<8x64xf32>
    %156 = arith.mulf %154, %136 : vector<8x64xf32>
    %157 = arith.mulf %153, %152 : vector<8x64xf32>
    %158 = arith.addf %156, %157 : vector<8x64xf32>
    %159 = math.tanh %158 : vector<8x64xf32>
    %160 = arith.mulf %155, %159 : vector<8x64xf32>
    %161 = vector.extract_strided_slice %160 {offsets = [0, 0], sizes = [8, 32], strides = [1, 1]} : vector<8x64xf32> to vector<8x32xf32>
    %162 = vector.extract_strided_slice %160 {offsets = [0, 32], sizes = [8, 32], strides = [1, 1]} : vector<8x64xf32> to vector<8x32xf32>
    %163 = vector.extract_strided_slice %50 {offsets = [40, 0], sizes = [8, 256], strides = [1, 1]} : vector<64x256xf32> to vector<8x256xf32>
    %164 = arith.truncf %160 : vector<8x64xf32> to vector<8x64xbf16>
    %cst_20 = arith.constant dense<0.000000e+00> : vector<8x256xf32>
    %165 = tpu.matmul %164, %44, %cst_20 {dimension_numbers = #tpu.dot_dimension_numbers<[1], [0], [0], [1], [0, 0, 1, 1], [], []>} : vector<8x64xbf16>, vector<64x256xbf16>, vector<8x256xf32> -> vector<8x256xf32>
    %166 = arith.addf %163, %165 : vector<8x256xf32>
    %167 = vector.extract_strided_slice %166 {offsets = [0, 0], sizes = [8, 192], strides = [1, 1]} : vector<8x256xf32> to vector<8x192xf32>
    %168 = arith.negf %167 : vector<8x192xf32>
    %169 = math.exp %168 : vector<8x192xf32>
    %cst_21 = arith.constant 1.000000e+00 : f32
    %170 = vector.broadcast %cst_21 : f32 to vector<8x192xf32>
    %171 = arith.addf %170, %169 : vector<8x192xf32>
    %172 = arith.divf %170, %171 : vector<8x192xf32>
    %173 = vector.extract_strided_slice %166 {offsets = [0, 192], sizes = [8, 64], strides = [1, 1]} : vector<8x256xf32> to vector<8x64xf32>
    %174 = math.tanh %173 : vector<8x64xf32>
    %175 = vector.extract_strided_slice %172 {offsets = [0, 0], sizes = [8, 64], strides = [1, 1]} : vector<8x192xf32> to vector<8x64xf32>
    %176 = vector.extract_strided_slice %172 {offsets = [0, 64], sizes = [8, 64], strides = [1, 1]} : vector<8x192xf32> to vector<8x64xf32>
    %177 = vector.extract_strided_slice %172 {offsets = [0, 128], sizes = [8, 64], strides = [1, 1]} : vector<8x192xf32> to vector<8x64xf32>
    %178 = arith.mulf %176, %158 : vector<8x64xf32>
    %179 = arith.mulf %175, %174 : vector<8x64xf32>
    %180 = arith.addf %178, %179 : vector<8x64xf32>
    %181 = math.tanh %180 : vector<8x64xf32>
    %182 = arith.mulf %177, %181 : vector<8x64xf32>
    %183 = vector.extract_strided_slice %182 {offsets = [0, 0], sizes = [8, 32], strides = [1, 1]} : vector<8x64xf32> to vector<8x32xf32>
    %184 = vector.extract_strided_slice %182 {offsets = [0, 32], sizes = [8, 32], strides = [1, 1]} : vector<8x64xf32> to vector<8x32xf32>
    %185 = vector.extract_strided_slice %50 {offsets = [48, 0], sizes = [8, 256], strides = [1, 1]} : vector<64x256xf32> to vector<8x256xf32>
    %186 = arith.truncf %182 : vector<8x64xf32> to vector<8x64xbf16>
    %cst_22 = arith.constant dense<0.000000e+00> : vector<8x256xf32>
    %187 = tpu.matmul %186, %44, %cst_22 {dimension_numbers = #tpu.dot_dimension_numbers<[1], [0], [0], [1], [0, 0, 1, 1], [], []>} : vector<8x64xbf16>, vector<64x256xbf16>, vector<8x256xf32> -> vector<8x256xf32>
    %188 = arith.addf %185, %187 : vector<8x256xf32>
    %189 = vector.extract_strided_slice %188 {offsets = [0, 0], sizes = [8, 192], strides = [1, 1]} : vector<8x256xf32> to vector<8x192xf32>
    %190 = arith.negf %189 : vector<8x192xf32>
    %191 = math.exp %190 : vector<8x192xf32>
    %cst_23 = arith.constant 1.000000e+00 : f32
    %192 = vector.broadcast %cst_23 : f32 to vector<8x192xf32>
    %193 = arith.addf %192, %191 : vector<8x192xf32>
    %194 = arith.divf %192, %193 : vector<8x192xf32>
    %195 = vector.extract_strided_slice %188 {offsets = [0, 192], sizes = [8, 64], strides = [1, 1]} : vector<8x256xf32> to vector<8x64xf32>
    %196 = math.tanh %195 : vector<8x64xf32>
    %197 = vector.extract_strided_slice %194 {offsets = [0, 0], sizes = [8, 64], strides = [1, 1]} : vector<8x192xf32> to vector<8x64xf32>
    %198 = vector.extract_strided_slice %194 {offsets = [0, 64], sizes = [8, 64], strides = [1, 1]} : vector<8x192xf32> to vector<8x64xf32>
    %199 = vector.extract_strided_slice %194 {offsets = [0, 128], sizes = [8, 64], strides = [1, 1]} : vector<8x192xf32> to vector<8x64xf32>
    %200 = arith.mulf %198, %180 : vector<8x64xf32>
    %201 = arith.mulf %197, %196 : vector<8x64xf32>
    %202 = arith.addf %200, %201 : vector<8x64xf32>
    %203 = math.tanh %202 : vector<8x64xf32>
    %204 = arith.mulf %199, %203 : vector<8x64xf32>
    %205 = vector.extract_strided_slice %204 {offsets = [0, 0], sizes = [8, 32], strides = [1, 1]} : vector<8x64xf32> to vector<8x32xf32>
    %206 = vector.extract_strided_slice %204 {offsets = [0, 32], sizes = [8, 32], strides = [1, 1]} : vector<8x64xf32> to vector<8x32xf32>
    %207 = vector.extract_strided_slice %50 {offsets = [56, 0], sizes = [8, 256], strides = [1, 1]} : vector<64x256xf32> to vector<8x256xf32>
    %208 = arith.truncf %204 : vector<8x64xf32> to vector<8x64xbf16>
    %cst_24 = arith.constant dense<0.000000e+00> : vector<8x256xf32>
    %209 = tpu.matmul %208, %44, %cst_24 {dimension_numbers = #tpu.dot_dimension_numbers<[1], [0], [0], [1], [0, 0, 1, 1], [], []>} : vector<8x64xbf16>, vector<64x256xbf16>, vector<8x256xf32> -> vector<8x256xf32>
    %210 = arith.addf %207, %209 : vector<8x256xf32>
    %211 = vector.extract_strided_slice %210 {offsets = [0, 0], sizes = [8, 192], strides = [1, 1]} : vector<8x256xf32> to vector<8x192xf32>
    %212 = arith.negf %211 : vector<8x192xf32>
    %213 = math.exp %212 : vector<8x192xf32>
    %cst_25 = arith.constant 1.000000e+00 : f32
    %214 = vector.broadcast %cst_25 : f32 to vector<8x192xf32>
    %215 = arith.addf %214, %213 : vector<8x192xf32>
    %216 = arith.divf %214, %215 : vector<8x192xf32>
    %217 = vector.extract_strided_slice %210 {offsets = [0, 192], sizes = [8, 64], strides = [1, 1]} : vector<8x256xf32> to vector<8x64xf32>
    %218 = math.tanh %217 : vector<8x64xf32>
    %219 = vector.extract_strided_slice %216 {offsets = [0, 0], sizes = [8, 64], strides = [1, 1]} : vector<8x192xf32> to vector<8x64xf32>
    %220 = vector.extract_strided_slice %216 {offsets = [0, 64], sizes = [8, 64], strides = [1, 1]} : vector<8x192xf32> to vector<8x64xf32>
    %221 = vector.extract_strided_slice %216 {offsets = [0, 128], sizes = [8, 64], strides = [1, 1]} : vector<8x192xf32> to vector<8x64xf32>
    %222 = arith.mulf %220, %202 : vector<8x64xf32>
    %223 = arith.mulf %219, %218 : vector<8x64xf32>
    %224 = arith.addf %222, %223 : vector<8x64xf32>
    %225 = math.tanh %224 : vector<8x64xf32>
    %226 = arith.mulf %221, %225 : vector<8x64xf32>
    %227 = vector.extract_strided_slice %226 {offsets = [0, 0], sizes = [8, 32], strides = [1, 1]} : vector<8x64xf32> to vector<8x32xf32>
    %228 = vector.extract_strided_slice %226 {offsets = [0, 32], sizes = [8, 32], strides = [1, 1]} : vector<8x64xf32> to vector<8x32xf32>
    %229 = vector.extract_strided_slice %2 {offsets = [0, 0], sizes = [1, 2], strides = [1, 1]} : vector<8x2xf32> to vector<1x2xf32>
    %230 = vector.broadcast %229 : vector<1x2xf32> to vector<8x2xf32>
    %231 = arith.subf %230, %2 : vector<8x2xf32>
    %232 = vector.extract_strided_slice %2 {offsets = [7, 0], sizes = [1, 2], strides = [1, 1]} : vector<8x2xf32> to vector<1x2xf32>
    %233 = vector.broadcast %232 : vector<1x2xf32> to vector<8x2xf32>
    %234 = arith.subf %233, %2 : vector<8x2xf32>
    %235 = tpu.concatenate %231, %234 in 1 : vector<8x2xf32>, vector<8x2xf32> -> vector<8x4xf32>
    %236 = vector.extract_strided_slice %2 {offsets = [1, 0], sizes = [1, 2], strides = [1, 1]} : vector<8x2xf32> to vector<1x2xf32>
    %237 = vector.broadcast %236 : vector<1x2xf32> to vector<8x2xf32>
    %238 = arith.subf %237, %2 : vector<8x2xf32>
    %239 = vector.extract_strided_slice %2 {offsets = [6, 0], sizes = [1, 2], strides = [1, 1]} : vector<8x2xf32> to vector<1x2xf32>
    %240 = vector.broadcast %239 : vector<1x2xf32> to vector<8x2xf32>
    %241 = arith.subf %240, %2 : vector<8x2xf32>
    %242 = tpu.concatenate %238, %241 in 1 : vector<8x2xf32>, vector<8x2xf32> -> vector<8x4xf32>
    %243 = vector.extract_strided_slice %2 {offsets = [2, 0], sizes = [1, 2], strides = [1, 1]} : vector<8x2xf32> to vector<1x2xf32>
    %244 = vector.broadcast %243 : vector<1x2xf32> to vector<8x2xf32>
    %245 = arith.subf %244, %2 : vector<8x2xf32>
    %246 = vector.extract_strided_slice %2 {offsets = [5, 0], sizes = [1, 2], strides = [1, 1]} : vector<8x2xf32> to vector<1x2xf32>
    %247 = vector.broadcast %246 : vector<1x2xf32> to vector<8x2xf32>
    %248 = arith.subf %247, %2 : vector<8x2xf32>
    %249 = tpu.concatenate %245, %248 in 1 : vector<8x2xf32>, vector<8x2xf32> -> vector<8x4xf32>
    %250 = vector.extract_strided_slice %2 {offsets = [3, 0], sizes = [1, 2], strides = [1, 1]} : vector<8x2xf32> to vector<1x2xf32>
    %251 = vector.broadcast %250 : vector<1x2xf32> to vector<8x2xf32>
    %252 = arith.subf %251, %2 : vector<8x2xf32>
    %253 = vector.extract_strided_slice %2 {offsets = [4, 0], sizes = [1, 2], strides = [1, 1]} : vector<8x2xf32> to vector<1x2xf32>
    %254 = vector.broadcast %253 : vector<1x2xf32> to vector<8x2xf32>
    %255 = arith.subf %254, %2 : vector<8x2xf32>
    %256 = tpu.concatenate %252, %255 in 1 : vector<8x2xf32>, vector<8x2xf32> -> vector<8x4xf32>
    %257 = vector.extract_strided_slice %2 {offsets = [4, 0], sizes = [1, 2], strides = [1, 1]} : vector<8x2xf32> to vector<1x2xf32>
    %258 = vector.broadcast %257 : vector<1x2xf32> to vector<8x2xf32>
    %259 = arith.subf %258, %2 : vector<8x2xf32>
    %260 = vector.extract_strided_slice %2 {offsets = [3, 0], sizes = [1, 2], strides = [1, 1]} : vector<8x2xf32> to vector<1x2xf32>
    %261 = vector.broadcast %260 : vector<1x2xf32> to vector<8x2xf32>
    %262 = arith.subf %261, %2 : vector<8x2xf32>
    %263 = tpu.concatenate %259, %262 in 1 : vector<8x2xf32>, vector<8x2xf32> -> vector<8x4xf32>
    %264 = vector.extract_strided_slice %2 {offsets = [5, 0], sizes = [1, 2], strides = [1, 1]} : vector<8x2xf32> to vector<1x2xf32>
    %265 = vector.broadcast %264 : vector<1x2xf32> to vector<8x2xf32>
    %266 = arith.subf %265, %2 : vector<8x2xf32>
    %267 = vector.extract_strided_slice %2 {offsets = [2, 0], sizes = [1, 2], strides = [1, 1]} : vector<8x2xf32> to vector<1x2xf32>
    %268 = vector.broadcast %267 : vector<1x2xf32> to vector<8x2xf32>
    %269 = arith.subf %268, %2 : vector<8x2xf32>
    %270 = tpu.concatenate %266, %269 in 1 : vector<8x2xf32>, vector<8x2xf32> -> vector<8x4xf32>
    %271 = vector.extract_strided_slice %2 {offsets = [6, 0], sizes = [1, 2], strides = [1, 1]} : vector<8x2xf32> to vector<1x2xf32>
    %272 = vector.broadcast %271 : vector<1x2xf32> to vector<8x2xf32>
    %273 = arith.subf %272, %2 : vector<8x2xf32>
    %274 = vector.extract_strided_slice %2 {offsets = [1, 0], sizes = [1, 2], strides = [1, 1]} : vector<8x2xf32> to vector<1x2xf32>
    %275 = vector.broadcast %274 : vector<1x2xf32> to vector<8x2xf32>
    %276 = arith.subf %275, %2 : vector<8x2xf32>
    %277 = tpu.concatenate %273, %276 in 1 : vector<8x2xf32>, vector<8x2xf32> -> vector<8x4xf32>
    %278 = vector.extract_strided_slice %2 {offsets = [7, 0], sizes = [1, 2], strides = [1, 1]} : vector<8x2xf32> to vector<1x2xf32>
    %279 = vector.broadcast %278 : vector<1x2xf32> to vector<8x2xf32>
    %280 = arith.subf %279, %2 : vector<8x2xf32>
    %281 = vector.extract_strided_slice %2 {offsets = [0, 0], sizes = [1, 2], strides = [1, 1]} : vector<8x2xf32> to vector<1x2xf32>
    %282 = vector.broadcast %281 : vector<1x2xf32> to vector<8x2xf32>
    %283 = arith.subf %282, %2 : vector<8x2xf32>
    %284 = tpu.concatenate %280, %283 in 1 : vector<8x2xf32>, vector<8x2xf32> -> vector<8x4xf32>
    %c0_26 = arith.constant 0 : index
    %c0_27 = arith.constant 0 : index
    %285 = vector.load %arg4[%c0_26, %c0_27] : memref<4x256xbf16, #tpu.memory_space<vmem>>, vector<4x256xbf16>
    %c0_28 = arith.constant 0 : index
    %c0_29 = arith.constant 0 : index
    %286 = vector.load %arg5[%c0_28, %c0_29] : memref<64x256xbf16, #tpu.memory_space<vmem>>, vector<64x256xbf16>
    %c0_30 = arith.constant 0 : index
    %c0_31 = arith.constant 0 : index
    %287 = vector.load %arg6[%c0_30, %c0_31] : memref<1x256xf32, #tpu.memory_space<vmem>>, vector<1x256xf32>
    %288 = tpu.concatenate %235, %242, %249, %256, %263, %270, %277, %284 in 0 : vector<8x4xf32>, vector<8x4xf32>, vector<8x4xf32>, vector<8x4xf32>, vector<8x4xf32>, vector<8x4xf32>, vector<8x4xf32>, vector<8x4xf32> -> vector<64x4xf32>
    %289 = arith.truncf %288 : vector<64x4xf32> to vector<64x4xbf16>
    %cst_32 = arith.constant dense<0.000000e+00> : vector<64x256xf32>
    %290 = tpu.matmul %289, %285, %cst_32 {dimension_numbers = #tpu.dot_dimension_numbers<[1], [0], [0], [1], [0, 0, 1, 1], [], []>} : vector<64x4xbf16>, vector<4x256xbf16>, vector<64x256xf32> -> vector<64x256xf32>
    %291 = vector.broadcast %287 : vector<1x256xf32> to vector<64x256xf32>
    %292 = arith.addf %290, %291 : vector<64x256xf32>
    %cst_33 = arith.constant 0.000000e+00 : f32
    %293 = vector.broadcast %cst_33 : f32 to vector<8x64xf32>
    %cst_34 = arith.constant 0.000000e+00 : f32
    %294 = vector.broadcast %cst_34 : f32 to vector<8x64xf32>
    %295 = vector.extract_strided_slice %292 {offsets = [0, 0], sizes = [8, 256], strides = [1, 1]} : vector<64x256xf32> to vector<8x256xf32>
    %296 = arith.truncf %293 : vector<8x64xf32> to vector<8x64xbf16>
    %cst_35 = arith.constant dense<0.000000e+00> : vector<8x256xf32>
    %297 = tpu.matmul %296, %286, %cst_35 {dimension_numbers = #tpu.dot_dimension_numbers<[1], [0], [0], [1], [0, 0, 1, 1], [], []>} : vector<8x64xbf16>, vector<64x256xbf16>, vector<8x256xf32> -> vector<8x256xf32>
    %298 = arith.addf %295, %297 : vector<8x256xf32>
    %299 = vector.extract_strided_slice %298 {offsets = [0, 0], sizes = [8, 192], strides = [1, 1]} : vector<8x256xf32> to vector<8x192xf32>
    %300 = arith.negf %299 : vector<8x192xf32>
    %301 = math.exp %300 : vector<8x192xf32>
    %cst_36 = arith.constant 1.000000e+00 : f32
    %302 = vector.broadcast %cst_36 : f32 to vector<8x192xf32>
    %303 = arith.addf %302, %301 : vector<8x192xf32>
    %304 = arith.divf %302, %303 : vector<8x192xf32>
    %305 = vector.extract_strided_slice %298 {offsets = [0, 192], sizes = [8, 64], strides = [1, 1]} : vector<8x256xf32> to vector<8x64xf32>
    %306 = math.tanh %305 : vector<8x64xf32>
    %307 = vector.extract_strided_slice %304 {offsets = [0, 0], sizes = [8, 64], strides = [1, 1]} : vector<8x192xf32> to vector<8x64xf32>
    %308 = vector.extract_strided_slice %304 {offsets = [0, 64], sizes = [8, 64], strides = [1, 1]} : vector<8x192xf32> to vector<8x64xf32>
    %309 = vector.extract_strided_slice %304 {offsets = [0, 128], sizes = [8, 64], strides = [1, 1]} : vector<8x192xf32> to vector<8x64xf32>
    %310 = arith.mulf %308, %294 : vector<8x64xf32>
    %311 = arith.mulf %307, %306 : vector<8x64xf32>
    %312 = arith.addf %310, %311 : vector<8x64xf32>
    %313 = math.tanh %312 : vector<8x64xf32>
    %314 = arith.mulf %309, %313 : vector<8x64xf32>
    %315 = vector.extract_strided_slice %314 {offsets = [0, 32], sizes = [8, 32], strides = [1, 1]} : vector<8x64xf32> to vector<8x32xf32>
    %316 = vector.extract_strided_slice %292 {offsets = [8, 0], sizes = [8, 256], strides = [1, 1]} : vector<64x256xf32> to vector<8x256xf32>
    %317 = arith.truncf %314 : vector<8x64xf32> to vector<8x64xbf16>
    %cst_37 = arith.constant dense<0.000000e+00> : vector<8x256xf32>
    %318 = tpu.matmul %317, %286, %cst_37 {dimension_numbers = #tpu.dot_dimension_numbers<[1], [0], [0], [1], [0, 0, 1, 1], [], []>} : vector<8x64xbf16>, vector<64x256xbf16>, vector<8x256xf32> -> vector<8x256xf32>
    %319 = arith.addf %316, %318 : vector<8x256xf32>
    %320 = vector.extract_strided_slice %319 {offsets = [0, 0], sizes = [8, 192], strides = [1, 1]} : vector<8x256xf32> to vector<8x192xf32>
    %321 = arith.negf %320 : vector<8x192xf32>
    %322 = math.exp %321 : vector<8x192xf32>
    %cst_38 = arith.constant 1.000000e+00 : f32
    %323 = vector.broadcast %cst_38 : f32 to vector<8x192xf32>
    %324 = arith.addf %323, %322 : vector<8x192xf32>
    %325 = arith.divf %323, %324 : vector<8x192xf32>
    %326 = vector.extract_strided_slice %319 {offsets = [0, 192], sizes = [8, 64], strides = [1, 1]} : vector<8x256xf32> to vector<8x64xf32>
    %327 = math.tanh %326 : vector<8x64xf32>
    %328 = vector.extract_strided_slice %325 {offsets = [0, 0], sizes = [8, 64], strides = [1, 1]} : vector<8x192xf32> to vector<8x64xf32>
    %329 = vector.extract_strided_slice %325 {offsets = [0, 64], sizes = [8, 64], strides = [1, 1]} : vector<8x192xf32> to vector<8x64xf32>
    %330 = vector.extract_strided_slice %325 {offsets = [0, 128], sizes = [8, 64], strides = [1, 1]} : vector<8x192xf32> to vector<8x64xf32>
    %331 = arith.mulf %329, %312 : vector<8x64xf32>
    %332 = arith.mulf %328, %327 : vector<8x64xf32>
    %333 = arith.addf %331, %332 : vector<8x64xf32>
    %334 = math.tanh %333 : vector<8x64xf32>
    %335 = arith.mulf %330, %334 : vector<8x64xf32>
    %336 = vector.extract_strided_slice %292 {offsets = [16, 0], sizes = [8, 256], strides = [1, 1]} : vector<64x256xf32> to vector<8x256xf32>
    %337 = arith.truncf %335 : vector<8x64xf32> to vector<8x64xbf16>
    %cst_39 = arith.constant dense<0.000000e+00> : vector<8x256xf32>
    %338 = tpu.matmul %337, %286, %cst_39 {dimension_numbers = #tpu.dot_dimension_numbers<[1], [0], [0], [1], [0, 0, 1, 1], [], []>} : vector<8x64xbf16>, vector<64x256xbf16>, vector<8x256xf32> -> vector<8x256xf32>
    %339 = arith.addf %336, %338 : vector<8x256xf32>
    %340 = vector.extract_strided_slice %339 {offsets = [0, 0], sizes = [8, 192], strides = [1, 1]} : vector<8x256xf32> to vector<8x192xf32>
    %341 = arith.negf %340 : vector<8x192xf32>
    %342 = math.exp %341 : vector<8x192xf32>
    %cst_40 = arith.constant 1.000000e+00 : f32
    %343 = vector.broadcast %cst_40 : f32 to vector<8x192xf32>
    %344 = arith.addf %343, %342 : vector<8x192xf32>
    %345 = arith.divf %343, %344 : vector<8x192xf32>
    %346 = vector.extract_strided_slice %339 {offsets = [0, 192], sizes = [8, 64], strides = [1, 1]} : vector<8x256xf32> to vector<8x64xf32>
    %347 = math.tanh %346 : vector<8x64xf32>
    %348 = vector.extract_strided_slice %345 {offsets = [0, 0], sizes = [8, 64], strides = [1, 1]} : vector<8x192xf32> to vector<8x64xf32>
    %349 = vector.extract_strided_slice %345 {offsets = [0, 64], sizes = [8, 64], strides = [1, 1]} : vector<8x192xf32> to vector<8x64xf32>
    %350 = vector.extract_strided_slice %345 {offsets = [0, 128], sizes = [8, 64], strides = [1, 1]} : vector<8x192xf32> to vector<8x64xf32>
    %351 = arith.mulf %349, %333 : vector<8x64xf32>
    %352 = arith.mulf %348, %347 : vector<8x64xf32>
    %353 = arith.addf %351, %352 : vector<8x64xf32>
    %354 = math.tanh %353 : vector<8x64xf32>
    %355 = arith.mulf %350, %354 : vector<8x64xf32>
    %356 = vector.extract_strided_slice %292 {offsets = [24, 0], sizes = [8, 256], strides = [1, 1]} : vector<64x256xf32> to vector<8x256xf32>
    %357 = arith.truncf %355 : vector<8x64xf32> to vector<8x64xbf16>
    %cst_41 = arith.constant dense<0.000000e+00> : vector<8x256xf32>
    %358 = tpu.matmul %357, %286, %cst_41 {dimension_numbers = #tpu.dot_dimension_numbers<[1], [0], [0], [1], [0, 0, 1, 1], [], []>} : vector<8x64xbf16>, vector<64x256xbf16>, vector<8x256xf32> -> vector<8x256xf32>
    %359 = arith.addf %356, %358 : vector<8x256xf32>
    %360 = vector.extract_strided_slice %359 {offsets = [0, 0], sizes = [8, 192], strides = [1, 1]} : vector<8x256xf32> to vector<8x192xf32>
    %361 = arith.negf %360 : vector<8x192xf32>
    %362 = math.exp %361 : vector<8x192xf32>
    %cst_42 = arith.constant 1.000000e+00 : f32
    %363 = vector.broadcast %cst_42 : f32 to vector<8x192xf32>
    %364 = arith.addf %363, %362 : vector<8x192xf32>
    %365 = arith.divf %363, %364 : vector<8x192xf32>
    %366 = vector.extract_strided_slice %359 {offsets = [0, 192], sizes = [8, 64], strides = [1, 1]} : vector<8x256xf32> to vector<8x64xf32>
    %367 = math.tanh %366 : vector<8x64xf32>
    %368 = vector.extract_strided_slice %365 {offsets = [0, 0], sizes = [8, 64], strides = [1, 1]} : vector<8x192xf32> to vector<8x64xf32>
    %369 = vector.extract_strided_slice %365 {offsets = [0, 64], sizes = [8, 64], strides = [1, 1]} : vector<8x192xf32> to vector<8x64xf32>
    %370 = vector.extract_strided_slice %365 {offsets = [0, 128], sizes = [8, 64], strides = [1, 1]} : vector<8x192xf32> to vector<8x64xf32>
    %371 = arith.mulf %369, %353 : vector<8x64xf32>
    %372 = arith.mulf %368, %367 : vector<8x64xf32>
    %373 = arith.addf %371, %372 : vector<8x64xf32>
    %374 = math.tanh %373 : vector<8x64xf32>
    %375 = arith.mulf %370, %374 : vector<8x64xf32>
    %376 = vector.extract_strided_slice %292 {offsets = [32, 0], sizes = [8, 256], strides = [1, 1]} : vector<64x256xf32> to vector<8x256xf32>
    %377 = arith.truncf %375 : vector<8x64xf32> to vector<8x64xbf16>
    %cst_43 = arith.constant dense<0.000000e+00> : vector<8x256xf32>
    %378 = tpu.matmul %377, %286, %cst_43 {dimension_numbers = #tpu.dot_dimension_numbers<[1], [0], [0], [1], [0, 0, 1, 1], [], []>} : vector<8x64xbf16>, vector<64x256xbf16>, vector<8x256xf32> -> vector<8x256xf32>
    %379 = arith.addf %376, %378 : vector<8x256xf32>
    %380 = vector.extract_strided_slice %379 {offsets = [0, 0], sizes = [8, 192], strides = [1, 1]} : vector<8x256xf32> to vector<8x192xf32>
    %381 = arith.negf %380 : vector<8x192xf32>
    %382 = math.exp %381 : vector<8x192xf32>
    %cst_44 = arith.constant 1.000000e+00 : f32
    %383 = vector.broadcast %cst_44 : f32 to vector<8x192xf32>
    %384 = arith.addf %383, %382 : vector<8x192xf32>
    %385 = arith.divf %383, %384 : vector<8x192xf32>
    %386 = vector.extract_strided_slice %379 {offsets = [0, 192], sizes = [8, 64], strides = [1, 1]} : vector<8x256xf32> to vector<8x64xf32>
    %387 = math.tanh %386 : vector<8x64xf32>
    %388 = vector.extract_strided_slice %385 {offsets = [0, 0], sizes = [8, 64], strides = [1, 1]} : vector<8x192xf32> to vector<8x64xf32>
    %389 = vector.extract_strided_slice %385 {offsets = [0, 64], sizes = [8, 64], strides = [1, 1]} : vector<8x192xf32> to vector<8x64xf32>
    %390 = vector.extract_strided_slice %385 {offsets = [0, 128], sizes = [8, 64], strides = [1, 1]} : vector<8x192xf32> to vector<8x64xf32>
    %391 = arith.mulf %389, %373 : vector<8x64xf32>
    %392 = arith.mulf %388, %387 : vector<8x64xf32>
    %393 = arith.addf %391, %392 : vector<8x64xf32>
    %394 = math.tanh %393 : vector<8x64xf32>
    %395 = arith.mulf %390, %394 : vector<8x64xf32>
    %396 = vector.extract_strided_slice %292 {offsets = [40, 0], sizes = [8, 256], strides = [1, 1]} : vector<64x256xf32> to vector<8x256xf32>
    %397 = arith.truncf %395 : vector<8x64xf32> to vector<8x64xbf16>
    %cst_45 = arith.constant dense<0.000000e+00> : vector<8x256xf32>
    %398 = tpu.matmul %397, %286, %cst_45 {dimension_numbers = #tpu.dot_dimension_numbers<[1], [0], [0], [1], [0, 0, 1, 1], [], []>} : vector<8x64xbf16>, vector<64x256xbf16>, vector<8x256xf32> -> vector<8x256xf32>
    %399 = arith.addf %396, %398 : vector<8x256xf32>
    %400 = vector.extract_strided_slice %399 {offsets = [0, 0], sizes = [8, 192], strides = [1, 1]} : vector<8x256xf32> to vector<8x192xf32>
    %401 = arith.negf %400 : vector<8x192xf32>
    %402 = math.exp %401 : vector<8x192xf32>
    %cst_46 = arith.constant 1.000000e+00 : f32
    %403 = vector.broadcast %cst_46 : f32 to vector<8x192xf32>
    %404 = arith.addf %403, %402 : vector<8x192xf32>
    %405 = arith.divf %403, %404 : vector<8x192xf32>
    %406 = vector.extract_strided_slice %399 {offsets = [0, 192], sizes = [8, 64], strides = [1, 1]} : vector<8x256xf32> to vector<8x64xf32>
    %407 = math.tanh %406 : vector<8x64xf32>
    %408 = vector.extract_strided_slice %405 {offsets = [0, 0], sizes = [8, 64], strides = [1, 1]} : vector<8x192xf32> to vector<8x64xf32>
    %409 = vector.extract_strided_slice %405 {offsets = [0, 64], sizes = [8, 64], strides = [1, 1]} : vector<8x192xf32> to vector<8x64xf32>
    %410 = vector.extract_strided_slice %405 {offsets = [0, 128], sizes = [8, 64], strides = [1, 1]} : vector<8x192xf32> to vector<8x64xf32>
    %411 = arith.mulf %409, %393 : vector<8x64xf32>
    %412 = arith.mulf %408, %407 : vector<8x64xf32>
    %413 = arith.addf %411, %412 : vector<8x64xf32>
    %414 = math.tanh %413 : vector<8x64xf32>
    %415 = arith.mulf %410, %414 : vector<8x64xf32>
    %416 = vector.extract_strided_slice %292 {offsets = [48, 0], sizes = [8, 256], strides = [1, 1]} : vector<64x256xf32> to vector<8x256xf32>
    %417 = arith.truncf %415 : vector<8x64xf32> to vector<8x64xbf16>
    %cst_47 = arith.constant dense<0.000000e+00> : vector<8x256xf32>
    %418 = tpu.matmul %417, %286, %cst_47 {dimension_numbers = #tpu.dot_dimension_numbers<[1], [0], [0], [1], [0, 0, 1, 1], [], []>} : vector<8x64xbf16>, vector<64x256xbf16>, vector<8x256xf32> -> vector<8x256xf32>
    %419 = arith.addf %416, %418 : vector<8x256xf32>
    %420 = vector.extract_strided_slice %419 {offsets = [0, 0], sizes = [8, 192], strides = [1, 1]} : vector<8x256xf32> to vector<8x192xf32>
    %421 = arith.negf %420 : vector<8x192xf32>
    %422 = math.exp %421 : vector<8x192xf32>
    %cst_48 = arith.constant 1.000000e+00 : f32
    %423 = vector.broadcast %cst_48 : f32 to vector<8x192xf32>
    %424 = arith.addf %423, %422 : vector<8x192xf32>
    %425 = arith.divf %423, %424 : vector<8x192xf32>
    %426 = vector.extract_strided_slice %419 {offsets = [0, 192], sizes = [8, 64], strides = [1, 1]} : vector<8x256xf32> to vector<8x64xf32>
    %427 = math.tanh %426 : vector<8x64xf32>
    %428 = vector.extract_strided_slice %425 {offsets = [0, 0], sizes = [8, 64], strides = [1, 1]} : vector<8x192xf32> to vector<8x64xf32>
    %429 = vector.extract_strided_slice %425 {offsets = [0, 64], sizes = [8, 64], strides = [1, 1]} : vector<8x192xf32> to vector<8x64xf32>
    %430 = vector.extract_strided_slice %425 {offsets = [0, 128], sizes = [8, 64], strides = [1, 1]} : vector<8x192xf32> to vector<8x64xf32>
    %431 = arith.mulf %429, %413 : vector<8x64xf32>
    %432 = arith.mulf %428, %427 : vector<8x64xf32>
    %433 = arith.addf %431, %432 : vector<8x64xf32>
    %434 = math.tanh %433 : vector<8x64xf32>
    %435 = arith.mulf %430, %434 : vector<8x64xf32>
    %436 = vector.extract_strided_slice %292 {offsets = [56, 0], sizes = [8, 256], strides = [1, 1]} : vector<64x256xf32> to vector<8x256xf32>
    %437 = arith.truncf %435 : vector<8x64xf32> to vector<8x64xbf16>
    %cst_49 = arith.constant dense<0.000000e+00> : vector<8x256xf32>
    %438 = tpu.matmul %437, %286, %cst_49 {dimension_numbers = #tpu.dot_dimension_numbers<[1], [0], [0], [1], [0, 0, 1, 1], [], []>} : vector<8x64xbf16>, vector<64x256xbf16>, vector<8x256xf32> -> vector<8x256xf32>
    %439 = arith.addf %436, %438 : vector<8x256xf32>
    %440 = vector.extract_strided_slice %439 {offsets = [0, 0], sizes = [8, 192], strides = [1, 1]} : vector<8x256xf32> to vector<8x192xf32>
    %441 = arith.negf %440 : vector<8x192xf32>
    %442 = math.exp %441 : vector<8x192xf32>
    %cst_50 = arith.constant 1.000000e+00 : f32
    %443 = vector.broadcast %cst_50 : f32 to vector<8x192xf32>
    %444 = arith.addf %443, %442 : vector<8x192xf32>
    %445 = arith.divf %443, %444 : vector<8x192xf32>
    %446 = vector.extract_strided_slice %439 {offsets = [0, 192], sizes = [8, 64], strides = [1, 1]} : vector<8x256xf32> to vector<8x64xf32>
    %447 = math.tanh %446 : vector<8x64xf32>
    %448 = vector.extract_strided_slice %445 {offsets = [0, 0], sizes = [8, 64], strides = [1, 1]} : vector<8x192xf32> to vector<8x64xf32>
    %449 = vector.extract_strided_slice %445 {offsets = [0, 64], sizes = [8, 64], strides = [1, 1]} : vector<8x192xf32> to vector<8x64xf32>
    %450 = vector.extract_strided_slice %445 {offsets = [0, 128], sizes = [8, 64], strides = [1, 1]} : vector<8x192xf32> to vector<8x64xf32>
    %451 = arith.mulf %449, %433 : vector<8x64xf32>
    %452 = arith.mulf %448, %447 : vector<8x64xf32>
    %453 = arith.addf %451, %452 : vector<8x64xf32>
    %454 = math.tanh %453 : vector<8x64xf32>
    %455 = arith.mulf %450, %454 : vector<8x64xf32>
    %456 = vector.extract_strided_slice %455 {offsets = [0, 0], sizes = [8, 32], strides = [1, 1]} : vector<8x64xf32> to vector<8x32xf32>
    %457 = tpu.concatenate %456, %315 in 1 : vector<8x32xf32>, vector<8x32xf32> -> vector<8x64xf32>
    %458 = tpu.concatenate %73, %228 in 1 : vector<8x32xf32>, vector<8x32xf32> -> vector<8x64xf32>
    %459 = tpu.concatenate %95, %206 in 1 : vector<8x32xf32>, vector<8x32xf32> -> vector<8x64xf32>
    %460 = tpu.concatenate %117, %184 in 1 : vector<8x32xf32>, vector<8x32xf32> -> vector<8x64xf32>
    %461 = tpu.concatenate %139, %162 in 1 : vector<8x32xf32>, vector<8x32xf32> -> vector<8x64xf32>
    %462 = tpu.concatenate %161, %140 in 1 : vector<8x32xf32>, vector<8x32xf32> -> vector<8x64xf32>
    %463 = tpu.concatenate %183, %118 in 1 : vector<8x32xf32>, vector<8x32xf32> -> vector<8x64xf32>
    %464 = tpu.concatenate %205, %96 in 1 : vector<8x32xf32>, vector<8x32xf32> -> vector<8x64xf32>
    %465 = tpu.concatenate %227, %74 in 1 : vector<8x32xf32>, vector<8x32xf32> -> vector<8x64xf32>
    %466 = tpu.concatenate %458, %457 in 1 : vector<8x64xf32>, vector<8x64xf32> -> vector<8x128xf32>
    %467 = tpu.concatenate %459, %465 in 1 : vector<8x64xf32>, vector<8x64xf32> -> vector<8x128xf32>
    %468 = tpu.concatenate %460, %464 in 1 : vector<8x64xf32>, vector<8x64xf32> -> vector<8x128xf32>
    %469 = tpu.concatenate %461, %463 in 1 : vector<8x64xf32>, vector<8x64xf32> -> vector<8x128xf32>
    %470 = tpu.concatenate %462, %462 in 1 : vector<8x64xf32>, vector<8x64xf32> -> vector<8x128xf32>
    %471 = tpu.concatenate %463, %461 in 1 : vector<8x64xf32>, vector<8x64xf32> -> vector<8x128xf32>
    %472 = tpu.concatenate %464, %460 in 1 : vector<8x64xf32>, vector<8x64xf32> -> vector<8x128xf32>
    %473 = tpu.concatenate %465, %459 in 1 : vector<8x64xf32>, vector<8x64xf32> -> vector<8x128xf32>
    %474 = tpu.concatenate %457, %458 in 1 : vector<8x64xf32>, vector<8x64xf32> -> vector<8x128xf32>
    %c0_51 = arith.constant 0 : index
    %c0_52 = arith.constant 0 : index
    %475 = vector.load %arg7[%c0_51, %c0_52] : memref<128x256xbf16, #tpu.memory_space<vmem>>, vector<128x256xbf16>
    %c0_53 = arith.constant 0 : index
    %c0_54 = arith.constant 0 : index
    %476 = vector.load %arg8[%c0_53, %c0_54] : memref<64x256xbf16, #tpu.memory_space<vmem>>, vector<64x256xbf16>
    %c0_55 = arith.constant 0 : index
    %c0_56 = arith.constant 0 : index
    %477 = vector.load %arg9[%c0_55, %c0_56] : memref<1x256xf32, #tpu.memory_space<vmem>>, vector<1x256xf32>
    %478 = tpu.concatenate %466, %467, %468, %469, %470, %471, %472, %473, %474 in 0 : vector<8x128xf32>, vector<8x128xf32>, vector<8x128xf32>, vector<8x128xf32>, vector<8x128xf32>, vector<8x128xf32>, vector<8x128xf32>, vector<8x128xf32>, vector<8x128xf32> -> vector<72x128xf32>
    %479 = arith.truncf %478 : vector<72x128xf32> to vector<72x128xbf16>
    %cst_57 = arith.constant dense<0.000000e+00> : vector<72x256xf32>
    %480 = tpu.matmul %479, %475, %cst_57 {dimension_numbers = #tpu.dot_dimension_numbers<[1], [0], [0], [1], [0, 0, 1, 1], [], []>} : vector<72x128xbf16>, vector<128x256xbf16>, vector<72x256xf32> -> vector<72x256xf32>
    %481 = vector.broadcast %477 : vector<1x256xf32> to vector<72x256xf32>
    %482 = arith.addf %480, %481 : vector<72x256xf32>
    %cst_58 = arith.constant 0.000000e+00 : f32
    %483 = vector.broadcast %cst_58 : f32 to vector<8x64xf32>
    %cst_59 = arith.constant 0.000000e+00 : f32
    %484 = vector.broadcast %cst_59 : f32 to vector<8x64xf32>
    %485 = vector.extract_strided_slice %482 {offsets = [0, 0], sizes = [8, 256], strides = [1, 1]} : vector<72x256xf32> to vector<8x256xf32>
    %486 = arith.truncf %483 : vector<8x64xf32> to vector<8x64xbf16>
    %cst_60 = arith.constant dense<0.000000e+00> : vector<8x256xf32>
    %487 = tpu.matmul %486, %476, %cst_60 {dimension_numbers = #tpu.dot_dimension_numbers<[1], [0], [0], [1], [0, 0, 1, 1], [], []>} : vector<8x64xbf16>, vector<64x256xbf16>, vector<8x256xf32> -> vector<8x256xf32>
    %488 = arith.addf %485, %487 : vector<8x256xf32>
    %489 = vector.extract_strided_slice %488 {offsets = [0, 0], sizes = [8, 192], strides = [1, 1]} : vector<8x256xf32> to vector<8x192xf32>
    %490 = arith.negf %489 : vector<8x192xf32>
    %491 = math.exp %490 : vector<8x192xf32>
    %cst_61 = arith.constant 1.000000e+00 : f32
    %492 = vector.broadcast %cst_61 : f32 to vector<8x192xf32>
    %493 = arith.addf %492, %491 : vector<8x192xf32>
    %494 = arith.divf %492, %493 : vector<8x192xf32>
    %495 = vector.extract_strided_slice %488 {offsets = [0, 192], sizes = [8, 64], strides = [1, 1]} : vector<8x256xf32> to vector<8x64xf32>
    %496 = math.tanh %495 : vector<8x64xf32>
    %497 = vector.extract_strided_slice %494 {offsets = [0, 0], sizes = [8, 64], strides = [1, 1]} : vector<8x192xf32> to vector<8x64xf32>
    %498 = vector.extract_strided_slice %494 {offsets = [0, 64], sizes = [8, 64], strides = [1, 1]} : vector<8x192xf32> to vector<8x64xf32>
    %499 = vector.extract_strided_slice %494 {offsets = [0, 128], sizes = [8, 64], strides = [1, 1]} : vector<8x192xf32> to vector<8x64xf32>
    %500 = arith.mulf %498, %484 : vector<8x64xf32>
    %501 = arith.mulf %497, %496 : vector<8x64xf32>
    %502 = arith.addf %500, %501 : vector<8x64xf32>
    %503 = math.tanh %502 : vector<8x64xf32>
    %504 = arith.mulf %499, %503 : vector<8x64xf32>
    %505 = vector.extract_strided_slice %504 {offsets = [0, 0], sizes = [8, 32], strides = [1, 1]} : vector<8x64xf32> to vector<8x32xf32>
    %506 = vector.extract_strided_slice %504 {offsets = [0, 32], sizes = [8, 32], strides = [1, 1]} : vector<8x64xf32> to vector<8x32xf32>
    %507 = vector.extract_strided_slice %482 {offsets = [8, 0], sizes = [8, 256], strides = [1, 1]} : vector<72x256xf32> to vector<8x256xf32>
    %508 = arith.truncf %504 : vector<8x64xf32> to vector<8x64xbf16>
    %cst_62 = arith.constant dense<0.000000e+00> : vector<8x256xf32>
    %509 = tpu.matmul %508, %476, %cst_62 {dimension_numbers = #tpu.dot_dimension_numbers<[1], [0], [0], [1], [0, 0, 1, 1], [], []>} : vector<8x64xbf16>, vector<64x256xbf16>, vector<8x256xf32> -> vector<8x256xf32>
    %510 = arith.addf %507, %509 : vector<8x256xf32>
    %511 = vector.extract_strided_slice %510 {offsets = [0, 0], sizes = [8, 192], strides = [1, 1]} : vector<8x256xf32> to vector<8x192xf32>
    %512 = arith.negf %511 : vector<8x192xf32>
    %513 = math.exp %512 : vector<8x192xf32>
    %cst_63 = arith.constant 1.000000e+00 : f32
    %514 = vector.broadcast %cst_63 : f32 to vector<8x192xf32>
    %515 = arith.addf %514, %513 : vector<8x192xf32>
    %516 = arith.divf %514, %515 : vector<8x192xf32>
    %517 = vector.extract_strided_slice %510 {offsets = [0, 192], sizes = [8, 64], strides = [1, 1]} : vector<8x256xf32> to vector<8x64xf32>
    %518 = math.tanh %517 : vector<8x64xf32>
    %519 = vector.extract_strided_slice %516 {offsets = [0, 0], sizes = [8, 64], strides = [1, 1]} : vector<8x192xf32> to vector<8x64xf32>
    %520 = vector.extract_strided_slice %516 {offsets = [0, 64], sizes = [8, 64], strides = [1, 1]} : vector<8x192xf32> to vector<8x64xf32>
    %521 = vector.extract_strided_slice %516 {offsets = [0, 128], sizes = [8, 64], strides = [1, 1]} : vector<8x192xf32> to vector<8x64xf32>
    %522 = arith.mulf %520, %502 : vector<8x64xf32>
    %523 = arith.mulf %519, %518 : vector<8x64xf32>
    %524 = arith.addf %522, %523 : vector<8x64xf32>
    %525 = math.tanh %524 : vector<8x64xf32>
    %526 = arith.mulf %521, %525 : vector<8x64xf32>
    %527 = vector.extract_strided_slice %526 {offsets = [0, 0], sizes = [8, 32], strides = [1, 1]} : vector<8x64xf32> to vector<8x32xf32>
    %528 = vector.extract_strided_slice %526 {offsets = [0, 32], sizes = [8, 32], strides = [1, 1]} : vector<8x64xf32> to vector<8x32xf32>
    %529 = vector.extract_strided_slice %482 {offsets = [16, 0], sizes = [8, 256], strides = [1, 1]} : vector<72x256xf32> to vector<8x256xf32>
    %530 = arith.truncf %526 : vector<8x64xf32> to vector<8x64xbf16>
    %cst_64 = arith.constant dense<0.000000e+00> : vector<8x256xf32>
    %531 = tpu.matmul %530, %476, %cst_64 {dimension_numbers = #tpu.dot_dimension_numbers<[1], [0], [0], [1], [0, 0, 1, 1], [], []>} : vector<8x64xbf16>, vector<64x256xbf16>, vector<8x256xf32> -> vector<8x256xf32>
    %532 = arith.addf %529, %531 : vector<8x256xf32>
    %533 = vector.extract_strided_slice %532 {offsets = [0, 0], sizes = [8, 192], strides = [1, 1]} : vector<8x256xf32> to vector<8x192xf32>
    %534 = arith.negf %533 : vector<8x192xf32>
    %535 = math.exp %534 : vector<8x192xf32>
    %cst_65 = arith.constant 1.000000e+00 : f32
    %536 = vector.broadcast %cst_65 : f32 to vector<8x192xf32>
    %537 = arith.addf %536, %535 : vector<8x192xf32>
    %538 = arith.divf %536, %537 : vector<8x192xf32>
    %539 = vector.extract_strided_slice %532 {offsets = [0, 192], sizes = [8, 64], strides = [1, 1]} : vector<8x256xf32> to vector<8x64xf32>
    %540 = math.tanh %539 : vector<8x64xf32>
    %541 = vector.extract_strided_slice %538 {offsets = [0, 0], sizes = [8, 64], strides = [1, 1]} : vector<8x192xf32> to vector<8x64xf32>
    %542 = vector.extract_strided_slice %538 {offsets = [0, 64], sizes = [8, 64], strides = [1, 1]} : vector<8x192xf32> to vector<8x64xf32>
    %543 = vector.extract_strided_slice %538 {offsets = [0, 128], sizes = [8, 64], strides = [1, 1]} : vector<8x192xf32> to vector<8x64xf32>
    %544 = arith.mulf %542, %524 : vector<8x64xf32>
    %545 = arith.mulf %541, %540 : vector<8x64xf32>
    %546 = arith.addf %544, %545 : vector<8x64xf32>
    %547 = math.tanh %546 : vector<8x64xf32>
    %548 = arith.mulf %543, %547 : vector<8x64xf32>
    %549 = vector.extract_strided_slice %548 {offsets = [0, 0], sizes = [8, 32], strides = [1, 1]} : vector<8x64xf32> to vector<8x32xf32>
    %550 = vector.extract_strided_slice %548 {offsets = [0, 32], sizes = [8, 32], strides = [1, 1]} : vector<8x64xf32> to vector<8x32xf32>
    %551 = vector.extract_strided_slice %482 {offsets = [24, 0], sizes = [8, 256], strides = [1, 1]} : vector<72x256xf32> to vector<8x256xf32>
    %552 = arith.truncf %548 : vector<8x64xf32> to vector<8x64xbf16>
    %cst_66 = arith.constant dense<0.000000e+00> : vector<8x256xf32>
    %553 = tpu.matmul %552, %476, %cst_66 {dimension_numbers = #tpu.dot_dimension_numbers<[1], [0], [0], [1], [0, 0, 1, 1], [], []>} : vector<8x64xbf16>, vector<64x256xbf16>, vector<8x256xf32> -> vector<8x256xf32>
    %554 = arith.addf %551, %553 : vector<8x256xf32>
    %555 = vector.extract_strided_slice %554 {offsets = [0, 0], sizes = [8, 192], strides = [1, 1]} : vector<8x256xf32> to vector<8x192xf32>
    %556 = arith.negf %555 : vector<8x192xf32>
    %557 = math.exp %556 : vector<8x192xf32>
    %cst_67 = arith.constant 1.000000e+00 : f32
    %558 = vector.broadcast %cst_67 : f32 to vector<8x192xf32>
    %559 = arith.addf %558, %557 : vector<8x192xf32>
    %560 = arith.divf %558, %559 : vector<8x192xf32>
    %561 = vector.extract_strided_slice %554 {offsets = [0, 192], sizes = [8, 64], strides = [1, 1]} : vector<8x256xf32> to vector<8x64xf32>
    %562 = math.tanh %561 : vector<8x64xf32>
    %563 = vector.extract_strided_slice %560 {offsets = [0, 0], sizes = [8, 64], strides = [1, 1]} : vector<8x192xf32> to vector<8x64xf32>
    %564 = vector.extract_strided_slice %560 {offsets = [0, 64], sizes = [8, 64], strides = [1, 1]} : vector<8x192xf32> to vector<8x64xf32>
    %565 = vector.extract_strided_slice %560 {offsets = [0, 128], sizes = [8, 64], strides = [1, 1]} : vector<8x192xf32> to vector<8x64xf32>
    %566 = arith.mulf %564, %546 : vector<8x64xf32>
    %567 = arith.mulf %563, %562 : vector<8x64xf32>
    %568 = arith.addf %566, %567 : vector<8x64xf32>
    %569 = math.tanh %568 : vector<8x64xf32>
    %570 = arith.mulf %565, %569 : vector<8x64xf32>
    %571 = vector.extract_strided_slice %570 {offsets = [0, 0], sizes = [8, 32], strides = [1, 1]} : vector<8x64xf32> to vector<8x32xf32>
    %572 = vector.extract_strided_slice %570 {offsets = [0, 32], sizes = [8, 32], strides = [1, 1]} : vector<8x64xf32> to vector<8x32xf32>
    %573 = vector.extract_strided_slice %482 {offsets = [32, 0], sizes = [8, 256], strides = [1, 1]} : vector<72x256xf32> to vector<8x256xf32>
    %574 = arith.truncf %570 : vector<8x64xf32> to vector<8x64xbf16>
    %cst_68 = arith.constant dense<0.000000e+00> : vector<8x256xf32>
    %575 = tpu.matmul %574, %476, %cst_68 {dimension_numbers = #tpu.dot_dimension_numbers<[1], [0], [0], [1], [0, 0, 1, 1], [], []>} : vector<8x64xbf16>, vector<64x256xbf16>, vector<8x256xf32> -> vector<8x256xf32>
    %576 = arith.addf %573, %575 : vector<8x256xf32>
    %577 = vector.extract_strided_slice %576 {offsets = [0, 0], sizes = [8, 192], strides = [1, 1]} : vector<8x256xf32> to vector<8x192xf32>
    %578 = arith.negf %577 : vector<8x192xf32>
    %579 = math.exp %578 : vector<8x192xf32>
    %cst_69 = arith.constant 1.000000e+00 : f32
    %580 = vector.broadcast %cst_69 : f32 to vector<8x192xf32>
    %581 = arith.addf %580, %579 : vector<8x192xf32>
    %582 = arith.divf %580, %581 : vector<8x192xf32>
    %583 = vector.extract_strided_slice %576 {offsets = [0, 192], sizes = [8, 64], strides = [1, 1]} : vector<8x256xf32> to vector<8x64xf32>
    %584 = math.tanh %583 : vector<8x64xf32>
    %585 = vector.extract_strided_slice %582 {offsets = [0, 0], sizes = [8, 64], strides = [1, 1]} : vector<8x192xf32> to vector<8x64xf32>
    %586 = vector.extract_strided_slice %582 {offsets = [0, 64], sizes = [8, 64], strides = [1, 1]} : vector<8x192xf32> to vector<8x64xf32>
    %587 = vector.extract_strided_slice %582 {offsets = [0, 128], sizes = [8, 64], strides = [1, 1]} : vector<8x192xf32> to vector<8x64xf32>
    %588 = arith.mulf %586, %568 : vector<8x64xf32>
    %589 = arith.mulf %585, %584 : vector<8x64xf32>
    %590 = arith.addf %588, %589 : vector<8x64xf32>
    %591 = math.tanh %590 : vector<8x64xf32>
    %592 = arith.mulf %587, %591 : vector<8x64xf32>
    %593 = vector.extract_strided_slice %592 {offsets = [0, 0], sizes = [8, 32], strides = [1, 1]} : vector<8x64xf32> to vector<8x32xf32>
    %594 = vector.extract_strided_slice %592 {offsets = [0, 32], sizes = [8, 32], strides = [1, 1]} : vector<8x64xf32> to vector<8x32xf32>
    %595 = vector.extract_strided_slice %482 {offsets = [40, 0], sizes = [8, 256], strides = [1, 1]} : vector<72x256xf32> to vector<8x256xf32>
    %596 = arith.truncf %592 : vector<8x64xf32> to vector<8x64xbf16>
    %cst_70 = arith.constant dense<0.000000e+00> : vector<8x256xf32>
    %597 = tpu.matmul %596, %476, %cst_70 {dimension_numbers = #tpu.dot_dimension_numbers<[1], [0], [0], [1], [0, 0, 1, 1], [], []>} : vector<8x64xbf16>, vector<64x256xbf16>, vector<8x256xf32> -> vector<8x256xf32>
    %598 = arith.addf %595, %597 : vector<8x256xf32>
    %599 = vector.extract_strided_slice %598 {offsets = [0, 0], sizes = [8, 192], strides = [1, 1]} : vector<8x256xf32> to vector<8x192xf32>
    %600 = arith.negf %599 : vector<8x192xf32>
    %601 = math.exp %600 : vector<8x192xf32>
    %cst_71 = arith.constant 1.000000e+00 : f32
    %602 = vector.broadcast %cst_71 : f32 to vector<8x192xf32>
    %603 = arith.addf %602, %601 : vector<8x192xf32>
    %604 = arith.divf %602, %603 : vector<8x192xf32>
    %605 = vector.extract_strided_slice %598 {offsets = [0, 192], sizes = [8, 64], strides = [1, 1]} : vector<8x256xf32> to vector<8x64xf32>
    %606 = math.tanh %605 : vector<8x64xf32>
    %607 = vector.extract_strided_slice %604 {offsets = [0, 0], sizes = [8, 64], strides = [1, 1]} : vector<8x192xf32> to vector<8x64xf32>
    %608 = vector.extract_strided_slice %604 {offsets = [0, 64], sizes = [8, 64], strides = [1, 1]} : vector<8x192xf32> to vector<8x64xf32>
    %609 = vector.extract_strided_slice %604 {offsets = [0, 128], sizes = [8, 64], strides = [1, 1]} : vector<8x192xf32> to vector<8x64xf32>
    %610 = arith.mulf %608, %590 : vector<8x64xf32>
    %611 = arith.mulf %607, %606 : vector<8x64xf32>
    %612 = arith.addf %610, %611 : vector<8x64xf32>
    %613 = math.tanh %612 : vector<8x64xf32>
    %614 = arith.mulf %609, %613 : vector<8x64xf32>
    %615 = vector.extract_strided_slice %614 {offsets = [0, 0], sizes = [8, 32], strides = [1, 1]} : vector<8x64xf32> to vector<8x32xf32>
    %616 = vector.extract_strided_slice %614 {offsets = [0, 32], sizes = [8, 32], strides = [1, 1]} : vector<8x64xf32> to vector<8x32xf32>
    %617 = vector.extract_strided_slice %482 {offsets = [48, 0], sizes = [8, 256], strides = [1, 1]} : vector<72x256xf32> to vector<8x256xf32>
    %618 = arith.truncf %614 : vector<8x64xf32> to vector<8x64xbf16>
    %cst_72 = arith.constant dense<0.000000e+00> : vector<8x256xf32>
    %619 = tpu.matmul %618, %476, %cst_72 {dimension_numbers = #tpu.dot_dimension_numbers<[1], [0], [0], [1], [0, 0, 1, 1], [], []>} : vector<8x64xbf16>, vector<64x256xbf16>, vector<8x256xf32> -> vector<8x256xf32>
    %620 = arith.addf %617, %619 : vector<8x256xf32>
    %621 = vector.extract_strided_slice %620 {offsets = [0, 0], sizes = [8, 192], strides = [1, 1]} : vector<8x256xf32> to vector<8x192xf32>
    %622 = arith.negf %621 : vector<8x192xf32>
    %623 = math.exp %622 : vector<8x192xf32>
    %cst_73 = arith.constant 1.000000e+00 : f32
    %624 = vector.broadcast %cst_73 : f32 to vector<8x192xf32>
    %625 = arith.addf %624, %623 : vector<8x192xf32>
    %626 = arith.divf %624, %625 : vector<8x192xf32>
    %627 = vector.extract_strided_slice %620 {offsets = [0, 192], sizes = [8, 64], strides = [1, 1]} : vector<8x256xf32> to vector<8x64xf32>
    %628 = math.tanh %627 : vector<8x64xf32>
    %629 = vector.extract_strided_slice %626 {offsets = [0, 0], sizes = [8, 64], strides = [1, 1]} : vector<8x192xf32> to vector<8x64xf32>
    %630 = vector.extract_strided_slice %626 {offsets = [0, 64], sizes = [8, 64], strides = [1, 1]} : vector<8x192xf32> to vector<8x64xf32>
    %631 = vector.extract_strided_slice %626 {offsets = [0, 128], sizes = [8, 64], strides = [1, 1]} : vector<8x192xf32> to vector<8x64xf32>
    %632 = arith.mulf %630, %612 : vector<8x64xf32>
    %633 = arith.mulf %629, %628 : vector<8x64xf32>
    %634 = arith.addf %632, %633 : vector<8x64xf32>
    %635 = math.tanh %634 : vector<8x64xf32>
    %636 = arith.mulf %631, %635 : vector<8x64xf32>
    %637 = vector.extract_strided_slice %636 {offsets = [0, 0], sizes = [8, 32], strides = [1, 1]} : vector<8x64xf32> to vector<8x32xf32>
    %638 = vector.extract_strided_slice %636 {offsets = [0, 32], sizes = [8, 32], strides = [1, 1]} : vector<8x64xf32> to vector<8x32xf32>
    %639 = vector.extract_strided_slice %482 {offsets = [56, 0], sizes = [8, 256], strides = [1, 1]} : vector<72x256xf32> to vector<8x256xf32>
    %640 = arith.truncf %636 : vector<8x64xf32> to vector<8x64xbf16>
    %cst_74 = arith.constant dense<0.000000e+00> : vector<8x256xf32>
    %641 = tpu.matmul %640, %476, %cst_74 {dimension_numbers = #tpu.dot_dimension_numbers<[1], [0], [0], [1], [0, 0, 1, 1], [], []>} : vector<8x64xbf16>, vector<64x256xbf16>, vector<8x256xf32> -> vector<8x256xf32>
    %642 = arith.addf %639, %641 : vector<8x256xf32>
    %643 = vector.extract_strided_slice %642 {offsets = [0, 0], sizes = [8, 192], strides = [1, 1]} : vector<8x256xf32> to vector<8x192xf32>
    %644 = arith.negf %643 : vector<8x192xf32>
    %645 = math.exp %644 : vector<8x192xf32>
    %cst_75 = arith.constant 1.000000e+00 : f32
    %646 = vector.broadcast %cst_75 : f32 to vector<8x192xf32>
    %647 = arith.addf %646, %645 : vector<8x192xf32>
    %648 = arith.divf %646, %647 : vector<8x192xf32>
    %649 = vector.extract_strided_slice %642 {offsets = [0, 192], sizes = [8, 64], strides = [1, 1]} : vector<8x256xf32> to vector<8x64xf32>
    %650 = math.tanh %649 : vector<8x64xf32>
    %651 = vector.extract_strided_slice %648 {offsets = [0, 0], sizes = [8, 64], strides = [1, 1]} : vector<8x192xf32> to vector<8x64xf32>
    %652 = vector.extract_strided_slice %648 {offsets = [0, 64], sizes = [8, 64], strides = [1, 1]} : vector<8x192xf32> to vector<8x64xf32>
    %653 = vector.extract_strided_slice %648 {offsets = [0, 128], sizes = [8, 64], strides = [1, 1]} : vector<8x192xf32> to vector<8x64xf32>
    %654 = arith.mulf %652, %634 : vector<8x64xf32>
    %655 = arith.mulf %651, %650 : vector<8x64xf32>
    %656 = arith.addf %654, %655 : vector<8x64xf32>
    %657 = math.tanh %656 : vector<8x64xf32>
    %658 = arith.mulf %653, %657 : vector<8x64xf32>
    %659 = vector.extract_strided_slice %658 {offsets = [0, 0], sizes = [8, 32], strides = [1, 1]} : vector<8x64xf32> to vector<8x32xf32>
    %660 = vector.extract_strided_slice %658 {offsets = [0, 32], sizes = [8, 32], strides = [1, 1]} : vector<8x64xf32> to vector<8x32xf32>
    %661 = vector.extract_strided_slice %482 {offsets = [64, 0], sizes = [8, 256], strides = [1, 1]} : vector<72x256xf32> to vector<8x256xf32>
    %662 = arith.truncf %658 : vector<8x64xf32> to vector<8x64xbf16>
    %cst_76 = arith.constant dense<0.000000e+00> : vector<8x256xf32>
    %663 = tpu.matmul %662, %476, %cst_76 {dimension_numbers = #tpu.dot_dimension_numbers<[1], [0], [0], [1], [0, 0, 1, 1], [], []>} : vector<8x64xbf16>, vector<64x256xbf16>, vector<8x256xf32> -> vector<8x256xf32>
    %664 = arith.addf %661, %663 : vector<8x256xf32>
    %665 = vector.extract_strided_slice %664 {offsets = [0, 0], sizes = [8, 192], strides = [1, 1]} : vector<8x256xf32> to vector<8x192xf32>
    %666 = arith.negf %665 : vector<8x192xf32>
    %667 = math.exp %666 : vector<8x192xf32>
    %cst_77 = arith.constant 1.000000e+00 : f32
    %668 = vector.broadcast %cst_77 : f32 to vector<8x192xf32>
    %669 = arith.addf %668, %667 : vector<8x192xf32>
    %670 = arith.divf %668, %669 : vector<8x192xf32>
    %671 = vector.extract_strided_slice %664 {offsets = [0, 192], sizes = [8, 64], strides = [1, 1]} : vector<8x256xf32> to vector<8x64xf32>
    %672 = math.tanh %671 : vector<8x64xf32>
    %673 = vector.extract_strided_slice %670 {offsets = [0, 0], sizes = [8, 64], strides = [1, 1]} : vector<8x192xf32> to vector<8x64xf32>
    %674 = vector.extract_strided_slice %670 {offsets = [0, 64], sizes = [8, 64], strides = [1, 1]} : vector<8x192xf32> to vector<8x64xf32>
    %675 = vector.extract_strided_slice %670 {offsets = [0, 128], sizes = [8, 64], strides = [1, 1]} : vector<8x192xf32> to vector<8x64xf32>
    %676 = arith.mulf %674, %656 : vector<8x64xf32>
    %677 = arith.mulf %673, %672 : vector<8x64xf32>
    %678 = arith.addf %676, %677 : vector<8x64xf32>
    %679 = math.tanh %678 : vector<8x64xf32>
    %680 = arith.mulf %675, %679 : vector<8x64xf32>
    %681 = vector.extract_strided_slice %680 {offsets = [0, 0], sizes = [8, 32], strides = [1, 1]} : vector<8x64xf32> to vector<8x32xf32>
    %682 = vector.extract_strided_slice %680 {offsets = [0, 32], sizes = [8, 32], strides = [1, 1]} : vector<8x64xf32> to vector<8x32xf32>
    %683 = tpu.concatenate %505, %682, %527, %660, %549, %638, %571, %616, %593, %594, %615, %572, %637, %550, %659, %528 in 1 : vector<8x32xf32>, vector<8x32xf32>, vector<8x32xf32>, vector<8x32xf32>, vector<8x32xf32>, vector<8x32xf32>, vector<8x32xf32>, vector<8x32xf32>, vector<8x32xf32>, vector<8x32xf32>, vector<8x32xf32>, vector<8x32xf32>, vector<8x32xf32>, vector<8x32xf32>, vector<8x32xf32>, vector<8x32xf32> -> vector<8x512xf32>
    %684 = tpu.concatenate %681, %506 in 1 : vector<8x32xf32>, vector<8x32xf32> -> vector<8x64xf32>
    %685 = tpu.concatenate %683, %684 in 1 : vector<8x512xf32>, vector<8x64xf32> -> vector<8x576xf32>
    %c0_78 = arith.constant 0 : index
    %c0_79 = arith.constant 0 : index
    %686 = vector.load %arg10[%c0_78, %c0_79] : memref<576x2xf32, #tpu.memory_space<vmem>>, vector<576x2xf32>
    %c0_80 = arith.constant 0 : index
    %c0_81 = arith.constant 0 : index
    %687 = vector.load %arg11[%c0_80, %c0_81] : memref<1x2xf32, #tpu.memory_space<vmem>>, vector<1x2xf32>
    %cst_82 = arith.constant dense<0.000000e+00> : vector<8x2xf32>
    %688 = tpu.matmul %685, %686, %cst_82 {dimension_numbers = #tpu.dot_dimension_numbers<[1], [0], [0], [1], [0, 0, 1, 1], [], []>} : vector<8x576xf32>, vector<576x2xf32>, vector<8x2xf32> -> vector<8x2xf32>
    %689 = arith.addf %2, %688 : vector<8x2xf32>
    %690 = vector.broadcast %687 : vector<1x2xf32> to vector<8x2xf32>
    %691 = arith.addf %689, %690 : vector<8x2xf32>
    %c0_83 = arith.constant 0 : index
    %c0_84 = arith.constant 0 : index
    %692 = vector.load %arg12[%c0_83, %c0_84] : memref<8x2xf32, #tpu.memory_space<vmem>>, vector<8x2xf32>
    tpu.vector_store %arg12[%c0_83, %c0_84], %691 {strides = array<i32>} : memref<8x2xf32, #tpu.memory_space<vmem>>, vector<8x2xf32>,
    return
  }
}

</mosaic_0001>

<bundles_post_ra>
// kernel: _lambda_.1
= control target key start
LH: loop header
LB: loop body
LE: loop exit
PB: predicated region body
PF: predicated region fallthrough
CT: control target
= control target key end

     0   :  { %vm62_vm0 = vcmask 1042434   ;;  %vm65_vm1 = vcmask 1043459   ;;  %vm68_vm2 = vcmask 1044484   ;;  %vm71_vm3 = vcmask 1045509   ;;  %s5759_s0 = inlined_call_operand.vmem [shape: f32[8,8,2], index: 0, kind: input, shape index: {}]   ;;  %s5760_s2 = inlined_call_operand.vmem [shape: bf16[64,256], index: 2, kind: input, shape index: {}]   ;;  %s5761_s1 = inlined_call_operand.vmem [shape: bf16[4,256], index: 1, kind: input, shape index: {}]   ;;  %s5762_s3 = inlined_call_operand.vmem [shape: f32[1,256], index: 3, kind: input, shape index: {}]   ;;  %s5763_s5 = inlined_call_operand.vmem [shape: bf16[64,256], index: 5, kind: input, shape index: {}]   ;;  %s5764_s4 = inlined_call_operand.vmem [shape: bf16[4,256], index: 4, kind: input, shape index: {}]   ;;  %s5765_s6 = inlined_call_operand.vmem [shape: f32[1,256], index: 6, kind: input, shape index: {}]   ;;  %s5766_s7 = inlined_call_operand.vmem [shape: bf16[128,256], index: 7, kind: input, shape index: {}]   ;;  %s5767_s8 = inlined_call_operand.vmem [shape: bf16[64,256], index: 8, kind: input, shape index: {}]   ;;  %s5768_s9 = inlined_call_operand.vmem [shape: f32[1,256], index: 9, kind: input, shape index: {}]   ;;  %s5769_s10 = inlined_call_operand.vmem [shape: f32[576,2], index: 10, kind: input, shape index: {}]   ;;  %s5770_s11 = inlined_call_operand.vmem [shape: f32[1,2], index: 11, kind: input, shape index: {}]   ;;  %s5771_s12 = inlined_call_operand.vmem [shape: f32[8,2], index: 12, kind: output, shape index: {}]  }
   0x1   :  { %v4180_v0 = vld [vmem:[%s5759_s0] sm:$0xff]  ;;  %v4185_v1 = vld [vmem:[%s5759_s0 + $0x8] sm:$0xff]  ;;  %v4190_v2 = vld [vmem:[%s5759_s0 + $0x10] sm:$0xff]  ;;  %vm74_vm4 = vcmask 1046534   ;;  %vm77_vm5 = vcmask 1047559   ;;  %vm59_vm6 = vcmask 1041409  }
   0x2   :  { %v4195_v3 = vld [vmem:[%s5759_s0 + $0x18] sm:$0xff]  ;;  %v4200_v4 = vld [vmem:[%s5759_s0 + $0x20] sm:$0xff]  ;;  %v107_v5 = vrot.slane %v4180_v0, 5  ;;  %v4206_v6 = vld [vmem:[%s5759_s0 + $0x30] sm:$0xff]  ;;  %v108_v7 = vrot.slane %v4185_v1, 4  ;;  %v110_v9 = vrot.slane %v4190_v2, 3 }
   0x3   :  { %v4212_v8 = vld [vmem:[%s5759_s0 + $0x38] sm:$0xff]  ;;  %v112_v10 = vrot.slane %v4195_v3, 2  ;;  %v4219_v11 = vld [vmem:[%s5759_s0 + $0x28] sm:$0xff]  ;;  %v114_v13 = vrot.slane %v4200_v4, 1  ;;  %v117_v14 = vrot.slane %v4206_v6, 7  ;;  %v80_v17 = vrot.slane %v4180_v0, 7 }
   0x4   :  { %v109_v12 = vsel %vm62_vm0, %v108_v7, %v107_v5  ;;  %v4231_v15 = vld [vmem:[%s5760_s2 + $0x4] ss:$8 sps:$4 sm:$0xff]   ;;  %v81_v18 = vrot.slane %v4185_v1, 6  ;;  %v83_v19 = vrot.slane %v4190_v2, 5  ;;  %v4242_v20 = vld [vmem:[%s5760_s2] ss:$8 sps:$4 sm:$0xff]  }
   0x5   :  { %v111_v16 = vsel %vm65_vm1, %v110_v9, %v109_v12  ;;  %v119_v22 = vrot.slane %v4212_v8, 6  ;;  %v85_v23 = vrot.slane %v4195_v3, 4  ;;  %v87_v24 = vrot.slane %v4200_v4, 3  ;;  %493 = vmatprep.subr.bf16.mxu1 %v4231_v15  ;;  %v4254_v25 = vld [vmem:[%s5760_s2 + $0x14] ss:$8 sps:$4 sm:$0xff]  }
   0x6   :  { %v113_v21 = vsel %vm68_vm2, %v112_v10, %v111_v16  ;;  %v82_v27 = vsel %vm59_vm6, %v81_v18, %v80_v17  ;;  %v89_v28 = vrot.slane %v4219_v11, 2  ;;  %494 = vmatpush1.bf16.msra.mxu1 %v4242_v20  ;;  %v4269_v29 = vld [vmem:[%s5760_s2 + $0x10] ss:$8 sps:$4 sm:$0xff]   ;;  %v91_v32 = vrot.slane %v4206_v6, 1  ;;  %v4281_v33 = vld [vmem:[%s5760_s2 + $0x24] ss:$8 sps:$4 sm:$0xff]  }
   0x7   :  { %v115_v26 = vsel %vm71_vm3, %v114_v13, %v113_v21  ;;  %v84_v31 = vsel %vm62_vm0, %v83_v19, %v82_v27  ;;  %495 = vmatprep.subr.bf16.mxu1 %v4254_v25  ;;  %v3333_v36 = vld.sshfl [vmem:[%s5761_s1] sm:$0x33 pattern:$0x76325410]  ;;  %vm321_vm7 = vcmask 1041408   ;;  %s4106_s1 = smov 2  }
   0x8   :  { %v116_v30 = vsel %vm74_vm4, %v4219_v11, %v115_v26  ;;  %v86_v35 = vsel %vm65_vm1, %v85_v23, %v84_v31  ;;  %v4304_v40 = vld [vmem:[%s5760_s2 + $0x20] ss:$8 sps:$4 sm:$0xff]   ;;  %v356_v41 = vcombine.high %v3333_v36, %v3333_v36  ;;  %v4314_v43 = vld [vmem:[%s5760_s2 + $0x34] ss:$8 sps:$4 sm:$0xff]   ;;  %v371_v44 = vsel %vm321_vm7, %v3333_v36, 0 }
   0x9   :  { %v118_v34 = vsel %vm77_vm5, %v117_v14, %v116_v30  ;;  %v88_v38 = vsel %vm68_vm2, %v87_v24, %v86_v35  ;;  %v4107_v46 = vmov 0   ;;  %v4327_v47 = vld [vmem:[%s5760_s2 + $0x30] ss:$8 sps:$4 sm:$0xff]   ;;  %v4347_v48 = vrot.slane %v4185_v1, 7 }
   0xa   :  { %v3645_v37 = vpack.i.bf16 %v119_v22, %v118_v34  ;;  %v90_v39 = vsel %vm71_vm3, %v89_v28, %v88_v38  ;;  %496 = vmatpush1.bf16.msra.mxu1 %v4269_v29  ;;  %3334 = vmatprep.subr.msk.bf16.mxu0 %vm321_vm7, %v356_v41  ;;  %v4350_v49 = vrot.slane %v4190_v2, 6  ;;  %v4359_v52 = vrot.slane %v4195_v3, 5 }
   0xb   :  { %v92_v42 = vsel %vm74_vm4, %v91_v32, %v90_v39  ;;  %497 = vmatprep.subr.bf16.mxu1 %v4281_v33  ;;  %377 = vmatpush1.bf16.msra.mxu0 %v371_v44  ;;  %v60_v50 = vsel %vm59_vm6, %v4347_v48, %v4180_v0  ;;  %v99_v51 = vsel %vm62_vm0, %v4347_v48, %v4180_v0  ;;  %v4366_v55 = vrot.slane %v4200_v4, 4 }
   0xc   :  { %3646 = vrot.lane.b32.xlu0 %v3645_v37, %s4106_s1  ;;  %v4319_v45 = vsel %vm77_vm5, %v4212_v8, %v92_v42  ;;  %525 = vmatprep.mubr.bf16.mxu1 %v4107_v46  ;;  %v63_v53 = vsel %vm62_vm0, %v4350_v49, %v60_v50  ;;  %v100_v54 = vsel %vm65_vm1, %v4350_v49, %v99_v51  ;;  %v4373_v58 = vrot.slane %v4219_v11, 3 }
   0xd   :  { %408 = vmatprep.mubr.bf16.mxu0 %v4107_v46  ;;  %647 = vmatprep.subr.bf16.mxu0 %v4231_v15  ;;  %v66_v56 = vsel %vm65_vm1, %v4359_v52, %v63_v53  ;;  %v101_v57 = vsel %vm68_vm2, %v4359_v52, %v100_v54  ;;  %v4380_v61 = vrot.slane %v4206_v6, 2  ;;  %v4387_v12 = vrot.slane %v4212_v8, 1 }
   0xe   :  { %498 = vmatpush1.bf16.msra.mxu1 %v4304_v40  ;;  %v69_v59 = vsel %vm68_vm2, %v4366_v55, %v66_v56  ;;  %v102_v60 = vsel %vm71_vm3, %v4366_v55, %v101_v57  ;;  %vm97_vm8 = vcmask 15360   ;;  %vm286_vm9 = vcmask 1046528  }
   0xf   :  { %499 = vmatprep.subr.bf16.mxu1 %v4314_v43  ;;  %v72_v62 = vsel %vm71_vm3, %v4373_v58, %v69_v59  ;;  %v103_v63 = vsel %vm74_vm4, %v4373_v58, %v102_v60  ;;  %vm357_vm10 = vcmask 31744   ;;  %v338_v54 = vlaneseq  ;;  %v283_v59 = vld [vmem:[%s5762_s3] sm:$0x3]  ;;  %s4108_s3 = smov 64  }
  0x10   :  { %94 = vrot.lane.b32.xlu0 %v4319_v45, %s4106_s1  ;;  %v75_v16 = vsel %vm74_vm4, %v4380_v61, %v72_v62  ;;  %v104_v26 = vsel %vm77_vm5, %v4380_v61, %v103_v63  ;;  %vm489_vm11 = vcmask 523264   ;;  %vm293_vm12 = vcmask 1045504  }
  0x11   :  { %v78_v31 = vsel %vm77_vm5, %v4387_v12, %v75_v16  ;;  %v4409_v56 = vshrl.u32 %v338_v54, 7  ;;  %vm300_vm13 = vcmask 1044480   ;;  %vm307_vm14 = vcmask 1043456  }
  0x12   :  { %500 = vmatpush1.bf16.msra.mxu1 %v4327_v47  ;;  %vm314_vm15 = vcmask 1042432  }
  0x13   :  { %570 = vmatprep.subr.bf16.mxu1 %v4231_v15  ;;  %v4412_v57 = vsub.s32 0, %v4409_v56  ;;  %v4418_v60 = vsub.s32 1, %v4409_v56 }
  0x15   :  { %526 = vmatmul.mubr.bf16.vlgmr.msra.gmra.mrb[0].mxu1 %v4107_v46  ;;  %v4421_v62 = vrot.slane %v283_v59, %v4412_v57  ;;  %v4424_v63 = vrot.slane %v283_v59, %v4418_v60 }
  0x16   :  { %571 = vmatpush1.bf16.msra.mxu1 %v4242_v20  ;;  %602 = vmatprep.mubr.bf16.mxu1 %v4107_v46 }
  0x17   :  { %572 = vmatprep.subr.bf16.mxu1 %v4254_v25 }
  0x1a   :  { %573 = vmatpush1.bf16.msra.mxu1 %v4269_v29 }
  0x1b   :  { %574 = vmatprep.subr.bf16.mxu1 %v4281_v33 }
  0x1e   :  { %575 = vmatpush1.bf16.msra.mxu1 %v4304_v40 }
  0x1f   :  { %576 = vmatprep.subr.bf16.mxu1 %v4314_v43 }
  0x22   :  { %577 = vmatpush1.bf16.msra.mxu1 %v4327_v47 }
  0x23   :  { %724 = vmatprep.subr.bf16.mxu1 %v4231_v15 }
  0x7e   :  { %v3647_v21 = vpop.permute.xlu0 %3646 }
  0x7f   :  { %v3649_v27 = vunpack.i.h.bf16 %v3647_v21  ;;  %v3648_v30 = vunpack.i.l.bf16 %v3647_v21 }
  0x81   :  { %v127_v34 = vsel %vm97_vm8, %v4387_v12, %v3649_v27  ;;  %v126_v35 = vsel %vm97_vm8, %v104_v26, %v3648_v30 }
  0x82   :  { %v288_v36 = vrot.slane %v127_v34, 1  ;;  %v287_v37 = vrot.slane %v126_v35, 1  ;;  %v95_v38 = vpop.permute.xlu0 %94 }
  0x83   :  { %v98_v39 = vsel %vm97_vm8, %v78_v31, %v95_v38 }
  0x84   :  { %v289_v41 = vsel %vm286_vm9, %v287_v37, %v288_v36  ;;  %vm4110_vm9 = vmmov 0  }
  0x85   :  { %v333_v42 = vpack.c.bf16 %v289_v41, %v98_v39 }
  0x87   :  { %3335 = vmatmul.mubr.msk.bf16.vlgmr.msra.gmra.mrb[0].mxu0 %vm357_vm10, %v333_v42 }
  0x88   :  { %648 = vmatpush1.bf16.msra.mxu0 %v4242_v20  ;;  %418 = vmatprep.mubr.bf16.mxu0 %v4107_v46 }
  0x89   :  { %649 = vmatprep.subr.bf16.mxu0 %v4254_v25 }
  0x8c   :  { %650 = vmatpush1.bf16.msra.mxu0 %v4269_v29 }
  0x8d   :  { %651 = vmatprep.subr.bf16.mxu0 %v4281_v33 }
  0x90   :  { %652 = vmatpush1.bf16.msra.mxu0 %v4304_v40 }
  0x91   :  { %653 = vmatprep.subr.bf16.mxu0 %v4314_v43 }
  0x94   :  { %654 = vmatpush1.bf16.msra.mxu0 %v4327_v47 }
  0x95   :  { %801 = vmatprep.subr.bf16.mxu0 %v4231_v15 }
  0xe8   :  { %v527_v44 = vpop.f32.mrb[0].mxu1 }
  0xe9   :  { %v529_v50 = vpop.f32.mrb[1].mxu1 }
  0xea   :  { %v531_v51 = vpop.f32.mrb[2].mxu1 }
  0xeb   :  { %v532_v53 = vpop.f32.mrb[3].mxu1 }
 0x15a   :  { %v410_v16 = vpop.f32.mrb[0].mxu0 }
 0x15b   :  { %v411_v21 = vadd.f32 %v410_v16, %v4421_v62  ;;  %v412_v26 = vpop.f32.mrb[1].mxu0 }
 0x15c   :  { %v413_v27 = vadd.f32 %v412_v26, %v4424_v63  ;;  %v414_v30 = vpop.f32.mrb[2].mxu0 }
 0x15d   :  { %v534_v31 = vadd.f32 %v527_v44, %v411_v21  ;;  %v416_v34 = vpop.f32.mrb[3].mxu0 }
 0x15e   :  { %v535_v35 = vadd.f32 %v529_v50, %v413_v27 }
 0x15f   :  { %v3347_v37 = vmul.f32 -1.442695, %v534_v31 }
 0x160   :  { %3790 = vtanh.f32 %v535_v35  ;;  %v3348_v59 = vmul.f32 -1.442695, %v535_v35  ;;  %v415_v35 = vadd.f32 %v414_v30, %v4421_v62 }
 0x161   :  { %3792 = vpow2.f32 %v3347_v37  ;;  %v417_v37 = vadd.f32 %v416_v34, %v4424_v63 }
 0x16a   :  { %v3791_v36 = vpop.eup %3790 }
 0x16b   :  { %551 = vrot.lane.b32.xlu1 %v3791_v36, %s4108_s3  ;;  %v3793_v38 = vpop.eup %3792 }
 0x16c   :  { %v542_v39 = vadd.f32 1.0, %v3793_v38 }
 0x16e   :  { %3794 = vrcp.f32 %v542_v39 }
 0x178   :  { %v3795_v41 = vpop.eup %3794 }
 0x179   :  { %v549_v53 = vmul.f32 0.0, %v3795_v41 }
 0x1dd   :  { %v552_v42 = vpop.permute.xlu1 %551 }
 0x1de   :  { %v554_v51 = vmul.f32 %v3795_v41, %v552_v42 }
 0x1e0   :  { %556 = vrot.lane.b32.xlu1 %v554_v51, %s4108_s3 }
 0x252   :  { %v557_v54 = vpop.permute.xlu1 %556 }
 0x253   :  { %v4430_v44 = vadd.f32 %v557_v54, %v549_v53  ;;  %v136_v54 = vrot.slane %v4180_v0, 3 }
 0x255   :  { %3796 = vtanh.f32 %v4430_v44 }
 0x256   :  { %3798 = vpow2.f32 %v3348_v59  ;;  %v139_v59 = vrot.slane %v4190_v2, 1 }
 0x25f   :  { %v3797_v50 = vpop.eup %3796 }
 0x260   :  { %562 = vrot.lane.b32.xlu0 %v3797_v50, %s4108_s3  ;;  %v3799_v16 = vpop.eup %3798  ;;  %v137_v50 = vrot.slane %v4185_v1, 2 }
 0x261   :  { %v543_v21 = vadd.f32 1.0, %v3799_v16  ;;  %v142_v16 = vrot.slane %v4200_v4, 7 }
 0x262   :  { %v138_v30 = vsel %vm65_vm1, %v137_v50, %v136_v54 }
 0x263   :  { %3800 = vrcp.f32 %v543_v21  ;;  %v140_v34 = vsel %vm68_vm2, %v139_v59, %v138_v30 }
 0x264   :  { %v141_v21 = vsel %vm71_vm3, %v4195_v3, %v140_v34 }
 0x26d   :  { %v3801_v26 = vpop.eup %3800 }
 0x2d2   :  { %v563_v27 = vpop.permute.xlu0 %562 }
 0x2d3   :  { %v4434_v31 = vmul.f32 %v3801_v26, %v563_v27  ;;  %v144_v26 = vrot.slane %v4219_v11, 6  ;;  %v146_v27 = vrot.slane %v4206_v6, 5 }
 0x2d5   :  { %v566_v36 = vpack.c.bf16 %v4434_v31, %v4434_v31 }
 0x2d7   :  { %3349 = vmatmul.mubr.msk.bf16.vlgmr.msra.gmra.mrb[4].mxu1 %vm489_vm11, %v566_v36  ;;  %v147_v36 = vrot.slane %v4212_v8, 4 }
 0x2d8   :  { %725 = vmatpush1.bf16.msra.mxu1 %v4242_v20  ;;  %756 = vmatprep.mubr.bf16.mxu1 %v4107_v46 }
 0x2d9   :  { %726 = vmatprep.subr.bf16.mxu1 %v4254_v25 }
 0x2dc   :  { %727 = vmatpush1.bf16.msra.mxu1 %v4269_v29 }
 0x2dd   :  { %728 = vmatprep.subr.bf16.mxu1 %v4281_v33 }
 0x2e0   :  { %729 = vmatpush1.bf16.msra.mxu1 %v4304_v40 }
 0x2e1   :  { %730 = vmatprep.subr.bf16.mxu1 %v4314_v43 }
 0x2e4   :  { %731 = vmatpush1.bf16.msra.mxu1 %v4327_v47 }
 0x2e5   :  { %878 = vmatprep.subr.bf16.mxu1 %v4231_v15 }
 0x3aa   :  { %v604_v38 = vpop.f32.mrb[4].mxu1 }
 0x3ab   :  { %v611_v39 = vadd.f32 %v604_v38, %v415_v35  ;;  %v606_v41 = vpop.f32.mrb[5].mxu1  ;;  %v143_v35 = vsel %vm74_vm4, %v142_v16, %v141_v21  ;;  %v197_v38 = vsel %vm59_vm6, %v89_v28, %v87_v24 }
 0x3ac   :  { %v4450_v42 = vadd.f32 %v606_v41, %v417_v37  ;;  %v608_v51 = vpop.f32.mrb[6].mxu1  ;;  %v194_v37 = vsel %vm71_vm3, %v81_v18, %v80_v17  ;;  %v145_v41 = vsel %vm77_vm5, %v144_v26, %v143_v35  ;;  %v198_v30 = vsel %vm62_vm0, %v91_v32, %v197_v38 }
 0x3ad   :  { %v609_v53 = vpop.f32.mrb[7].mxu1  ;;  %v148_v51 = vsel %vm59_vm6, %v147_v36, %v146_v27  ;;  %v239_v18 = vsel %vm59_vm6, %v4195_v3, %v139_v59  ;;  %v199_v28 = vsel %vm65_vm1, %v4212_v8, %v198_v30  ;;  %v218_v30 = vsel %vm59_vm6, %v114_v13, %v112_v10 }
 0x3ae   :  { %3802 = vtanh.f32 %v4450_v42  ;;  %v195_v53 = vsel %vm74_vm4, %v83_v19, %v194_v37  ;;  %v3650_v17 = vpack.i.bf16 %v148_v51, %v145_v41  ;;  %v240_v19 = vsel %vm62_vm0, %v142_v16, %v239_v18 }
 0x3af   :  { %v196_v24 = vsel %vm77_vm5, %v85_v23, %v195_v53  ;;  %v241_v21 = vsel %vm65_vm1, %v144_v26, %v240_v19  ;;  %v238_v37 = vsel %vm77_vm5, %v137_v50, %v136_v54  ;;  %v3350_v23 = vmul.f32 -1.442695, %v611_v39 }
 0x3b0   :  { %v242_v32 = vsel %vm68_vm2, %v146_v27, %v241_v21  ;;  %v3660_v35 = vpack.i.bf16 %v199_v28, %v196_v24  ;;  %v165_v26 = vrot.slane %v4180_v0, 1  ;;  %v167_v27 = vrot.slane %v4190_v2, 7 }
 0x3b1   :  { %v243_v59 = vsel %vm71_vm3, %v147_v36, %v242_v32  ;;  %3804 = vpow2.f32 %v3350_v23  ;;  %v169_v54 = vrot.slane %v4195_v3, 6  ;;  %v173_v50 = vrot.slane %v4219_v11, 4 }
 0x3b2   :  { %v3670_v38 = vpack.i.bf16 %v243_v59, %v238_v37  ;;  %v166_v51 = vsel %vm68_vm2, %v4185_v1, %v165_v26  ;;  %v174_v36 = vrot.slane %v4206_v6, 3  ;;  %v260_v39 = vsel %vm59_vm6, %v167_v27, %v4185_v1 }
 0x3b3   :  { %v168_v53 = vsel %vm71_vm3, %v167_v27, %v166_v51  ;;  %v261_v18 = vsel %vm62_vm0, %v169_v54, %v260_v39  ;;  %v219_v19 = vsel %vm62_vm0, %v4219_v11, %v218_v30  ;;  %v216_v13 = vsel %vm74_vm4, %v108_v7, %v107_v5 }
 0x3b4   :  { %v170_v24 = vsel %vm74_vm4, %v169_v54, %v168_v53  ;;  %v175_v28 = vsel %vm59_vm6, %v174_v36, %v173_v50  ;;  %v220_v37 = vsel %vm65_vm1, %v117_v14, %v219_v19  ;;  %v128_v2 = vsel %vm65_vm1, %v4347_v48, %v4180_v0 }
 0x3b5   :  { %v221_v23 = vsel %vm68_vm2, %v119_v22, %v220_v37  ;;  %v210_v54 = vsel %vm59_vm6, %v4366_v55, %v4359_v52  ;;  %v252_v53 = vsel %vm59_vm6, %v4350_v49, %v4347_v48 }
 0x3b8   :  { %v3803_v34 = vpop.eup %3802 }
 0x3b9   :  { %628 = vrot.lane.b32.xlu1 %v3803_v34, %s4108_s3  ;;  %v171_v34 = vrot.slane %v4200_v4, 5 }
 0x3bb   :  { %v3805_v41 = vpop.eup %3804  ;;  %v262_v21 = vsel %vm65_vm1, %v171_v34, %v261_v18 }
 0x3bc   :  { %v619_v16 = vadd.f32 1.0, %v3805_v41  ;;  %v263_v11 = vsel %vm68_vm2, %v173_v50, %v262_v21  ;;  %v157_v41 = vsel %vm68_vm2, %v4347_v48, %v4180_v0  ;;  %v186_v50 = vsel %vm71_vm3, %v4347_v48, %v4180_v0 }
 0x3bd   :  { %3651 = vrot.lane.b32.xlu1 %v3650_v17, %s4106_s1  ;;  %v176_v17 = vrot.slane %v4212_v8, 2  ;;  %v264_v1 = vsel %vm71_vm3, %v174_v36, %v263_v11  ;;  %v129_v8 = vsel %vm68_vm2, %v4350_v49, %v128_v2  ;;  %v189_v36 = vsel %vm59_vm6, %v4373_v58, %v4366_v55 }
 0x3be   :  { %3806 = vrcp.f32 %v619_v16  ;;  %v158_v39 = vsel %vm71_vm3, %v4350_v49, %v157_v41  ;;  %v187_v19 = vsel %vm74_vm4, %v4350_v49, %v186_v50  ;;  %v190_v21 = vsel %vm62_vm0, %v4380_v61, %v189_v36 }
 0x3bf   :  { %v177_v10 = vsel %vm62_vm0, %v176_v17, %v175_v28  ;;  %v265_v6 = vsel %vm74_vm4, %v176_v17, %v264_v1  ;;  %v211_v28 = vsel %vm62_vm0, %v4373_v58, %v210_v54  ;;  %v191_v1 = vsel %vm65_vm1, %v4387_v12, %v190_v21 }
 0x3c0   :  { %v3675_v7 = vpack.i.bf16 %v265_v6, %v165_v26  ;;  %v133_v26 = vsel %vm59_vm6, %v4387_v12, %v4380_v61  ;;  %v230_v54 = vsel %vm77_vm5, %v4347_v48, %v4180_v0 }
 0x3c1   :  { %3661 = vrot.lane.b32.xlu1 %v3660_v35, %s4106_s1  ;;  %v172_v35 = vsel %vm77_vm5, %v171_v34, %v170_v24  ;;  %v161_v34 = vsel %vm59_vm6, %v4380_v61, %v4373_v58 }
 0x3c2   :  { %v3655_v59 = vpack.i.bf16 %v177_v10, %v172_v35  ;;  %v253_v35 = vsel %vm62_vm0, %v4359_v52, %v252_v53  ;;  %v231_v10 = vsel %vm59_vm6, %v4359_v52, %v4350_v49  ;;  %v162_v2 = vsel %vm62_vm0, %v4387_v12, %v161_v34 }
 0x3c3   :  { %v232_v6 = vsel %vm62_vm0, %v4366_v55, %v231_v10 }
 0x3c5   :  { %3671 = vrot.lane.b32.xlu1 %v3670_v38, %s4106_s1  ;;  %v217_v38 = vsel %vm77_vm5, %v110_v9, %v216_v13  ;;  %v130_v9 = vsel %vm71_vm3, %v4359_v52, %v129_v8 }
 0x3c6   :  { %v3665_v5 = vpack.i.bf16 %v221_v23, %v217_v38  ;;  %v131_v22 = vsel %vm74_vm4, %v4366_v55, %v130_v9  ;;  %v212_v38 = vsel %vm65_vm1, %v4380_v61, %v211_v28  ;;  %v188_v23 = vsel %vm77_vm5, %v4359_v52, %v187_v19 }
 0x3c7   :  { %v132_v51 = vsel %vm77_vm5, %v4373_v58, %v131_v22 }
 0x3c8   :  { %v3807_v3 = vpop.eup %3806 }
 0x3c9   :  { %v626_v30 = vmul.f32 %v3807_v3, %v4430_v44  ;;  %v159_v44 = vsel %vm74_vm4, %v4359_v52, %v158_v39 }
 0x42b   :  { %v629_v32 = vpop.permute.xlu1 %628 }
 0x42c   :  { %v631_v4 = vmul.f32 %v3807_v3, %v629_v32  ;;  %v208_v3 = vsel %vm74_vm4, %v4347_v48, %v4180_v0 }
 0x42d   :  { %v209_v52 = vsel %vm77_vm5, %v4350_v49, %v208_v3 }
 0x42e   :  { %633 = vrot.lane.b32.xlu0 %v631_v4, %s4108_s3 }
 0x42f   :  { %v3652_v14 = vpop.permute.xlu1 %3651 }
 0x430   :  { %v3654_v16 = vunpack.i.h.bf16 %v3652_v14  ;;  %v3653_v27 = vunpack.i.l.bf16 %v3652_v14 }
 0x432   :  { %3656 = vrot.lane.b32.xlu0 %v3655_v59, %s4106_s1  ;;  %v156_v17 = vsel %vm97_vm8, %v133_v26, %v3654_v16  ;;  %v155_v24 = vsel %vm97_vm8, %v132_v51, %v3653_v27  ;;  %v213_v16 = vsel %vm68_vm2, %v4387_v12, %v212_v38  ;;  %v233_v27 = vsel %vm65_vm1, %v4373_v58, %v232_v6 }
 0x433   :  { %v3662_v18 = vpop.permute.xlu1 %3661  ;;  %v295_v13 = vrot.slane %v156_v17, 2  ;;  %v294_v59 = vrot.slane %v155_v24, 2  ;;  %v234_v24 = vsel %vm68_vm2, %v4380_v61, %v233_v27 }
 0x434   :  { %v3664_v37 = vunpack.i.h.bf16 %v3662_v18  ;;  %v3663_v11 = vunpack.i.l.bf16 %v3662_v18 }
 0x435   :  { %v296_v26 = vsel %vm293_vm12, %v294_v59, %v295_v13 }
 0x436   :  { %3666 = vrot.lane.b32.xlu0 %v3665_v5, %s4106_s1  ;;  %v254_v5 = vsel %vm65_vm1, %v4366_v55, %v253_v35  ;;  %v207_v22 = vsel %vm97_vm8, %v191_v1, %v3664_v37  ;;  %v206_v41 = vsel %vm97_vm8, %v188_v23, %v3663_v11  ;;  %v235_v37 = vsel %vm71_vm3, %v4387_v12, %v234_v24 }
 0x437   :  { %v3672_v50 = vpop.permute.xlu1 %3671  ;;  %v308_v34 = vrot.slane %v206_v41, 4 }
 0x438   :  { %v3674_v19 = vunpack.i.h.bf16 %v3672_v50  ;;  %v3673_v21 = vunpack.i.l.bf16 %v3672_v50 }
 0x43a   :  { %3676 = vrot.lane.b32.xlu0 %v3675_v7, %s4106_s1  ;;  %v160_v7 = vsel %vm77_vm5, %v4366_v55, %v159_v44  ;;  %v255_v55 = vsel %vm68_vm2, %v4373_v58, %v254_v5  ;;  %v251_v6 = vsel %vm97_vm8, %v235_v37, %v3674_v19  ;;  %vm328_vm5 = vcmask 1040384  }
 0x43b   :  { %v256_v58 = vsel %vm71_vm3, %v4380_v61, %v255_v55 }
 0x43c   :  { %v257_v10 = vsel %vm74_vm4, %v4387_v12, %v256_v58  ;;  %v250_v12 = vsel %vm97_vm8, %v230_v54, %v3673_v21 }
 0x4a0   :  { %v634_v32 = vpop.permute.xlu0 %633 }
 0x4a1   :  { %v4598_v4 = vadd.f32 %v634_v32, %v626_v30  ;;  %v309_v30 = vrot.slane %v207_v22, 4 }
 0x4a3   :  { %3808 = vtanh.f32 %v4598_v4  ;;  %v310_v38 = vsel %vm307_vm14, %v308_v34, %v309_v30 }
 0x4a4   :  { %v3657_v8 = vpop.permute.xlu0 %3656 }
 0x4a5   :  { %v3659_v9 = vunpack.i.h.bf16 %v3657_v8  ;;  %v3658_v14 = vunpack.i.l.bf16 %v3657_v8 }
 0x4a7   :  { %v185_v51 = vsel %vm97_vm8, %v162_v2, %v3659_v9  ;;  %v184_v49 = vsel %vm97_vm8, %v160_v7, %v3658_v14  ;;  %v322_v9 = vrot.slane %v250_v12, 6 }
 0x4a8   :  { %v302_v36 = vrot.slane %v185_v51, 3  ;;  %v301_v39 = vrot.slane %v184_v49, 3  ;;  %v3667_v53 = vpop.permute.xlu0 %3666 }
 0x4a9   :  { %v3669_v17 = vunpack.i.h.bf16 %v3667_v53  ;;  %v3668_v18 = vunpack.i.l.bf16 %v3667_v53 }
 0x4aa   :  { %v303_v28 = vsel %vm300_vm13, %v301_v39, %v302_v36 }
 0x4ab   :  { %v229_v48 = vsel %vm97_vm8, %v213_v16, %v3669_v17  ;;  %v228_v32 = vsel %vm97_vm8, %v209_v52, %v3668_v18  ;;  %v334_v44 = vpack.c.bf16 %v303_v28, %v296_v26  ;;  %v323_v52 = vrot.slane %v251_v6, 6 }
 0x4ac   :  { %v316_v3 = vrot.slane %v229_v48, 5  ;;  %v315_v35 = vrot.slane %v228_v32, 5  ;;  %v3677_v13 = vpop.permute.xlu0 %3676 }
 0x4ad   :  { %v3809_v61 = vpop.eup %3808  ;;  %3336 = vmatmul.mubr.msk.bf16.gmra.mrb[4].mxu0 %vm357_vm10, %v334_v44  ;;  %v3679_v11 = vunpack.i.h.bf16 %v3677_v13  ;;  %v3678_v59 = vunpack.i.l.bf16 %v3677_v13  ;;  %v324_v14 = vsel %vm321_vm7, %v322_v9, %v323_v52 }
 0x4ae   :  { %639 = vrot.lane.b32.xlu1 %v3809_v61, %s4108_s3  ;;  %428 = vmatprep.mubr.bf16.mxu0 %v4107_v46  ;;  %v317_v23 = vsel %vm314_vm15, %v315_v35, %v316_v3 }
 0x4af   :  { %v273_v1 = vsel %vm97_vm8, %v257_v10, %v3679_v11  ;;  %v272_v5 = vsel %vm97_vm8, %v4180_v0, %v3678_v59  ;;  %v335_v7 = vpack.c.bf16 %v317_v23, %v310_v38  ;;  %v3351_v0 = vmul.f32 -1.442695, %v4450_v42 }
 0x4b0   :  { %v330_v2 = vrot.slane %v273_v1, 7  ;;  %v329_v8 = vrot.slane %v272_v5, 7 }
 0x4b1   :  { %3810 = vpow2.f32 %v3351_v0 }
 0x4b2   :  { %v331_v22 = vsel %vm328_vm5, %v329_v8, %v330_v2 }
 0x4b3   :  { %v336_v41 = vpack.c.bf16 %v331_v22, %v324_v14 }
 0x4b5   :  { %3337 = vmatmul.mubr.msk.bf16.gmra.mrb[8].mxu0 %vm357_vm10, %v335_v7 }
 0x4b6   :  { %438 = vmatprep.mubr.bf16.mxu0 %v4107_v46 }
 0x4bb   :  { %v3811_v16 = vpop.eup %3810 }
 0x4bc   :  { %v620_v26 = vadd.f32 1.0, %v3811_v16 }
 0x4bd   :  { %3338 = vmatmul.mubr.msk.bf16.gmra.mrb[12].mxu0 %vm357_vm10, %v336_v41 }
 0x4be   :  { %679 = vmatprep.mubr.bf16.mxu0 %v4107_v46  ;;  %3812 = vrcp.f32 %v620_v26 }
 0x4c8   :  { %v3813_v55 = vpop.eup %3812 }
 0x520   :  { %v640_v27 = vpop.permute.xlu1 %639 }
 0x521   :  { %v4655_v51 = vmul.f32 %v3813_v55, %v640_v27 }
 0x523   :  { %v643_v49 = vpack.c.bf16 %v4655_v51, %v4655_v51 }
 0x525   :  { %3352 = vmatmul.mubr.msk.bf16.vlgmr.msra.gmra.mrb[16].mxu0 %vm489_vm11, %v643_v49 }
 0x526   :  { %802 = vmatpush1.bf16.msra.mxu0 %v4242_v20  ;;  %833 = vmatprep.mubr.bf16.mxu0 %v4107_v46 }
 0x527   :  { %803 = vmatprep.subr.bf16.mxu0 %v4254_v25 }
 0x52a   :  { %804 = vmatpush1.bf16.msra.mxu0 %v4269_v29 }
 0x52b   :  { %805 = vmatprep.subr.bf16.mxu0 %v4281_v33 }
 0x52e   :  { %806 = vmatpush1.bf16.msra.mxu0 %v4304_v40 }
 0x52f   :  { %807 = vmatprep.subr.bf16.mxu0 %v4314_v43 }
 0x532   :  { %808 = vmatpush1.bf16.msra.mxu0 %v4327_v47 }
 0x533   :  { %955 = vmatprep.subr.bf16.mxu0 %v4231_v15 }
 0x580   :  { %v420_v42 = vpop.f32.mrb[4].mxu0 }
 0x581   :  { %v422_v54 = vpop.f32.mrb[5].mxu0  ;;  %v421_v28 = vadd.f32 %v420_v42, %v4421_v62 }
 0x582   :  { %v424_v50 = vpop.f32.mrb[6].mxu0  ;;  %v423_v19 = vadd.f32 %v422_v54, %v4424_v63 }
 0x583   :  { %v426_v36 = vpop.f32.mrb[7].mxu0 }
 0x584   :  { %v427_v22 = vadd.f32 %v426_v36, %v4424_v63 }
 0x588   :  { %v4669_v39 = vpop.f32.mrb[8].mxu0 }
 0x589   :  { %v4671_v53 = vpop.f32.mrb[9].mxu0 }
 0x58a   :  { %v4673_v30 = vpop.f32.mrb[10].mxu0 }
 0x58b   :  { %v4675_v34 = vpop.f32.mrb[11].mxu0 }
 0x590   :  { %v4677_v17 = vpop.f32.mrb[12].mxu0 }
 0x591   :  { %v4679_v18 = vpop.f32.mrb[13].mxu0 }
 0x592   :  { %v4681_v58 = vpop.f32.mrb[14].mxu0 }
 0x593   :  { %v4683_v24 = vpop.f32.mrb[15].mxu0 }
 0x5f8   :  { %v681_v21 = vpop.f32.mrb[16].mxu0 }
 0x5f9   :  { %v688_v48 = vadd.f32 %v681_v21, %v421_v28  ;;  %v683_v32 = vpop.f32.mrb[17].mxu0 }
 0x5fa   :  { %v689_v44 = vadd.f32 %v683_v32, %v423_v19  ;;  %v685_v3 = vpop.f32.mrb[18].mxu0 }
 0x5fb   :  { %v686_v35 = vpop.f32.mrb[19].mxu0  ;;  %v3353_v13 = vmul.f32 -1.442695, %v688_v48 }
 0x5fc   :  { %3814 = vtanh.f32 %v689_v44  ;;  %v3354_v12 = vmul.f32 -1.442695, %v689_v44 }
 0x5fd   :  { %3816 = vpow2.f32 %v3353_v13 }
 0x606   :  { %v3815_v10 = vpop.eup %3814 }
 0x607   :  { %705 = vrot.lane.b32.xlu0 %v3815_v10, %s4108_s3  ;;  %v3817_v37 = vpop.eup %3816 }
 0x608   :  { %v696_v61 = vadd.f32 1.0, %v3817_v37 }
 0x60a   :  { %3818 = vrcp.f32 %v696_v61 }
 0x614   :  { %v3819_v11 = vpop.eup %3818 }
 0x615   :  { %v703_v23 = vmul.f32 %v3819_v11, %v4598_v4  ;;  %v425_v4 = vadd.f32 %v424_v50, %v4421_v62 }
 0x679   :  { %v706_v59 = vpop.permute.xlu0 %705 }
 0x67a   :  { %v708_v38 = vmul.f32 %v3819_v11, %v706_v59  ;;  %v431_v11 = vadd.f32 %v4669_v39, %v4421_v62  ;;  %v433_v59 = vadd.f32 %v4671_v53, %v4424_v63 }
 0x67c   :  { %710 = vrot.lane.b32.xlu1 %v708_v38, %s4108_s3 }
 0x6ee   :  { %v711_v1 = vpop.permute.xlu1 %710 }
 0x6ef   :  { %v713_v5 = vadd.f32 %v711_v1, %v703_v23 }
 0x6f1   :  { %3820 = vtanh.f32 %v713_v5 }
 0x6f2   :  { %3822 = vpow2.f32 %v3354_v12 }
 0x6fb   :  { %v3821_v6 = vpop.eup %3820 }
 0x6fc   :  { %716 = vrot.lane.b32.xlu0 %v3821_v6, %s4108_s3  ;;  %v3823_v7 = vpop.eup %3822 }
 0x6fd   :  { %v697_v2 = vadd.f32 1.0, %v3823_v7 }
 0x6ff   :  { %3824 = vrcp.f32 %v697_v2 }
 0x709   :  { %v3825_v8 = vpop.eup %3824 }
 0x76e   :  { %v717_v52 = vpop.permute.xlu0 %716 }
 0x76f   :  { %v4691_v9 = vmul.f32 %v3825_v8, %v717_v52 }
 0x771   :  { %v720_v14 = vpack.c.bf16 %v4691_v9, %v4691_v9 }
 0x773   :  { %3355 = vmatmul.mubr.msk.bf16.vlgmr.msra.gmra.mrb[8].mxu1 %vm489_vm11, %v720_v14 }
 0x774   :  { %879 = vmatpush1.bf16.msra.mxu1 %v4242_v20  ;;  %910 = vmatprep.mubr.bf16.mxu1 %v4107_v46 }
 0x775   :  { %880 = vmatprep.subr.bf16.mxu1 %v4254_v25 }
 0x778   :  { %881 = vmatpush1.bf16.msra.mxu1 %v4269_v29 }
 0x779   :  { %882 = vmatprep.subr.bf16.mxu1 %v4281_v33 }
 0x77c   :  { %883 = vmatpush1.bf16.msra.mxu1 %v4304_v40 }
 0x77d   :  { %884 = vmatprep.subr.bf16.mxu1 %v4314_v43 }
 0x780   :  { %885 = vmatpush1.bf16.msra.mxu1 %v4327_v47 }
 0x781   :  { %1032 = vmatprep.subr.bf16.mxu1 %v4231_v15 }
 0x846   :  { %v758_v41 = vpop.f32.mrb[8].mxu1 }
 0x847   :  { %v765_v0 = vadd.f32 %v758_v41, %v425_v4  ;;  %v760_v16 = vpop.f32.mrb[9].mxu1 }
 0x848   :  { %v766_v26 = vadd.f32 %v760_v16, %v427_v22  ;;  %v762_v55 = vpop.f32.mrb[10].mxu1 }
 0x849   :  { %v763_v27 = vpop.f32.mrb[11].mxu1  ;;  %v3356_v42 = vmul.f32 -1.442695, %v765_v0 }
 0x84a   :  { %3826 = vtanh.f32 %v766_v26  ;;  %v3357_v44 = vmul.f32 -1.442695, %v766_v26 }
 0x84b   :  { %3828 = vpow2.f32 %v3356_v42 }
 0x854   :  { %v3827_v49 = vpop.eup %3826 }
 0x855   :  { %782 = vrot.lane.b32.xlu1 %v3827_v49, %s4108_s3  ;;  %v3829_v54 = vpop.eup %3828 }
 0x856   :  { %v773_v28 = vadd.f32 1.0, %v3829_v54 }
 0x858   :  { %3830 = vrcp.f32 %v773_v28  ;;  %v435_v28 = vadd.f32 %v4673_v30, %v4421_v62 }
 0x862   :  { %v3831_v15 = vpop.eup %3830 }
 0x863   :  { %v780_v36 = vmul.f32 %v3831_v15, %v713_v5 }
 0x8c7   :  { %v783_v19 = vpop.permute.xlu1 %782 }
 0x8c8   :  { %v785_v50 = vmul.f32 %v3831_v15, %v783_v19 }
 0x8ca   :  { %787 = vrot.lane.b32.xlu0 %v785_v50, %s4108_s3 }
 0x93c   :  { %v788_v21 = vpop.permute.xlu0 %787 }
 0x93d   :  { %v790_v48 = vadd.f32 %v788_v21, %v780_v36 }
 0x93f   :  { %3832 = vtanh.f32 %v790_v48 }
 0x940   :  { %3834 = vpow2.f32 %v3357_v44 }
 0x949   :  { %v3833_v32 = vpop.eup %3832 }
 0x94a   :  { %793 = vrot.lane.b32.xlu1 %v3833_v32, %s4108_s3  ;;  %v3835_v3 = vpop.eup %3834 }
 0x94b   :  { %v774_v35 = vadd.f32 1.0, %v3835_v3 }
 0x94d   :  { %3836 = vrcp.f32 %v774_v35 }
 0x957   :  { %v3837_v10 = vpop.eup %3836 }
 0x9bc   :  { %v794_v13 = vpop.permute.xlu1 %793 }
 0x9bd   :  { %v4710_v37 = vmul.f32 %v3837_v10, %v794_v13 }
 0x9bf   :  { %v797_v61 = vpack.c.bf16 %v4710_v37, %v4710_v37 }
 0x9c1   :  { %3358 = vmatmul.mubr.msk.bf16.vlgmr.msra.gmra.mrb[20].mxu0 %vm489_vm11, %v797_v61 }
 0x9c2   :  { %956 = vmatpush1.bf16.msra.mxu0 %v4242_v20  ;;  %987 = vmatprep.mubr.bf16.mxu0 %v4107_v46 }
 0x9c3   :  { %957 = vmatprep.subr.bf16.mxu0 %v4254_v25 }
 0x9c6   :  { %958 = vmatpush1.bf16.msra.mxu0 %v4269_v29 }
 0x9c7   :  { %959 = vmatprep.subr.bf16.mxu0 %v4281_v33 }
 0x9ca   :  { %960 = vmatpush1.bf16.msra.mxu0 %v4304_v40 }
 0x9cb   :  { %961 = vmatprep.subr.bf16.mxu0 %v4314_v43 }
 0x9ce   :  { %962 = vmatpush1.bf16.msra.mxu0 %v4327_v47 }
 0xa94   :  { %v835_v38 = vpop.f32.mrb[20].mxu0 }
 0xa95   :  { %v842_v23 = vadd.f32 %v835_v38, %v431_v11  ;;  %v837_v1 = vpop.f32.mrb[21].mxu0 }
 0xa96   :  { %v843_v5 = vadd.f32 %v837_v1, %v433_v59  ;;  %v839_v6 = vpop.f32.mrb[22].mxu0  ;;  %v443_v1 = vadd.f32 %v4679_v18, %v4424_v63 }
 0xa97   :  { %v840_v12 = vpop.f32.mrb[23].mxu0  ;;  %v3359_v2 = vmul.f32 -1.442695, %v842_v23  ;;  %v441_v23 = vadd.f32 %v4677_v17, %v4421_v62 }
 0xa98   :  { %3838 = vtanh.f32 %v843_v5  ;;  %v3360_v16 = vmul.f32 -1.442695, %v843_v5 }
 0xa99   :  { %3840 = vpow2.f32 %v3359_v2 }
 0xaa2   :  { %v3839_v7 = vpop.eup %3838 }
 0xaa3   :  { %859 = vrot.lane.b32.xlu0 %v3839_v7, %s4108_s3  ;;  %v3841_v8 = vpop.eup %3840 }
 0xaa4   :  { %v850_v52 = vadd.f32 1.0, %v3841_v8 }
 0xaa6   :  { %3842 = vrcp.f32 %v850_v52 }
 0xab0   :  { %v3843_v14 = vpop.eup %3842 }
 0xab1   :  { %v857_v53 = vmul.f32 %v3843_v14, %v790_v48 }
 0xb15   :  { %v860_v39 = vpop.permute.xlu0 %859 }
 0xb16   :  { %v862_v4 = vmul.f32 %v3843_v14, %v860_v39 }
 0xb18   :  { %864 = vrot.lane.b32.xlu1 %v862_v4, %s4108_s3 }
 0xb8a   :  { %v865_v22 = vpop.permute.xlu1 %864 }
 0xb8b   :  { %v867_v41 = vadd.f32 %v865_v22, %v857_v53  ;;  %v4766_v22 = vsub.s32 7, %v4409_v56 }
 0xb8d   :  { %3844 = vtanh.f32 %v867_v41 }
 0xb8e   :  { %3846 = vpow2.f32 %v3360_v16  ;;  %v4091_v16 = vld [vmem:[%s5759_s0 + $0x30] sm:$0xff] }
 0xb97   :  { %v3845_v0 = vpop.eup %3844 }
 0xb98   :  { %870 = vrot.lane.b32.xlu0 %v3845_v0, %s4108_s3  ;;  %v3847_v26 = vpop.eup %3846 }
 0xb99   :  { %v851_v55 = vadd.f32 1.0, %v3847_v26  ;;  %v1129_v26 = vrot.slane %v4091_v16, %v4766_v22 }
 0xb9b   :  { %3848 = vrcp.f32 %v851_v55 }
 0xba5   :  { %v3849_v27 = vpop.eup %3848 }
 0xc0a   :  { %v871_v49 = vpop.permute.xlu0 %870 }
 0xc0b   :  { %v4730_v42 = vmul.f32 %v3849_v27, %v871_v49  ;;  %v4780_v27 = vsub.f32 %v1129_v26, %v4319_v45 }
 0xc0d   :  { %v874_v54 = vpack.c.bf16 %v4730_v42, %v4730_v42 }
 0xc0f   :  { %3361 = vmatmul.mubr.msk.bf16.vlgmr.msra.gmra.mrb[12].mxu1 %vm489_vm11, %v874_v54 }
 0xc10   :  { %1033 = vmatpush1.bf16.msra.mxu1 %v4242_v20  ;;  %1064 = vmatprep.mubr.bf16.mxu1 %v4107_v46  ;;  %v437_v20 = vadd.f32 %v4675_v34, %v4424_v63 }
 0xc11   :  { %1034 = vmatprep.subr.bf16.mxu1 %v4254_v25 }
 0xc14   :  { %1035 = vmatpush1.bf16.msra.mxu1 %v4269_v29 }
 0xc15   :  { %1036 = vmatprep.subr.bf16.mxu1 %v4281_v33 }
 0xc18   :  { %1037 = vmatpush1.bf16.msra.mxu1 %v4304_v40 }
 0xc19   :  { %1038 = vmatprep.subr.bf16.mxu1 %v4314_v43 }
 0xc1c   :  { %1039 = vmatpush1.bf16.msra.mxu1 %v4327_v47 }
 0xce2   :  { %v912_v15 = vpop.f32.mrb[12].mxu1 }
 0xce3   :  { %v919_v19 = vadd.f32 %v912_v15, %v435_v28  ;;  %v914_v50 = vpop.f32.mrb[13].mxu1  ;;  %v4092_v15 = vld [vmem:[%s5759_s0] sm:$0xff] }
 0xce4   :  { %v920_v25 = vadd.f32 %v914_v50, %v437_v20  ;;  %v916_v36 = vpop.f32.mrb[14].mxu1  ;;  %v4790_v20 = vld [vmem:[%s5763_s5 + $0x4] ss:$8 sps:$4 sm:$0xff]  }
 0xce5   :  { %v917_v29 = vpop.f32.mrb[15].mxu1  ;;  %v3362_v40 = vmul.f32 -1.442695, %v919_v19  ;;  %1351 = vmatprep.subr.bf16.mxu1 %v4790_v20  ;;  %v1108_v19 = vrot.slane %v4092_v15, %v4766_v22  ;;  %v4093_v50 = vld [vmem:[%s5759_s0 + $0x8] sm:$0xff] }
 0xce6   :  { %3850 = vtanh.f32 %v920_v25  ;;  %v3363_v35 = vmul.f32 -1.442695, %v920_v25  ;;  %v1124_v25 = vrot.slane %v4093_v50, %v4766_v22  ;;  %v3370_v36 = vld.sshfl [vmem:[%s5764_s4] sm:$0x33 pattern:$0x76325410] }
 0xce7   :  { %3852 = vpow2.f32 %v3362_v40  ;;  %v4806_v40 = vsub.f32 %v1108_v19, %v4319_v45 }
 0xcf0   :  { %v3851_v33 = vpop.eup %3850 }
 0xcf1   :  { %936 = vrot.lane.b32.xlu1 %v3851_v33, %s4108_s3  ;;  %v3853_v43 = vpop.eup %3852  ;;  %v1219_v33 = vcombine.high %v3370_v36, %v3370_v36 }
 0xcf2   :  { %v927_v47 = vadd.f32 1.0, %v3853_v43  ;;  %v4809_v43 = vsub.f32 %v1124_v25, %v4319_v45 }
 0xcf3   :  { %3371 = vmatprep.subr.msk.bf16.mxu0 %vm321_vm7, %v1219_v33  ;;  %v4095_v33 = vld [vmem:[%s5759_s0 + $0x20] sm:$0xff] }
 0xcf4   :  { %3854 = vrcp.f32 %v927_v47 }
 0xcfe   :  { %v3855_v21 = vpop.eup %3854 }
 0xcff   :  { %v934_v34 = vmul.f32 %v3855_v21, %v867_v41  ;;  %v4090_v41 = vld [vmem:[%s5759_s0 + $0x38] sm:$0xff] }
 0xd00   :  { %v1114_v0 = vrot.slane %v4090_v41, %v4766_v22 }
 0xd02   :  { %v4777_v55 = vsub.f32 %v1114_v0, %v4319_v45 }
 0xd04   :  { %v3680_v56 = vpack.i.bf16 %v4780_v27, %v4777_v55 }
 0xd63   :  { %v937_v30 = vpop.permute.xlu1 %936 }
 0xd64   :  { %v939_v48 = vmul.f32 %v3855_v21, %v937_v30  ;;  %v1233_v30 = vsel %vm321_vm7, %v3370_v36, 0  ;;  %v4094_v36 = vld [vmem:[%s5759_s0 + $0x28] sm:$0xff]  ;;  %vm1963_vm7 = vcmask 261120  }
 0xd66   :  { %941 = vrot.lane.b32.xlu0 %v939_v48, %s4108_s3 }
 0xdd8   :  { %v942_v32 = vpop.permute.xlu0 %941 }
 0xdd9   :  { %v944_v44 = vadd.f32 %v942_v32, %v934_v34 }
 0xddb   :  { %3856 = vtanh.f32 %v944_v44 }
 0xddc   :  { %3858 = vpow2.f32 %v3363_v35  ;;  %v4827_v35 = vld [vmem:[%s5763_s5 + $0x14] ss:$8 sps:$4 sm:$0xff]  }
 0xde5   :  { %v3857_v3 = vpop.eup %3856 }
 0xde6   :  { %947 = vrot.lane.b32.xlu1 %v3857_v3, %s4108_s3  ;;  %v3859_v10 = vpop.eup %3858  ;;  %v4822_v3 = vld [vmem:[%s5763_s5] ss:$8 sps:$4 sm:$0xff]  }
 0xde7   :  { %v928_v13 = vadd.f32 1.0, %v3859_v10  ;;  %v4836_v10 = vld [vmem:[%s5763_s5 + $0x10] ss:$8 sps:$4 sm:$0xff]  }
 0xde9   :  { %3860 = vrcp.f32 %v928_v13  ;;  %v4841_v13 = vld [vmem:[%s5763_s5 + $0x24] ss:$8 sps:$4 sm:$0xff]  }
 0xdf3   :  { %v3861_v61 = vpop.eup %3860 }
 0xe58   :  { %v948_v11 = vpop.permute.xlu1 %947 }
 0xe59   :  { %v4750_v59 = vmul.f32 %v3861_v61, %v948_v11  ;;  %v4848_v61 = vld [vmem:[%s5763_s5 + $0x20] ss:$8 sps:$4 sm:$0xff]   ;;  %v4853_v11 = vld [vmem:[%s5763_s5 + $0x34] ss:$8 sps:$4 sm:$0xff]  }
 0xe5b   :  { %v951_v38 = vpack.c.bf16 %v4750_v59, %v4750_v59 }
 0xe5d   :  { %3364 = vmatmul.mubr.msk.bf16.vlgmr.msra.gmra.mrb[24].mxu0 %vm489_vm11, %v951_v38  ;;  %v4860_v38 = vld [vmem:[%s5763_s5 + $0x30] ss:$8 sps:$4 sm:$0xff]  }
 0xe5e   :  { %1270 = vmatprep.mubr.bf16.mxu0 %v4107_v46  ;;  %1239 = vmatpush1.bf16.msra.mxu0 %v1233_v30 }
 0xe5f   :  { %1428 = vmatprep.subr.bf16.mxu0 %v4790_v20 }
 0xf30   :  { %v989_v5 = vpop.f32.mrb[24].mxu0 }
 0xf31   :  { %v996_v6 = vadd.f32 %v989_v5, %v441_v23  ;;  %v991_v12 = vpop.f32.mrb[25].mxu0 }
 0xf32   :  { %v4760_v7 = vadd.f32 %v991_v12, %v443_v1  ;;  %v993_v2 = vpop.f32.mrb[26].mxu0 }
 0xf33   :  { %v994_v8 = vpop.f32.mrb[27].mxu0  ;;  %v3365_v14 = vmul.f32 -1.442695, %v996_v6 }
 0xf34   :  { %3862 = vtanh.f32 %v4760_v7  ;;  %v3366_v23 = vmul.f32 -1.442695, %v4760_v7 }
 0xf35   :  { %3864 = vpow2.f32 %v3365_v14 }
 0xf3e   :  { %v3863_v52 = vpop.eup %3862 }
 0xf3f   :  { %1013 = vrot.lane.b32.xlu0 %v3863_v52, %s4108_s3  ;;  %v3865_v39 = vpop.eup %3864 }
 0xf40   :  { %v1004_v4 = vadd.f32 1.0, %v3865_v39 }
 0xf42   :  { %3866 = vrcp.f32 %v1004_v4  ;;  %v445_v4 = vadd.f32 %v4681_v58, %v4421_v62 }
 0xf4c   :  { %v3867_v17 = vpop.eup %3866 }
 0xf4d   :  { %v1011_v49 = vmul.f32 %v3867_v17, %v944_v44 }
 0xfb1   :  { %v1014_v53 = vpop.permute.xlu0 %1013 }
 0xfb2   :  { %v1016_v18 = vmul.f32 %v3867_v17, %v1014_v53  ;;  %v447_v17 = vadd.f32 %v4683_v24, %v4424_v63 }
 0xfb4   :  { %1018 = vrot.lane.b32.xlu1 %v1016_v18, %s4108_s3 }
 0xfb8   :  { %3681 = vrot.lane.b32.xlu1 %v3680_v56, %s4106_s1  ;;  %v1195_v56 = vld [vmem:[%s5765_s6] sm:$0x3] }
 0xfb9   :  { %v4908_v62 = vrot.slane %v1195_v56, %v4418_v60 }
0x1026   :  { %v1019_v54 = vpop.permute.xlu1 %1018 }
0x1027   :  { %v4785_v28 = vadd.f32 %v1019_v54, %v1011_v49  ;;  %v4905_v49 = vrot.slane %v1195_v56, %v4412_v57 }
0x1029   :  { %3868 = vtanh.f32 %v4785_v28 }
0x102a   :  { %v3682_v29 = vpop.permute.xlu1 %3681  ;;  %3870 = vpow2.f32 %v3366_v23 }
0x102b   :  { %v3684_v47 = vunpack.i.h.bf16 %v3682_v29  ;;  %v3683_v21 = vunpack.i.l.bf16 %v3682_v29  ;;  %v1144_v29 = vrot.slane %v4094_v36, %v4766_v22 }
0x102d   :  { %v1135_v48 = vsel %vm97_vm8, %v4809_v43, %v3684_v47  ;;  %v1120_v34 = vsel %vm97_vm8, %v4806_v40, %v3683_v21  ;;  %v1159_v47 = vrot.slane %v4095_v33, %v4766_v22  ;;  %v1145_v21 = vsub.f32 %v1144_v29, %v4319_v45 }
0x102e   :  { %v1196_v44 = vpack.c.bf16 %v1135_v48, %v1120_v34 }
0x102f   :  { %v1160_v30 = vsub.f32 %v1159_v47, %v4319_v45 }
0x1030   :  { %3372 = vmatmul.mubr.msk.bf16.vlgmr.msra.gmra.mrb[28].mxu0 %vm357_vm10, %v1196_v44 }
0x1031   :  { %1429 = vmatpush1.bf16.msra.mxu0 %v4822_v3  ;;  %1280 = vmatprep.mubr.bf16.mxu0 %v4107_v46  ;;  %v3685_v34 = vpack.i.bf16 %v1160_v30, %v1145_v21 }
0x1032   :  { %1430 = vmatprep.subr.bf16.mxu0 %v4827_v35 }
0x1033   :  { %v3869_v32 = vpop.eup %3868 }
0x1034   :  { %1024 = vrot.lane.b32.xlu0 %v3869_v32, %s4108_s3  ;;  %v3871_v1 = vpop.eup %3870 }
0x1035   :  { %1431 = vmatpush1.bf16.msra.mxu0 %v4836_v10  ;;  %v1005_v5 = vadd.f32 1.0, %v3871_v1  ;;  %v3695_v1 = vpack.i.bf16 %v4806_v40, %v4809_v43 }
0x1036   :  { %1432 = vmatprep.subr.bf16.mxu0 %v4841_v13 }
0x1037   :  { %3872 = vrcp.f32 %v1005_v5  ;;  %v4096_v5 = vld [vmem:[%s5759_s0 + $0x10] sm:$0xff] }
0x1039   :  { %1433 = vmatpush1.bf16.msra.mxu0 %v4848_v61 }
0x103a   :  { %1434 = vmatprep.subr.bf16.mxu0 %v4853_v11 }
0x103d   :  { %1435 = vmatpush1.bf16.msra.mxu0 %v4860_v38 }
0x103e   :  { %1582 = vmatprep.subr.bf16.mxu0 %v4790_v20 }
0x1041   :  { %v3873_v6 = vpop.eup %3872 }
0x10a6   :  { %v1025_v12 = vpop.permute.xlu0 %1024 }
0x10a7   :  { %v4865_v2 = vmul.f32 %v3873_v6, %v1025_v12  ;;  %v1139_v6 = vrot.slane %v4096_v5, %v4766_v22  ;;  %v4097_v12 = vld [vmem:[%s5759_s0 + $0x18] sm:$0xff] }
0x10a9   :  { %v1028_v8 = vpack.c.bf16 %v4865_v2, %v4865_v2 }
0x10ab   :  { %3367 = vmatmul.mubr.msk.bf16.vlgmr.msra.gmra.mrb[16].mxu1 %vm489_vm11, %v1028_v8  ;;  %v1154_v8 = vrot.slane %v4097_v12, %v4766_v22 }
0x10ac   :  { %1352 = vmatpush1.bf16.msra.mxu1 %v4822_v3  ;;  %1383 = vmatprep.mubr.bf16.mxu1 %v4107_v46 }
0x10ad   :  { %1353 = vmatprep.subr.bf16.mxu1 %v4827_v35 }
0x10b0   :  { %1354 = vmatpush1.bf16.msra.mxu1 %v4836_v10 }
0x10b1   :  { %1355 = vmatprep.subr.bf16.mxu1 %v4841_v13 }
0x10b4   :  { %1356 = vmatpush1.bf16.msra.mxu1 %v4848_v61 }
0x10b5   :  { %1357 = vmatprep.subr.bf16.mxu1 %v4853_v11 }
0x10b8   :  { %1358 = vmatpush1.bf16.msra.mxu1 %v4860_v38 }
0x10b9   :  { %1505 = vmatprep.subr.bf16.mxu1 %v4790_v20 }
0x10bb   :  { %1384 = vmatmul.mubr.bf16.vlgmr.msra.gmra.mrb[20].mxu1 %v4107_v46 }
0x10bc   :  { %1506 = vmatpush1.bf16.msra.mxu1 %v4822_v3  ;;  %1537 = vmatprep.mubr.bf16.mxu1 %v4107_v46 }
0x10bd   :  { %1507 = vmatprep.subr.bf16.mxu1 %v4827_v35 }
0x10c0   :  { %1508 = vmatpush1.bf16.msra.mxu1 %v4836_v10 }
0x10c1   :  { %1509 = vmatprep.subr.bf16.mxu1 %v4841_v13 }
0x10c4   :  { %1510 = vmatpush1.bf16.msra.mxu1 %v4848_v61 }
0x10c5   :  { %1511 = vmatprep.subr.bf16.mxu1 %v4853_v11 }
0x10c8   :  { %1512 = vmatpush1.bf16.msra.mxu1 %v4860_v38 }
0x10c9   :  { %1659 = vmatprep.subr.bf16.mxu1 %v4790_v20 }
0x1103   :  { %v1272_v7 = vpop.f32.mrb[28].mxu0 }
0x1104   :  { %v1274_v52 = vpop.f32.mrb[29].mxu0  ;;  %v1273_v63 = vadd.f32 %v1272_v7, %v4905_v49  ;;  %v1140_v7 = vsub.f32 %v1139_v6, %v4319_v45 }
0x1105   :  { %v4889_v14 = vpop.f32.mrb[30].mxu0  ;;  %v1275_v58 = vadd.f32 %v1274_v52, %v4908_v62  ;;  %v1155_v52 = vsub.f32 %v1154_v8, %v4319_v45 }
0x1106   :  { %v4891_v39 = vpop.f32.mrb[31].mxu0 }
0x117e   :  { %v1066_v53 = vpop.f32.mrb[16].mxu1 }
0x117f   :  { %v4897_v18 = vadd.f32 %v1066_v53, %v445_v4  ;;  %v1068_v41 = vpop.f32.mrb[17].mxu1 }
0x1180   :  { %v4899_v0 = vadd.f32 %v1068_v41, %v447_v17  ;;  %v1070_v16 = vpop.f32.mrb[18].mxu1  ;;  %v3690_v17 = vpack.i.bf16 %v1140_v7, %v1155_v52 }
0x1181   :  { %v1071_v26 = vpop.f32.mrb[19].mxu1 }
0x118e   :  { %v1385_v24 = vpop.f32.mrb[20].mxu1 }
0x118f   :  { %v1392_v54 = vadd.f32 %v1385_v24, %v1273_v63  ;;  %v1387_v15 = vpop.f32.mrb[21].mxu1 }
0x1190   :  { %v1393_v19 = vadd.f32 %v1387_v15, %v1275_v58  ;;  %v1389_v50 = vpop.f32.mrb[22].mxu1 }
0x1191   :  { %v1390_v25 = vpop.f32.mrb[23].mxu1  ;;  %v3384_v32 = vmul.f32 -1.442695, %v1392_v54 }
0x1192   :  { %3874 = vtanh.f32 %v1393_v19 }
0x1193   :  { %3876 = vpow2.f32 %v3384_v32 }
0x119c   :  { %v3875_v48 = vpop.eup %3874 }
0x119d   :  { %1409 = vrot.lane.b32.xlu0 %v3875_v48, %s4108_s3  ;;  %v3877_v44 = vpop.eup %3876 }
0x119e   :  { %v1400_v23 = vadd.f32 1.0, %v3877_v44 }
0x11a0   :  { %3878 = vrcp.f32 %v1400_v23 }
0x11a1   :  { %3686 = vrot.lane.b32.xlu0 %v3685_v34, %s4106_s1 }
0x11a5   :  { %3696 = vrot.lane.b32.xlu0 %v3695_v1, %s4106_s1 }
0x11aa   :  { %v3879_v40 = vpop.eup %3878 }
0x11ab   :  { %v1407_v45 = vmul.f32 0.0, %v3879_v40 }
0x120f   :  { %v1410_v43 = vpop.permute.xlu0 %1409 }
0x1210   :  { %v1412_v4 = vmul.f32 %v3879_v40, %v1410_v43 }
0x1212   :  { %1414 = vrot.lane.b32.xlu1 %v1412_v4, %s4108_s3 }
0x1213   :  { %v3687_v53 = vpop.permute.xlu0 %3686 }
0x1214   :  { %v3689_v41 = vunpack.i.h.bf16 %v3687_v53  ;;  %v3688_v16 = vunpack.i.l.bf16 %v3687_v53 }
0x1216   :  { %3691 = vrot.lane.b32.xlu1 %v3690_v17, %s4106_s1  ;;  %v1165_v26 = vsel %vm97_vm8, %v1155_v52, %v3689_v41  ;;  %v1150_v56 = vsel %vm97_vm8, %v1140_v7, %v3688_v16  ;;  %v1277_v16 = vadd.f32 %v4889_v14, %v4905_v49 }
0x1217   :  { %v1197_v22 = vpack.c.bf16 %v1165_v26, %v1150_v56  ;;  %v3697_v54 = vpop.permute.xlu0 %3696  ;;  %v1279_v26 = vadd.f32 %v4891_v39, %v4908_v62 }
0x1218   :  { %v3699_v29 = vunpack.i.h.bf16 %v3697_v54  ;;  %v3698_v33 = vunpack.i.l.bf16 %v3697_v54 }
0x1219   :  { %3373 = vmatmul.mubr.msk.bf16.gmra.mrb[32].mxu0 %vm357_vm10, %v1197_v22 }
0x121a   :  { %1290 = vmatprep.mubr.bf16.mxu0 %v4107_v46  ;;  %v1185_v48 = vsel %vm97_vm8, %v4777_v55, %v3699_v29  ;;  %v1180_v34 = vsel %vm97_vm8, %v4780_v27, %v3698_v33 }
0x121b   :  { %v1199_v44 = vpack.c.bf16 %v1185_v48, %v1180_v34 }
0x1284   :  { %v1415_v63 = vpop.permute.xlu1 %1414 }
0x1285   :  { %v4943_v58 = vadd.f32 %v1415_v63, %v1407_v45 }
0x1287   :  { %3880 = vtanh.f32 %v4943_v58 }
0x1288   :  { %v3692_v24 = vpop.permute.xlu1 %3691 }
0x1289   :  { %v3694_v15 = vunpack.i.h.bf16 %v3692_v24  ;;  %v3693_v50 = vunpack.i.l.bf16 %v3692_v24 }
0x128b   :  { %v1175_v25 = vsel %vm97_vm8, %v1145_v21, %v3694_v15  ;;  %v1170_v36 = vsel %vm97_vm8, %v1160_v30, %v3693_v50  ;;  %v3385_v21 = vmul.f32 -1.442695, %v1393_v19  ;;  %vm2967_vm8 = vcmask 785408  }
0x128c   :  { %v1198_v47 = vpack.c.bf16 %v1175_v25, %v1170_v36 }
0x128d   :  { %3882 = vpow2.f32 %v3385_v21 }
0x128e   :  { %3374 = vmatmul.mubr.msk.bf16.gmra.mrb[36].mxu0 %vm357_vm10, %v1198_v47 }
0x128f   :  { %1300 = vmatprep.mubr.bf16.mxu0 %v4107_v46 }
0x1291   :  { %v3881_v32 = vpop.eup %3880 }
0x1292   :  { %1420 = vrot.lane.b32.xlu1 %v3881_v32, %s4108_s3 }
0x1296   :  { %3375 = vmatmul.mubr.msk.bf16.gmra.mrb[40].mxu0 %vm357_vm10, %v1199_v44  ;;  %vm3325_vm10 = vcmask 15367  }
0x1297   :  { %1460 = vmatprep.mubr.bf16.mxu0 %v4107_v46  ;;  %v3883_v27 = vpop.eup %3882 }
0x1298   :  { %v1401_v5 = vadd.f32 1.0, %v3883_v27 }
0x129a   :  { %3884 = vrcp.f32 %v1401_v5 }
0x12a4   :  { %v3885_v6 = vpop.eup %3884 }
0x12ec   :  { %v4957_v30 = vpop.f32.mrb[32].mxu0 }
0x12ed   :  { %v4959_v23 = vpop.f32.mrb[33].mxu0 }
0x12ee   :  { %v4961_v55 = vpop.f32.mrb[34].mxu0 }
0x12ef   :  { %v4963_v1 = vpop.f32.mrb[35].mxu0 }
0x1304   :  { %v1421_v12 = vpop.permute.xlu1 %1420 }
0x1305   :  { %v4965_v8 = vmul.f32 %v3885_v6, %v1421_v12 }
0x1307   :  { %v1424_v7 = vpack.c.bf16 %v4965_v8, %v4965_v8 }
0x1309   :  { %3386 = vmatmul.mubr.msk.bf16.vlgmr.msra.gmra.mrb[44].mxu0 %vm489_vm11, %v1424_v7  ;;  %v1285_v7 = vadd.f32 %v4959_v23, %v4908_v62 }
0x130a   :  { %1583 = vmatpush1.bf16.msra.mxu0 %v4822_v3  ;;  %1614 = vmatprep.mubr.bf16.mxu0 %v4107_v46 }
0x130b   :  { %1584 = vmatprep.subr.bf16.mxu0 %v4827_v35 }
0x130e   :  { %1585 = vmatpush1.bf16.msra.mxu0 %v4836_v10 }
0x130f   :  { %1586 = vmatprep.subr.bf16.mxu0 %v4841_v13 }
0x1312   :  { %1587 = vmatpush1.bf16.msra.mxu0 %v4848_v61 }
0x1313   :  { %1588 = vmatprep.subr.bf16.mxu0 %v4853_v11 }
0x1316   :  { %1589 = vmatpush1.bf16.msra.mxu0 %v4860_v38 }
0x1317   :  { %1736 = vmatprep.subr.bf16.mxu0 %v4790_v20 }
0x1361   :  { %v4979_v19 = vpop.f32.mrb[36].mxu0 }
0x1362   :  { %v4981_v52 = vpop.f32.mrb[37].mxu0 }
0x1363   :  { %v4983_v40 = vpop.f32.mrb[38].mxu0 }
0x1364   :  { %v4985_v43 = vpop.f32.mrb[39].mxu0 }
0x1369   :  { %v4987_v4 = vpop.f32.mrb[40].mxu0 }
0x136a   :  { %v4989_v17 = vpop.f32.mrb[41].mxu0 }
0x136b   :  { %v4991_v53 = vpop.f32.mrb[42].mxu0 }
0x136c   :  { %v4993_v41 = vpop.f32.mrb[43].mxu0 }
0x13dc   :  { %v1462_v56 = vpop.f32.mrb[44].mxu0 }
0x13dd   :  { %v1469_v22 = vadd.f32 %v1462_v56, %v1277_v16  ;;  %v1464_v45 = vpop.f32.mrb[45].mxu0 }
0x13de   :  { %v1470_v63 = vadd.f32 %v1464_v45, %v1279_v26  ;;  %v1466_v24 = vpop.f32.mrb[46].mxu0 }
0x13df   :  { %v1467_v54 = vpop.f32.mrb[47].mxu0  ;;  %v3387_v50 = vmul.f32 -1.442695, %v1469_v22 }
0x13e0   :  { %3886 = vtanh.f32 %v1470_v63  ;;  %v3388_v32 = vmul.f32 -1.442695, %v1470_v63 }
0x13e1   :  { %3888 = vpow2.f32 %v3387_v50 }
0x13ea   :  { %v3887_v15 = vpop.eup %3886 }
0x13eb   :  { %1486 = vrot.lane.b32.xlu0 %v3887_v15, %s4108_s3  ;;  %v3889_v25 = vpop.eup %3888 }
0x13ec   :  { %v1477_v36 = vadd.f32 1.0, %v3889_v25 }
0x13ee   :  { %3890 = vrcp.f32 %v1477_v36 }
0x13f8   :  { %v3891_v29 = vpop.eup %3890 }
0x13f9   :  { %v1484_v39 = vmul.f32 %v3891_v29, %v4943_v58  ;;  %v1283_v58 = vadd.f32 %v4957_v30, %v4905_v49 }
0x145d   :  { %v1487_v14 = vpop.permute.xlu0 %1486 }
0x145e   :  { %v1489_v33 = vmul.f32 %v3891_v29, %v1487_v14 }
0x1460   :  { %1491 = vrot.lane.b32.xlu1 %v1489_v33, %s4108_s3 }
0x14d2   :  { %v1492_v47 = vpop.permute.xlu1 %1491 }
0x14d3   :  { %v1494_v48 = vadd.f32 %v1492_v47, %v1484_v39 }
0x14d5   :  { %3892 = vtanh.f32 %v1494_v48 }
0x14d6   :  { %3894 = vpow2.f32 %v3388_v32 }
0x14df   :  { %v3893_v34 = vpop.eup %3892 }
0x14e0   :  { %1497 = vrot.lane.b32.xlu0 %v3893_v34, %s4108_s3  ;;  %v3895_v44 = vpop.eup %3894 }
0x14e1   :  { %v1478_v21 = vadd.f32 1.0, %v3895_v44 }
0x14e3   :  { %3896 = vrcp.f32 %v1478_v21 }
0x14ed   :  { %v3897_v27 = vpop.eup %3896 }
0x1552   :  { %v1498_v5 = vpop.permute.xlu0 %1497 }
0x1553   :  { %v1500_v6 = vmul.f32 %v3897_v27, %v1498_v5  ;;  %v1289_v5 = vadd.f32 %v4963_v1, %v4908_v62 }
0x1555   :  { %v1501_v12 = vpack.c.bf16 %v1500_v6, %v1500_v6 }
0x1557   :  { %3389 = vmatmul.mubr.msk.bf16.vlgmr.msra.gmra.mrb[24].mxu1 %vm489_vm11, %v1501_v12 }
0x1558   :  { %1660 = vmatpush1.bf16.msra.mxu1 %v4822_v3  ;;  %1691 = vmatprep.mubr.bf16.mxu1 %v4107_v46 }
0x1559   :  { %1661 = vmatprep.subr.bf16.mxu1 %v4827_v35 }
0x155c   :  { %1662 = vmatpush1.bf16.msra.mxu1 %v4836_v10 }
0x155d   :  { %1663 = vmatprep.subr.bf16.mxu1 %v4841_v13 }
0x1560   :  { %1664 = vmatpush1.bf16.msra.mxu1 %v4848_v61 }
0x1561   :  { %1665 = vmatprep.subr.bf16.mxu1 %v4853_v11 }
0x1564   :  { %1666 = vmatpush1.bf16.msra.mxu1 %v4860_v38 }
0x1565   :  { %1813 = vmatprep.subr.bf16.mxu1 %v4790_v20 }
0x162a   :  { %v1539_v16 = vpop.f32.mrb[24].mxu1 }
0x162b   :  { %v1546_v26 = vadd.f32 %v1539_v16, %v1283_v58  ;;  %v1541_v56 = vpop.f32.mrb[25].mxu1 }
0x162c   :  { %v1547_v22 = vadd.f32 %v1541_v56, %v1285_v7  ;;  %v1543_v45 = vpop.f32.mrb[26].mxu1 }
0x162d   :  { %v1544_v63 = vpop.f32.mrb[27].mxu1  ;;  %v3390_v54 = vmul.f32 -1.442695, %v1546_v26 }
0x162e   :  { %3898 = vtanh.f32 %v1547_v22  ;;  %v3391_v39 = vmul.f32 -1.442695, %v1547_v22 }
0x162f   :  { %3900 = vpow2.f32 %v3390_v54 }
0x1638   :  { %v3899_v24 = vpop.eup %3898 }
0x1639   :  { %1563 = vrot.lane.b32.xlu1 %v3899_v24, %s4108_s3  ;;  %v3901_v15 = vpop.eup %3900 }
0x163a   :  { %v1554_v50 = vadd.f32 1.0, %v3901_v15 }
0x163c   :  { %3902 = vrcp.f32 %v1554_v50 }
0x1646   :  { %v3903_v25 = vpop.eup %3902 }
0x1647   :  { %v1561_v23 = vmul.f32 %v3903_v25, %v1494_v48  ;;  %v1287_v48 = vadd.f32 %v4961_v55, %v4905_v49 }
0x16ab   :  { %v1564_v30 = vpop.permute.xlu1 %1563 }
0x16ac   :  { %v1566_v36 = vmul.f32 %v3903_v25, %v1564_v30 }
0x16ae   :  { %1568 = vrot.lane.b32.xlu0 %v1566_v36, %s4108_s3 }
0x1720   :  { %v1569_v29 = vpop.permute.xlu0 %1568 }
0x1721   :  { %v1571_v14 = vadd.f32 %v1569_v29, %v1561_v23 }
0x1723   :  { %3904 = vtanh.f32 %v1571_v14 }
0x1724   :  { %3906 = vpow2.f32 %v3391_v39 }
0x172d   :  { %v3905_v33 = vpop.eup %3904 }
0x172e   :  { %1574 = vrot.lane.b32.xlu1 %v3905_v33, %s4108_s3  ;;  %v3907_v47 = vpop.eup %3906 }
0x172f   :  { %v1555_v34 = vadd.f32 1.0, %v3907_v47  ;;  %v1295_v47 = vadd.f32 %v4981_v52, %v4908_v62 }
0x1731   :  { %3908 = vrcp.f32 %v1555_v34 }
0x173b   :  { %v3909_v32 = vpop.eup %3908 }
0x17a0   :  { %v1575_v44 = vpop.permute.xlu1 %1574 }
0x17a1   :  { %v1577_v21 = vmul.f32 %v3909_v32, %v1575_v44 }
0x17a3   :  { %v1578_v27 = vpack.c.bf16 %v1577_v21, %v1577_v21 }
0x17a5   :  { %3392 = vmatmul.mubr.msk.bf16.vlgmr.msra.gmra.mrb[48].mxu0 %vm489_vm11, %v1578_v27 }
0x17a6   :  { %1737 = vmatpush1.bf16.msra.mxu0 %v4822_v3  ;;  %1768 = vmatprep.mubr.bf16.mxu0 %v4107_v46 }
0x17a7   :  { %1738 = vmatprep.subr.bf16.mxu0 %v4827_v35 }
0x17aa   :  { %1739 = vmatpush1.bf16.msra.mxu0 %v4836_v10 }
0x17ab   :  { %1740 = vmatprep.subr.bf16.mxu0 %v4841_v13 }
0x17ae   :  { %1741 = vmatpush1.bf16.msra.mxu0 %v4848_v61 }
0x17af   :  { %1742 = vmatprep.subr.bf16.mxu0 %v4853_v11 }
0x17b2   :  { %1743 = vmatpush1.bf16.msra.mxu0 %v4860_v38 }
0x17b3   :  { %1890 = vmatprep.subr.bf16.mxu0 %v4790_v20 }
0x1878   :  { %v1616_v6 = vpop.f32.mrb[48].mxu0 }
0x1879   :  { %v1623_v12 = vadd.f32 %v1616_v6, %v1287_v48  ;;  %v1618_v58 = vpop.f32.mrb[49].mxu0 }
0x187a   :  { %v1624_v7 = vadd.f32 %v1618_v58, %v1289_v5  ;;  %v1620_v16 = vpop.f32.mrb[50].mxu0 }
0x187b   :  { %v1621_v26 = vpop.f32.mrb[51].mxu0  ;;  %v3393_v22 = vmul.f32 -1.442695, %v1623_v12 }
0x187c   :  { %3910 = vtanh.f32 %v1624_v7  ;;  %v3394_v25 = vmul.f32 -1.442695, %v1624_v7 }
0x187d   :  { %3912 = vpow2.f32 %v3393_v22 }
0x1886   :  { %v3911_v56 = vpop.eup %3910 }
0x1887   :  { %1640 = vrot.lane.b32.xlu0 %v3911_v56, %s4108_s3  ;;  %v3913_v45 = vpop.eup %3912 }
0x1888   :  { %v1631_v20 = vadd.f32 1.0, %v3913_v45 }
0x188a   :  { %3914 = vrcp.f32 %v1631_v20 }
0x1894   :  { %v3915_v63 = vpop.eup %3914 }
0x1895   :  { %v1638_v1 = vmul.f32 %v3915_v63, %v1571_v14  ;;  %v1293_v14 = vadd.f32 %v4979_v19, %v4905_v49 }
0x18f9   :  { %v1641_v55 = vpop.permute.xlu0 %1640 }
0x18fa   :  { %v1643_v24 = vmul.f32 %v3915_v63, %v1641_v55 }
0x18fc   :  { %1645 = vrot.lane.b32.xlu1 %v1643_v24, %s4108_s3 }
0x196e   :  { %v1646_v54 = vpop.permute.xlu1 %1645 }
0x196f   :  { %v1648_v15 = vadd.f32 %v1646_v54, %v1638_v1 }
0x1971   :  { %3916 = vtanh.f32 %v1648_v15 }
0x1972   :  { %3918 = vpow2.f32 %v3394_v25 }
0x197b   :  { %v3917_v50 = vpop.eup %3916 }
0x197c   :  { %1651 = vrot.lane.b32.xlu0 %v3917_v50, %s4108_s3  ;;  %v3919_v30 = vpop.eup %3918 }
0x197d   :  { %v1632_v36 = vadd.f32 1.0, %v3919_v30 }
0x197f   :  { %3920 = vrcp.f32 %v1632_v36 }
0x1989   :  { %v3921_v23 = vpop.eup %3920 }
0x19ee   :  { %v1652_v29 = vpop.permute.xlu0 %1651 }
0x19ef   :  { %v1654_v33 = vmul.f32 %v3921_v23, %v1652_v29 }
0x19f1   :  { %v1655_v39 = vpack.c.bf16 %v1654_v33, %v1654_v33 }
0x19f3   :  { %3395 = vmatmul.mubr.msk.bf16.vlgmr.msra.gmra.mrb[28].mxu1 %vm489_vm11, %v1655_v39 }
0x19f4   :  { %1814 = vmatpush1.bf16.msra.mxu1 %v4822_v3  ;;  %1845 = vmatprep.mubr.bf16.mxu1 %v4107_v46 }
0x19f5   :  { %1815 = vmatprep.subr.bf16.mxu1 %v4827_v35 }
0x19f8   :  { %1816 = vmatpush1.bf16.msra.mxu1 %v4836_v10 }
0x19f9   :  { %1817 = vmatprep.subr.bf16.mxu1 %v4841_v13 }
0x19fc   :  { %1818 = vmatpush1.bf16.msra.mxu1 %v4848_v61 }
0x19fd   :  { %1819 = vmatprep.subr.bf16.mxu1 %v4853_v11 }
0x1a00   :  { %1820 = vmatpush1.bf16.msra.mxu1 %v4860_v38 }
0x1ac6   :  { %v1693_v34 = vpop.f32.mrb[28].mxu1 }
0x1ac7   :  { %v1700_v32 = vadd.f32 %v1693_v34, %v1293_v14  ;;  %v1695_v44 = vpop.f32.mrb[29].mxu1 }
0x1ac8   :  { %v1701_v21 = vadd.f32 %v1695_v44, %v1295_v47  ;;  %v1697_v27 = vpop.f32.mrb[30].mxu1 }
0x1ac9   :  { %v1698_v48 = vpop.f32.mrb[31].mxu1  ;;  %v3396_v6 = vmul.f32 -1.442695, %v1700_v32 }
0x1aca   :  { %3922 = vtanh.f32 %v1701_v21  ;;  %v3397_v45 = vmul.f32 -1.442695, %v1701_v21 }
0x1acb   :  { %3924 = vpow2.f32 %v3396_v6  ;;  %v1305_v6 = vadd.f32 %v4989_v17, %v4908_v62 }
0x1ad4   :  { %v3923_v5 = vpop.eup %3922 }
0x1ad5   :  { %1717 = vrot.lane.b32.xlu1 %v3923_v5, %s4108_s3  ;;  %v3925_v12 = vpop.eup %3924  ;;  %v1303_v5 = vadd.f32 %v4987_v4, %v4905_v49 }
0x1ad6   :  { %v1708_v58 = vadd.f32 1.0, %v3925_v12 }
0x1ad8   :  { %3926 = vrcp.f32 %v1708_v58 }
0x1ae2   :  { %v3927_v7 = vpop.eup %3926 }
0x1ae3   :  { %v1715_v52 = vmul.f32 %v3927_v7, %v1648_v15  ;;  %v1297_v15 = vadd.f32 %v4983_v40, %v4905_v49 }
0x1b47   :  { %v1718_v19 = vpop.permute.xlu1 %1717 }
0x1b48   :  { %v1720_v16 = vmul.f32 %v3927_v7, %v1718_v19 }
0x1b4a   :  { %1722 = vrot.lane.b32.xlu0 %v1720_v16, %s4108_s3 }
0x1bbc   :  { %v1723_v26 = vpop.permute.xlu0 %1722 }
0x1bbd   :  { %v1725_v56 = vadd.f32 %v1723_v26, %v1715_v52 }
0x1bbf   :  { %3928 = vtanh.f32 %v1725_v56 }
0x1bc0   :  { %3930 = vpow2.f32 %v3397_v45 }
0x1bc9   :  { %v3929_v22 = vpop.eup %3928 }
0x1bca   :  { %1728 = vrot.lane.b32.xlu1 %v3929_v22, %s4108_s3  ;;  %v3931_v20 = vpop.eup %3930 }
0x1bcb   :  { %v1709_v63 = vadd.f32 1.0, %v3931_v20 }
0x1bcd   :  { %3932 = vrcp.f32 %v1709_v63 }
0x1bd7   :  { %v3933_v55 = vpop.eup %3932 }
0x1c3c   :  { %v1729_v24 = vpop.permute.xlu1 %1728 }
0x1c3d   :  { %v1731_v1 = vmul.f32 %v3933_v55, %v1729_v24  ;;  %v3368_v55 = vmul.f32 -1.442695, %v4897_v18 }
0x1c3f   :  { %v1732_v54 = vpack.c.bf16 %v1731_v1, %v1731_v1 }
0x1c41   :  { %3398 = vmatmul.mubr.msk.bf16.vlgmr.msra.gmra.mrb[52].mxu0 %vm489_vm11, %v1732_v54 }
0x1c42   :  { %1891 = vmatpush1.bf16.msra.mxu0 %v4822_v3  ;;  %1922 = vmatprep.mubr.bf16.mxu0 %v4107_v46  ;;  %v1299_v3 = vadd.f32 %v4985_v43, %v4908_v62 }
0x1c43   :  { %1892 = vmatprep.subr.bf16.mxu0 %v4827_v35 }
0x1c46   :  { %1893 = vmatpush1.bf16.msra.mxu0 %v4836_v10 }
0x1c47   :  { %1894 = vmatprep.subr.bf16.mxu0 %v4841_v13 }
0x1c4a   :  { %1895 = vmatpush1.bf16.msra.mxu0 %v4848_v61 }
0x1c4b   :  { %1896 = vmatprep.subr.bf16.mxu0 %v4853_v11 }
0x1c4e   :  { %1897 = vmatpush1.bf16.msra.mxu0 %v4860_v38 }
0x1d14   :  { %v1770_v50 = vpop.f32.mrb[52].mxu0 }
0x1d15   :  { %v1777_v25 = vadd.f32 %v1770_v50, %v1297_v15  ;;  %v1772_v30 = vpop.f32.mrb[53].mxu0 }
0x1d16   :  { %v1778_v35 = vadd.f32 %v1772_v30, %v1299_v3  ;;  %v1774_v36 = vpop.f32.mrb[54].mxu0 }
0x1d17   :  { %v1775_v10 = vpop.f32.mrb[55].mxu0  ;;  %v3399_v61 = vmul.f32 -1.442695, %v1777_v25 }
0x1d18   :  { %3934 = vtanh.f32 %v1778_v35  ;;  %v3400_v47 = vmul.f32 -1.442695, %v1778_v35 }
0x1d19   :  { %3936 = vpow2.f32 %v3399_v61 }
0x1d22   :  { %v3935_v13 = vpop.eup %3934 }
0x1d23   :  { %1794 = vrot.lane.b32.xlu0 %v3935_v13, %s4108_s3  ;;  %v3937_v11 = vpop.eup %3936 }
0x1d24   :  { %v1785_v38 = vadd.f32 1.0, %v3937_v11 }
0x1d26   :  { %3938 = vrcp.f32 %v1785_v38 }
0x1d30   :  { %v3939_v23 = vpop.eup %3938 }
0x1d31   :  { %v1792_v43 = vmul.f32 %v3939_v23, %v1725_v56 }
0x1d95   :  { %v1795_v40 = vpop.permute.xlu0 %1794 }
0x1d96   :  { %v1797_v29 = vmul.f32 %v3939_v23, %v1795_v40 }
0x1d98   :  { %1799 = vrot.lane.b32.xlu1 %v1797_v29, %s4108_s3 }
0x1e0a   :  { %v1800_v33 = vpop.permute.xlu1 %1799 }
0x1e0b   :  { %v1802_v39 = vadd.f32 %v1800_v33, %v1792_v43  ;;  %v1307_v33 = vadd.f32 %v4991_v53, %v4905_v49 }
0x1e0d   :  { %3940 = vtanh.f32 %v1802_v39 }
0x1e0e   :  { %3942 = vpow2.f32 %v3400_v47 }
0x1e17   :  { %v3941_v14 = vpop.eup %3940 }
0x1e18   :  { %1805 = vrot.lane.b32.xlu0 %v3941_v14, %s4108_s3  ;;  %v3943_v34 = vpop.eup %3942 }
0x1e19   :  { %v1786_v32 = vadd.f32 1.0, %v3943_v34 }
0x1e1b   :  { %3944 = vrcp.f32 %v1786_v32 }
0x1e25   :  { %v3945_v44 = vpop.eup %3944 }
0x1e8a   :  { %v1806_v21 = vpop.permute.xlu0 %1805 }
0x1e8b   :  { %v1808_v27 = vmul.f32 %v3945_v44, %v1806_v21 }
0x1e8d   :  { %v1809_v48 = vpack.c.bf16 %v1808_v27, %v1808_v27 }
0x1e8f   :  { %3401 = vmatmul.mubr.msk.bf16.vlgmr.msra.gmra.mrb[32].mxu1 %vm489_vm11, %v1809_v48 }
0x1e90   :  { %2171 = vmatprep.mubr.bf16.mxu1 %v4107_v46 }
0x1f62   :  { %v1847_v12 = vpop.f32.mrb[32].mxu1 }
0x1f63   :  { %v1854_v58 = vadd.f32 %v1847_v12, %v1303_v5  ;;  %v1849_v7 = vpop.f32.mrb[33].mxu1 }
0x1f64   :  { %v1855_v19 = vadd.f32 %v1849_v7, %v1305_v6  ;;  %v1851_v16 = vpop.f32.mrb[34].mxu1  ;;  %v3756_v7 = vld [vmem:[%s5766_s7 + $0x4] ss:$8 sps:$4 sm:$0xff]  }
0x1f65   :  { %v1852_v52 = vpop.f32.mrb[35].mxu1  ;;  %v3402_v56 = vmul.f32 -1.442695, %v1854_v58  ;;  %v3754_v58 = vld [vmem:[%s5766_s7] ss:$8 sps:$4 sm:$0xff]   ;;  %2139 = vmatprep.subr.bf16.mxu1 %v3756_v7 }
0x1f66   :  { %3946 = vtanh.f32 %v1855_v19  ;;  %v3403_v36 = vmul.f32 -1.442695, %v1855_v19  ;;  %v3759_v19 = vld [vmem:[%s5766_s7 + $0x14] ss:$8 sps:$4 sm:$0xff]   ;;  %2140 = vmatpush1.bf16.msra.mxu1 %v3754_v58  ;;  %v3757_v16 = vld [vmem:[%s5766_s7 + $0x10] ss:$8 sps:$4 sm:$0xff]  }
0x1f67   :  { %3948 = vpow2.f32 %v3402_v56  ;;  %2141 = vmatprep.subr.bf16.mxu1 %v3759_v19  ;;  %v3762_v52 = vld [vmem:[%s5766_s7 + $0x24] ss:$8 sps:$4 sm:$0xff]  }
0x1f68   :  { %v5113_v56 = vld [vmem:[%s5767_s8 + $0x4] ss:$8 sps:$4 sm:$0xff]  }
0x1f69   :  { %2260 = vmatprep.subr.bf16.mxu0 %v5113_v56 }
0x1f6a   :  { %2142 = vmatpush1.bf16.msra.mxu1 %v3757_v16 }
0x1f6b   :  { %2143 = vmatprep.subr.bf16.mxu1 %v3762_v52 }
0x1f70   :  { %v3947_v26 = vpop.eup %3946 }
0x1f71   :  { %1871 = vrot.lane.b32.xlu1 %v3947_v26, %s4108_s3  ;;  %v3949_v22 = vpop.eup %3948 }
0x1f72   :  { %v1862_v45 = vadd.f32 1.0, %v3949_v22  ;;  %v3760_v22 = vld [vmem:[%s5766_s7 + $0x20] ss:$8 sps:$4 sm:$0xff]  }
0x1f73   :  { %2144 = vmatpush1.bf16.msra.mxu1 %v3760_v22 }
0x1f74   :  { %3950 = vrcp.f32 %v1862_v45  ;;  %v5122_v45 = vld [vmem:[%s5767_s8] ss:$8 sps:$4 sm:$0xff]  }
0x1f75   :  { %3952 = vtanh.f32 %v4899_v0 }
0x1f76   :  { %3954 = vpow2.f32 %v3368_v55  ;;  %v3763_v55 = vld [vmem:[%s5766_s7 + $0x30] ss:$8 sps:$4 sm:$0xff]  }
0x1f7e   :  { %v3951_v4 = vpop.eup %3950 }
0x1f7f   :  { %v3953_v63 = vpop.eup %3952  ;;  %v1869_v54 = vmul.f32 %v3951_v4, %v1802_v39 }
0x1f80   :  { %v3955_v24 = vpop.eup %3954 }
0x1f81   :  { %v1081_v1 = vadd.f32 1.0, %v3955_v24  ;;  %v3770_v24 = vld [vmem:[%s5766_s7 + $0x44] ss:$8 sps:$4 sm:$0xff]  }
0x1f83   :  { %3956 = vrcp.f32 %v1081_v1  ;;  %v5155_v1 = vld [vmem:[%s5767_s8 + $0x20] ss:$8 sps:$4 sm:$0xff]  }
0x1f8d   :  { %v3957_v50 = vpop.eup %3956 }
0x1f8e   :  { %v1088_v13 = vmul.f32 %v3957_v50, %v4785_v28  ;;  %v1309_v28 = vadd.f32 %v4993_v41, %v4908_v62 }
0x1fe3   :  { %v1872_v20 = vpop.permute.xlu1 %1871 }
0x1fe4   :  { %v1874_v17 = vmul.f32 %v3951_v4, %v1872_v20  ;;  %v5128_v4 = vld [vmem:[%s5767_s8 + $0x14] ss:$8 sps:$4 sm:$0xff]  }
0x1fe5   :  { %v3765_v20 = vld [vmem:[%s5766_s7 + $0x34] ss:$8 sps:$4 sm:$0xff]  }
0x1fe6   :  { %1876 = vrot.lane.b32.xlu0 %v1874_v17, %s4108_s3  ;;  %v5138_v17 = vld [vmem:[%s5767_s8 + $0x10] ss:$8 sps:$4 sm:$0xff]   ;;  %2145 = vmatprep.subr.bf16.mxu1 %v3765_v20 }
0x1fe7   :  { %2146 = vmatpush1.bf16.msra.mxu1 %v3763_v55 }
0x1fe8   :  { %2147 = vmatprep.subr.bf16.mxu1 %v3770_v24 }
0x1fea   :  { %1090 = vrot.lane.b32.xlu0 %v3953_v63, %s4108_s3  ;;  %v5143_v63 = vld [vmem:[%s5767_s8 + $0x24] ss:$8 sps:$4 sm:$0xff]  }
0x2058   :  { %v1877_v15 = vpop.permute.xlu0 %1876 }
0x2059   :  { %v1879_v3 = vadd.f32 %v1877_v15, %v1869_v54  ;;  %v3768_v54 = vld [vmem:[%s5766_s7 + $0x40] ss:$8 sps:$4 sm:$0xff]   ;;  %v3776_v15 = vld [vmem:[%s5766_s7 + $0x54] ss:$8 sps:$4 sm:$0xff]  }
0x205a   :  { %2148 = vmatpush1.bf16.msra.mxu1 %v3768_v54 }
0x205b   :  { %3958 = vtanh.f32 %v1879_v3  ;;  %2149 = vmatprep.subr.bf16.mxu1 %v3776_v15 }
0x205c   :  { %v1091_v25 = vpop.permute.xlu0 %1090  ;;  %3960 = vpow2.f32 %v3403_v36 }
0x205d   :  { %v1093_v30 = vmul.f32 %v3957_v50, %v1091_v25  ;;  %v3782_v50 = vld [vmem:[%s5766_s7 + $0x64] ss:$8 sps:$4 sm:$0xff]   ;;  %v3780_v25 = vld [vmem:[%s5766_s7 + $0x60] ss:$8 sps:$4 sm:$0xff]  }
0x205f   :  { %1095 = vrot.lane.b32.xlu0 %v1093_v30, %s4108_s3  ;;  %v3369_v30 = vmul.f32 -1.442695, %v4899_v0  ;;  %v5187_v0 = vld [vmem:[%s5767_s8 + $0x30] ss:$8 sps:$4 sm:$0xff]  }
0x2065   :  { %v3959_v35 = vpop.eup %3958 }
0x2066   :  { %1882 = vrot.lane.b32.xlu1 %v3959_v35, %s4108_s3  ;;  %v3961_v10 = vpop.eup %3960 }
0x2067   :  { %v1863_v18 = vadd.f32 1.0, %v3961_v10 }
0x2069   :  { %3962 = vrcp.f32 %v1863_v18 }
0x2073   :  { %v3963_v38 = vpop.eup %3962 }
0x20d1   :  { %v1096_v61 = vpop.permute.xlu0 %1095 }
0x20d2   :  { %v1098_v11 = vadd.f32 %v1096_v61, %v1088_v13  ;;  %v5179_v61 = vld [vmem:[%s5767_s8 + $0x34] ss:$8 sps:$4 sm:$0xff]  }
0x20d4   :  { %3964 = vtanh.f32 %v1098_v11  ;;  %v3788_v11 = vld [vmem:[%s5766_s7 + $0x74] ss:$8 sps:$4 sm:$0xff]  }
0x20d8   :  { %v1883_v23 = vpop.permute.xlu1 %1882 }
0x20d9   :  { %v1885_v40 = vmul.f32 %v3963_v38, %v1883_v23  ;;  %v3786_v38 = vld [vmem:[%s5766_s7 + $0x70] ss:$8 sps:$4 sm:$0xff]  }
0x20db   :  { %v1886_v29 = vpack.c.bf16 %v1885_v40, %v1885_v40 }
0x20dd   :  { %3404 = vmatmul.mubr.msk.bf16.vlgmr.msra.gmra.mrb[56].mxu0 %vm489_vm11, %v1886_v29 }
0x20de   :  { %v3965_v43 = vpop.eup %3964  ;;  %2292 = vmatprep.mubr.bf16.mxu0 %v4107_v46  ;;  %2261 = vmatpush1.bf16.msra.mxu0 %v5122_v45 }
0x20df   :  { %1101 = vrot.lane.b32.xlu0 %v3965_v43, %s4108_s3  ;;  %2262 = vmatprep.subr.bf16.mxu0 %v5128_v4 }
0x20e2   :  { %2263 = vmatpush1.bf16.msra.mxu0 %v5138_v17 }
0x20e3   :  { %2264 = vmatprep.subr.bf16.mxu0 %v5143_v63 }
0x20e6   :  { %2265 = vmatpush1.bf16.msra.mxu0 %v5155_v1 }
0x20e7   :  { %2266 = vmatprep.subr.bf16.mxu0 %v5179_v61 }
0x20ea   :  { %2267 = vmatpush1.bf16.msra.mxu0 %v5187_v0 }
0x20eb   :  { %2337 = vmatprep.subr.bf16.mxu0 %v5113_v56 }
0x20ed   :  { %2293 = vmatmul.mubr.bf16.vlgmr.msra.gmra.mrb[60].mxu0 %v4107_v46 }
0x20ee   :  { %2338 = vmatpush1.bf16.msra.mxu0 %v5122_v45  ;;  %2369 = vmatprep.mubr.bf16.mxu0 %v4107_v46 }
0x20ef   :  { %2339 = vmatprep.subr.bf16.mxu0 %v5128_v4 }
0x20f2   :  { %2340 = vmatpush1.bf16.msra.mxu0 %v5138_v17 }
0x20f3   :  { %2341 = vmatprep.subr.bf16.mxu0 %v5143_v63 }
0x20f6   :  { %2342 = vmatpush1.bf16.msra.mxu0 %v5155_v1 }
0x20f7   :  { %2343 = vmatprep.subr.bf16.mxu0 %v5179_v61 }
0x20fa   :  { %2344 = vmatpush1.bf16.msra.mxu0 %v5187_v0 }
0x20fb   :  { %2414 = vmatprep.subr.bf16.mxu0 %v5113_v56 }
0x2151   :  { %v1102_v23 = vpop.permute.xlu0 %1101 }
0x21b0   :  { %v1924_v39 = vpop.f32.mrb[56].mxu0 }
0x21b1   :  { %v1931_v14 = vadd.f32 %v1924_v39, %v1307_v33  ;;  %v1926_v47 = vpop.f32.mrb[57].mxu0 }
0x21b2   :  { %v5090_v34 = vadd.f32 %v1926_v47, %v1309_v28  ;;  %v1928_v32 = vpop.f32.mrb[58].mxu0 }
0x21b3   :  { %v1929_v44 = vpop.f32.mrb[59].mxu0  ;;  %v3405_v27 = vmul.f32 -1.442695, %v1931_v14 }
0x21b4   :  { %3966 = vtanh.f32 %v5090_v34  ;;  %v3406_v35 = vmul.f32 -1.442695, %v5090_v34  ;;  %v5220_v44 = vsel %vm1963_vm7, %v4655_v51, %v4865_v2 }
0x21b5   :  { %3968 = vpow2.f32 %v3405_v27 }
0x21be   :  { %v3967_v21 = vpop.eup %3966 }
0x21bf   :  { %1948 = vrot.lane.b32.xlu1 %v3967_v21, %s4108_s3  ;;  %v3969_v48 = vpop.eup %3968 }
0x21c0   :  { %v1939_v5 = vadd.f32 1.0, %v3969_v48 }
0x21c2   :  { %3970 = vrcp.f32 %v1939_v5 }
0x21cc   :  { %v3971_v49 = vpop.eup %3970 }
0x21cd   :  { %v1946_v41 = vmul.f32 %v3971_v49, %v1879_v3  ;;  %v3774_v3 = vld [vmem:[%s5766_s7 + $0x50] ss:$8 sps:$4 sm:$0xff]  }
0x21ce   :  { %2150 = vmatpush1.bf16.msra.mxu1 %v3774_v3 }
0x21cf   :  { %2151 = vmatprep.subr.bf16.mxu1 %v3782_v50 }
0x21d2   :  { %2152 = vmatpush1.bf16.msra.mxu1 %v3780_v25 }
0x21d3   :  { %2153 = vmatprep.subr.bf16.mxu1 %v3788_v11 }
0x21d6   :  { %2154 = vmatpush1.bf16.msra.mxu1 %v3786_v38 }
0x21d7   :  { %2491 = vmatprep.subr.bf16.mxu1 %v5113_v56 }
0x2231   :  { %v1949_v53 = vpop.permute.xlu1 %1948 }
0x2232   :  { %v1951_v62 = vmul.f32 %v3971_v49, %v1949_v53 }
0x2234   :  { %1953 = vrot.lane.b32.xlu1 %v1951_v62, %s4108_s3 }
0x22a6   :  { %v1954_v6 = vpop.permute.xlu1 %1953 }
0x22a7   :  { %v1956_v12 = vadd.f32 %v1954_v6, %v1946_v41  ;;  %v2042_v41 = vld [vmem:[%s5768_s9] sm:$0x3] }
0x22a8   :  { %v5243_v6 = vrot.slane %v2042_v41, %v4412_v57 }
0x22a9   :  { %3972 = vtanh.f32 %v1956_v12  ;;  %v5246_v12 = vrot.slane %v2042_v41, %v4418_v60 }
0x22aa   :  { %3974 = vpow2.f32 %v3369_v30 }
0x22ab   :  { %3976 = vpow2.f32 %v3406_v35 }
0x22b3   :  { %v3973_v26 = vpop.eup %3972 }
0x22b4   :  { %1959 = vrot.lane.b32.xlu1 %v3973_v26, %s4108_s3  ;;  %v3975_v36 = vpop.eup %3974 }
0x22b5   :  { %v3977_v10 = vpop.eup %3976  ;;  %v1082_v18 = vadd.f32 1.0, %v3975_v36 }
0x22b6   :  { %v1940_v13 = vadd.f32 1.0, %v3977_v10 }
0x22b7   :  { %3978 = vrcp.f32 %v1082_v18 }
0x22b8   :  { %3980 = vrcp.f32 %v1940_v13 }
0x22c1   :  { %v3979_v40 = vpop.eup %3978 }
0x22c2   :  { %v1104_v29 = vmul.f32 %v3979_v40, %v1102_v23  ;;  %v3981_v43 = vpop.eup %3980 }
0x22c4   :  { %v5207_v14 = vsel %vm1963_vm7, %v1104_v29, %v4434_v31  ;;  %v5224_v21 = vsel %vm1963_vm7, %v4434_v31, %v1104_v29  ;;  %v2294_v31 = vpop.f32.mrb[60].mxu0 }
0x22c5   :  { %v2296_v49 = vpop.f32.mrb[61].mxu0 }
0x22c6   :  { %v2298_v53 = vpop.f32.mrb[62].mxu0 }
0x22c7   :  { %v2299_v62 = vpop.f32.mrb[63].mxu0 }
0x2326   :  { %v1960_v33 = vpop.permute.xlu1 %1959 }
0x2327   :  { %v1962_v28 = vmul.f32 %v3981_v43, %v1960_v33 }
0x2329   :  { %v5203_v39 = vsel %vm1963_vm7, %v1962_v28, %v4965_v8 }
0x232a   :  { %v3700_v47 = vpack.i.bf16 %v5207_v14, %v5203_v39 }
0x232c   :  { %3701 = vrot.lane.b32.xlu0 %v3700_v47, %s4108_s3 }
0x239e   :  { %v3702_v8 = vpop.permute.xlu0 %3701 }
0x239f   :  { %v3704_v34 = vunpack.i.h.bf16 %v3702_v8  ;;  %v3703_v32 = vunpack.i.l.bf16 %v3702_v8 }
0x23a1   :  { %v1982_v27 = vsel %vm489_vm11, %v5220_v44, %v3704_v34  ;;  %v1977_v48 = vsel %vm489_vm11, %v5224_v21, %v3703_v32 }
0x23a2   :  { %v2043_v5 = vpack.c.bf16 %v1982_v27, %v1977_v48  ;;  %v5272_v27 = vsel %vm1963_vm7, %v4865_v2, %v4655_v51  ;;  %v5278_v48 = vsel %vm1963_vm7, %v4750_v59, %v4691_v9 }
0x23a4   :  { %2172 = vmatmul.mubr.bf16.vlgmr.msra.gmra.mrb[36].mxu1 %v2043_v5  ;;  %v3705_v5 = vpack.i.bf16 %v5278_v48, %v5272_v27 }
0x23a5   :  { %2181 = vmatprep.mubr.bf16.mxu1 %v4107_v46  ;;  %2492 = vmatpush1.bf16.msra.mxu1 %v5122_v45 }
0x23a6   :  { %2493 = vmatprep.subr.bf16.mxu1 %v5128_v4 }
0x23a9   :  { %2494 = vmatpush1.bf16.msra.mxu1 %v5138_v17 }
0x23aa   :  { %2495 = vmatprep.subr.bf16.mxu1 %v5143_v63 }
0x23ad   :  { %2496 = vmatpush1.bf16.msra.mxu1 %v5155_v1 }
0x23ae   :  { %2497 = vmatprep.subr.bf16.mxu1 %v5179_v61 }
0x23b1   :  { %2498 = vmatpush1.bf16.msra.mxu1 %v5187_v0 }
0x23b2   :  { %2645 = vmatprep.subr.bf16.mxu1 %v5113_v56 }
0x2477   :  { %v2173_v58 = vpop.f32.mrb[36].mxu1 }
0x2478   :  { %v2174_v7 = vadd.f32 %v2173_v58, %v5243_v6  ;;  %v2175_v19 = vpop.f32.mrb[37].mxu1 }
0x2479   :  { %v2176_v16 = vadd.f32 %v2175_v19, %v5246_v12  ;;  %v2177_v52 = vpop.f32.mrb[38].mxu1  ;;  %v1968_v19 = vsel %vm1963_vm7, %v4710_v37, %v4730_v42 }
0x247a   :  { %v2301_v26 = vadd.f32 %v2294_v31, %v2174_v7  ;;  %v2179_v22 = vpop.f32.mrb[39].mxu1  ;;  %v2178_v40 = vadd.f32 %v2177_v52, %v5243_v6 }
0x247b   :  { %v2302_v20 = vadd.f32 %v2296_v49, %v2176_v16  ;;  %v2180_v29 = vadd.f32 %v2179_v22, %v5246_v12  ;;  %v5290_v16 = vsel %vm1963_vm7, %v4691_v9, %v4750_v59 }
0x247c   :  { %v3431_v24 = vmul.f32 -1.442695, %v2301_v26 }
0x247d   :  { %3982 = vtanh.f32 %v2302_v20  ;;  %v3432_v36 = vmul.f32 -1.442695, %v2302_v20 }
0x247e   :  { %3984 = vpow2.f32 %v3431_v24 }
0x2487   :  { %v3983_v55 = vpop.eup %3982 }
0x2488   :  { %2318 = vrot.lane.b32.xlu1 %v3983_v55, %s4108_s3  ;;  %v3985_v57 = vpop.eup %3984 }
0x2489   :  { %v2309_v54 = vadd.f32 1.0, %v3985_v57 }
0x248b   :  { %3986 = vrcp.f32 %v2309_v54 }
0x2495   :  { %v3987_v60 = vpop.eup %3986 }
0x2496   :  { %v2316_v50 = vmul.f32 0.0, %v3987_v60 }
0x24fa   :  { %v2319_v15 = vpop.permute.xlu1 %2318 }
0x24fb   :  { %v2321_v3 = vmul.f32 %v3987_v60, %v2319_v15 }
0x24fd   :  { %2323 = vrot.lane.b32.xlu0 %v2321_v3, %s4108_s3 }
0x256f   :  { %v2324_v25 = vpop.permute.xlu0 %2323 }
0x2570   :  { %v2326_v30 = vadd.f32 %v2324_v25, %v2316_v50 }
0x2572   :  { %3988 = vtanh.f32 %v2326_v30 }
0x2573   :  { %3990 = vpow2.f32 %v3432_v36 }
0x257c   :  { %v3989_v35 = vpop.eup %3988 }
0x257d   :  { %2329 = vrot.lane.b32.xlu1 %v3989_v35, %s4108_s3  ;;  %v3991_v10 = vpop.eup %3990 }
0x257e   :  { %v2310_v18 = vadd.f32 1.0, %v3991_v10 }
0x2580   :  { %3992 = vrcp.f32 %v2310_v18 }
0x258a   :  { %v3993_v13 = vpop.eup %3992 }
0x25ef   :  { %v2330_v11 = vpop.permute.xlu1 %2329 }
0x25f0   :  { %v5253_v38 = vmul.f32 %v3993_v13, %v2330_v11 }
0x25f2   :  { %v2333_v23 = vpack.c.bf16 %v5253_v38, %v5253_v38 }
0x25f4   :  { %3433 = vmatmul.mubr.msk.bf16.vlgmr.msra.gmra.mrb[64].mxu0 %vm489_vm11, %v2333_v23 }
0x25f5   :  { %2415 = vmatpush1.bf16.msra.mxu0 %v5122_v45  ;;  %2446 = vmatprep.mubr.bf16.mxu0 %v4107_v46 }
0x25f6   :  { %2416 = vmatprep.subr.bf16.mxu0 %v5128_v4 }
0x25f9   :  { %2417 = vmatpush1.bf16.msra.mxu0 %v5138_v17 }
0x25fa   :  { %2418 = vmatprep.subr.bf16.mxu0 %v5143_v63 }
0x25fd   :  { %2419 = vmatpush1.bf16.msra.mxu0 %v5155_v1 }
0x25fe   :  { %2420 = vmatprep.subr.bf16.mxu0 %v5179_v61 }
0x2601   :  { %2421 = vmatpush1.bf16.msra.mxu0 %v5187_v0 }
0x2602   :  { %2568 = vmatprep.subr.bf16.mxu0 %v5113_v56 }
0x26c7   :  { %v2371_v43 = vpop.f32.mrb[64].mxu0 }
0x26c8   :  { %v2378_v33 = vadd.f32 %v2371_v43, %v2178_v40  ;;  %v2373_v28 = vpop.f32.mrb[65].mxu0 }
0x26c9   :  { %v2379_v47 = vadd.f32 %v2373_v28, %v2180_v29  ;;  %v2375_v8 = vpop.f32.mrb[66].mxu0  ;;  %v1969_v28 = vsel %vm1963_vm7, %v4730_v42, %v4710_v37 }
0x26ca   :  { %v2376_v34 = vpop.f32.mrb[67].mxu0  ;;  %v3434_v31 = vmul.f32 -1.442695, %v2378_v33 }
0x26cb   :  { %3994 = vtanh.f32 %v2379_v47  ;;  %v3435_v54 = vmul.f32 -1.442695, %v2379_v47  ;;  %v3710_v47 = vpack.i.bf16 %v1968_v19, %v1969_v28 }
0x26cc   :  { %3996 = vpow2.f32 %v3434_v31 }
0x26d5   :  { %v3995_v32 = vpop.eup %3994 }
0x26d6   :  { %2395 = vrot.lane.b32.xlu0 %v3995_v32, %s4108_s3  ;;  %v3997_v49 = vpop.eup %3996 }
0x26d7   :  { %v2386_v53 = vadd.f32 1.0, %v3997_v49 }
0x26d9   :  { %3998 = vrcp.f32 %v2386_v53 }
0x26da   :  { %3706 = vrot.lane.b32.xlu0 %v3705_v5, %s4108_s3 }
0x26e3   :  { %v3999_v62 = vpop.eup %3998 }
0x26e4   :  { %v2393_v20 = vmul.f32 %v3999_v62, %v2326_v30 }
0x2748   :  { %v2396_v51 = vpop.permute.xlu0 %2395 }
0x2749   :  { %v2398_v2 = vmul.f32 %v3999_v62, %v2396_v51  ;;  %v3715_v62 = vpack.i.bf16 %v5220_v44, %v5290_v16 }
0x274b   :  { %2400 = vrot.lane.b32.xlu1 %v2398_v2, %s4108_s3 }
0x274c   :  { %v3707_v41 = vpop.permute.xlu0 %3706 }
0x274d   :  { %v3709_v58 = vunpack.i.h.bf16 %v3707_v41  ;;  %v3708_v7 = vunpack.i.l.bf16 %v3707_v41 }
0x274f   :  { %v1987_v52 = vsel %vm489_vm11, %v5290_v16, %v3708_v7  ;;  %v1992_v26 = vsel %vm489_vm11, %v1968_v19, %v3709_v58 }
0x2750   :  { %v2044_v22 = vpack.c.bf16 %v1992_v26, %v1987_v52 }
0x2752   :  { %2182 = vmatmul.mubr.bf16.gmra.mrb[40].mxu1 %v2044_v22 }
0x2753   :  { %2191 = vmatprep.mubr.bf16.mxu1 %v4107_v46 }
0x27bd   :  { %v2401_v55 = vpop.permute.xlu1 %2400 }
0x27be   :  { %v2403_v24 = vadd.f32 %v2401_v55, %v2393_v20 }
0x27c0   :  { %4000 = vtanh.f32 %v2403_v24 }
0x27c1   :  { %4002 = vpow2.f32 %v3435_v54 }
0x27ca   :  { %v4001_v57 = vpop.eup %4000 }
0x27cb   :  { %2406 = vrot.lane.b32.xlu1 %v4001_v57, %s4108_s3  ;;  %v4003_v3 = vpop.eup %4002 }
0x27cc   :  { %v2387_v50 = vadd.f32 1.0, %v4003_v3 }
0x27ce   :  { %4004 = vrcp.f32 %v2387_v50 }
0x27d8   :  { %v4005_v25 = vpop.eup %4004 }
0x2825   :  { %v2183_v9 = vpop.f32.mrb[40].mxu1 }
0x2826   :  { %v2185_v59 = vpop.f32.mrb[41].mxu1  ;;  %v2184_v10 = vadd.f32 %v2183_v9, %v5243_v6 }
0x2827   :  { %v5297_v60 = vpop.f32.mrb[42].mxu1  ;;  %v2186_v18 = vadd.f32 %v2185_v59, %v5246_v12 }
0x2828   :  { %v5299_v15 = vpop.f32.mrb[43].mxu1 }
0x283d   :  { %v2407_v35 = vpop.permute.xlu1 %2406 }
0x283e   :  { %v5301_v30 = vmul.f32 %v4005_v25, %v2407_v35 }
0x2840   :  { %v2410_v36 = vpack.c.bf16 %v5301_v30, %v5301_v30 }
0x2842   :  { %3436 = vmatmul.mubr.msk.bf16.vlgmr.msra.gmra.mrb[68].mxu0 %vm489_vm11, %v2410_v36 }
0x2843   :  { %2569 = vmatpush1.bf16.msra.mxu0 %v5122_v45  ;;  %2600 = vmatprep.mubr.bf16.mxu0 %v4107_v46 }
0x2844   :  { %2570 = vmatprep.subr.bf16.mxu0 %v5128_v4 }
0x2847   :  { %2571 = vmatpush1.bf16.msra.mxu0 %v5138_v17 }
0x2848   :  { %2572 = vmatprep.subr.bf16.mxu0 %v5143_v63 }
0x284b   :  { %2573 = vmatpush1.bf16.msra.mxu0 %v5155_v1 }
0x284c   :  { %2574 = vmatprep.subr.bf16.mxu0 %v5179_v61 }
0x284f   :  { %2575 = vmatpush1.bf16.msra.mxu0 %v5187_v0 }
0x2850   :  { %2722 = vmatprep.subr.bf16.mxu0 %v5113_v56 }
0x2915   :  { %v2448_v13 = vpop.f32.mrb[68].mxu0 }
0x2916   :  { %v2455_v11 = vadd.f32 %v2448_v13, %v2184_v10  ;;  %v2450_v23 = vpop.f32.mrb[69].mxu0 }
0x2917   :  { %v2456_v40 = vadd.f32 %v2450_v23, %v2186_v18  ;;  %v2452_v29 = vpop.f32.mrb[70].mxu0  ;;  %v2190_v23 = vadd.f32 %v5299_v15, %v5246_v12 }
0x2918   :  { %v2453_v43 = vpop.f32.mrb[71].mxu0  ;;  %v3437_v8 = vmul.f32 -1.442695, %v2455_v11  ;;  %v2188_v11 = vadd.f32 %v5297_v60, %v5243_v6 }
0x2919   :  { %4006 = vtanh.f32 %v2456_v40  ;;  %v3438_v57 = vmul.f32 -1.442695, %v2456_v40 }
0x291a   :  { %4008 = vpow2.f32 %v3437_v8 }
0x2923   :  { %v4007_v33 = vpop.eup %4006 }
0x2924   :  { %2472 = vrot.lane.b32.xlu0 %v4007_v33, %s4108_s3  ;;  %v4009_v34 = vpop.eup %4008 }
0x2925   :  { %v2463_v32 = vadd.f32 1.0, %v4009_v34 }
0x2927   :  { %4010 = vrcp.f32 %v2463_v32 }
0x2928   :  { %3711 = vrot.lane.b32.xlu0 %v3710_v47, %s4108_s3 }
0x292c   :  { %2014 = vrot.lane.b32.xlu0 %v5224_v21, %s4108_s3 }
0x2931   :  { %v4011_v5 = vpop.eup %4010 }
0x2932   :  { %v2470_v41 = vmul.f32 %v4011_v5, %v2403_v24 }
0x2996   :  { %v2473_v31 = vpop.permute.xlu0 %2472 }
0x2997   :  { %v2475_v49 = vmul.f32 %v4011_v5, %v2473_v31 }
0x2999   :  { %2477 = vrot.lane.b32.xlu1 %v2475_v49, %s4108_s3 }
0x299a   :  { %v3712_v53 = vpop.permute.xlu0 %3711 }
0x299b   :  { %v3714_v37 = vunpack.i.h.bf16 %v3712_v53  ;;  %v3713_v42 = vunpack.i.l.bf16 %v3712_v53 }
0x299d   :  { %3716 = vrot.lane.b32.xlu1 %v3715_v62, %s4108_s3  ;;  %v1997_v21 = vsel %vm489_vm11, %v1969_v28, %v3713_v42  ;;  %v2002_v51 = vsel %vm489_vm11, %v5278_v48, %v3714_v37 }
0x299e   :  { %v2045_v2 = vpack.c.bf16 %v2002_v51, %v1997_v21  ;;  %v2015_v22 = vpop.permute.xlu0 %2014 }
0x299f   :  { %v2017_v55 = vsel %vm489_vm11, %v5203_v39, %v2015_v22 }
0x29a0   :  { %2192 = vmatmul.mubr.bf16.gmra.mrb[44].mxu1 %v2045_v2  ;;  %v2047_v24 = vpack.c.bf16 %v2017_v55, %v2017_v55 }
0x29a1   :  { %2201 = vmatprep.mubr.bf16.mxu1 %v4107_v46 }
0x2a0b   :  { %v2478_v58 = vpop.permute.xlu1 %2477 }
0x2a0c   :  { %v5332_v7 = vadd.f32 %v2478_v58, %v2470_v41 }
0x2a0e   :  { %4012 = vtanh.f32 %v5332_v7 }
0x2a0f   :  { %v3717_v19 = vpop.permute.xlu1 %3716  ;;  %4014 = vpow2.f32 %v3438_v57 }
0x2a10   :  { %v3719_v52 = vunpack.i.h.bf16 %v3717_v19  ;;  %v3718_v44 = vunpack.i.l.bf16 %v3717_v19 }
0x2a12   :  { %v2007_v16 = vsel %vm489_vm11, %v5272_v27, %v3718_v44  ;;  %v2012_v26 = vsel %vm489_vm11, %v5207_v14, %v3719_v52 }
0x2a13   :  { %v2046_v48 = vpack.c.bf16 %v2012_v26, %v2007_v16 }
0x2a15   :  { %2202 = vmatmul.mubr.bf16.gmra.mrb[48].mxu1 %v2046_v48 }
0x2a16   :  { %2211 = vmatprep.mubr.bf16.mxu1 %v4107_v46 }
0x2a18   :  { %v4013_v20 = vpop.eup %4012 }
0x2a19   :  { %2483 = vrot.lane.b32.xlu1 %v4013_v20, %s4108_s3  ;;  %v4015_v59 = vpop.eup %4014 }
0x2a1a   :  { %v2464_v3 = vadd.f32 1.0, %v4015_v59 }
0x2a1c   :  { %4016 = vrcp.f32 %v2464_v3 }
0x2a1d   :  { %2212 = vmatmul.mubr.bf16.gmra.mrb[52].mxu1 %v2047_v24 }
0x2a1e   :  { %2523 = vmatprep.mubr.bf16.mxu1 %v4107_v46 }
0x2a26   :  { %v4017_v39 = vpop.eup %4016 }
0x2a73   :  { %v5344_v27 = vpop.f32.mrb[44].mxu1 }
0x2a74   :  { %v5346_v14 = vpop.f32.mrb[45].mxu1 }
0x2a75   :  { %v5348_v54 = vpop.f32.mrb[46].mxu1  ;;  %v2196_v52 = vadd.f32 %v5346_v14, %v5246_v12 }
0x2a76   :  { %v5350_v9 = vpop.f32.mrb[47].mxu1 }
0x2a8b   :  { %v2484_v50 = vpop.permute.xlu1 %2483 }
0x2a8c   :  { %v5352_v25 = vmul.f32 %v4017_v39, %v2484_v50 }
0x2a8e   :  { %v2487_v35 = vpack.c.bf16 %v5352_v25, %v5352_v25 }
0x2a90   :  { %3439 = vmatmul.mubr.msk.bf16.vlgmr.msra.gmra.mrb[56].mxu1 %vm489_vm11, %v2487_v35 }
0x2a91   :  { %2646 = vmatpush1.bf16.msra.mxu1 %v5122_v45  ;;  %2677 = vmatprep.mubr.bf16.mxu1 %v4107_v46 }
0x2a92   :  { %2647 = vmatprep.subr.bf16.mxu1 %v5128_v4 }
0x2a95   :  { %2648 = vmatpush1.bf16.msra.mxu1 %v5138_v17 }
0x2a96   :  { %2649 = vmatprep.subr.bf16.mxu1 %v5143_v63 }
0x2a99   :  { %2650 = vmatpush1.bf16.msra.mxu1 %v5155_v1 }
0x2a9a   :  { %2651 = vmatprep.subr.bf16.mxu1 %v5179_v61 }
0x2a9d   :  { %2652 = vmatpush1.bf16.msra.mxu1 %v5187_v0 }
0x2a9e   :  { %2799 = vmatprep.subr.bf16.mxu1 %v5113_v56 }
0x2ae8   :  { %v5366_v36 = vpop.f32.mrb[48].mxu1 }
0x2ae9   :  { %v5368_v10 = vpop.f32.mrb[49].mxu1 }
0x2aea   :  { %v5370_v18 = vpop.f32.mrb[50].mxu1 }
0x2aeb   :  { %v5372_v13 = vpop.f32.mrb[51].mxu1 }
0x2b63   :  { %v2525_v40 = vpop.f32.mrb[56].mxu1 }
0x2b64   :  { %v2532_v29 = vadd.f32 %v2525_v40, %v2188_v11  ;;  %v2527_v43 = vpop.f32.mrb[57].mxu1 }
0x2b65   :  { %v2533_v33 = vadd.f32 %v2527_v43, %v2190_v23  ;;  %v2529_v28 = vpop.f32.mrb[58].mxu1 }
0x2b66   :  { %v2530_v47 = vpop.f32.mrb[59].mxu1  ;;  %v3440_v34 = vmul.f32 -1.442695, %v2532_v29 }
0x2b67   :  { %4018 = vtanh.f32 %v2533_v33  ;;  %v3441_v62 = vmul.f32 -1.442695, %v2533_v33 }
0x2b68   :  { %4020 = vpow2.f32 %v3440_v34  ;;  %v2200_v34 = vadd.f32 %v5350_v9, %v5246_v12 }
0x2b71   :  { %v4019_v8 = vpop.eup %4018 }
0x2b72   :  { %2549 = vrot.lane.b32.xlu0 %v4019_v8, %s4108_s3  ;;  %v4021_v32 = vpop.eup %4020  ;;  %v2198_v8 = vadd.f32 %v5348_v54, %v5243_v6 }
0x2b73   :  { %v2540_v5 = vadd.f32 1.0, %v4021_v32 }
0x2b75   :  { %4022 = vrcp.f32 %v2540_v5 }
0x2b7f   :  { %v4023_v31 = vpop.eup %4022 }
0x2b80   :  { %v2547_v15 = vmul.f32 %v4023_v31, %v5332_v7  ;;  %v2194_v7 = vadd.f32 %v5344_v27, %v5243_v6 }
0x2be4   :  { %v2550_v60 = vpop.permute.xlu0 %2549 }
0x2be5   :  { %v2552_v49 = vmul.f32 %v4023_v31, %v2550_v60 }
0x2be7   :  { %2554 = vrot.lane.b32.xlu1 %v2552_v49, %s4108_s3 }
0x2c59   :  { %v2555_v53 = vpop.permute.xlu1 %2554 }
0x2c5a   :  { %v2557_v37 = vadd.f32 %v2555_v53, %v2547_v15 }
0x2c5c   :  { %4024 = vtanh.f32 %v2557_v37 }
0x2c5d   :  { %4026 = vpow2.f32 %v3441_v62 }
0x2c66   :  { %v4025_v42 = vpop.eup %4024 }
0x2c67   :  { %2560 = vrot.lane.b32.xlu0 %v4025_v42, %s4108_s3  ;;  %v4027_v21 = vpop.eup %4026 }
0x2c68   :  { %v2541_v51 = vadd.f32 1.0, %v4027_v21 }
0x2c6a   :  { %4028 = vrcp.f32 %v2541_v51 }
0x2c74   :  { %v4029_v2 = vpop.eup %4028 }
0x2cd9   :  { %v2561_v41 = vpop.permute.xlu0 %2560 }
0x2cda   :  { %v5382_v58 = vmul.f32 %v4029_v2, %v2561_v41 }
0x2cdc   :  { %v2564_v19 = vpack.c.bf16 %v5382_v58, %v5382_v58 }
0x2cde   :  { %3442 = vmatmul.mubr.msk.bf16.vlgmr.msra.gmra.mrb[72].mxu0 %vm489_vm11, %v2564_v19 }
0x2cdf   :  { %2723 = vmatpush1.bf16.msra.mxu0 %v5122_v45  ;;  %2754 = vmatprep.mubr.bf16.mxu0 %v4107_v46 }
0x2ce0   :  { %2724 = vmatprep.subr.bf16.mxu0 %v5128_v4 }
0x2ce3   :  { %2725 = vmatpush1.bf16.msra.mxu0 %v5138_v17 }
0x2ce4   :  { %2726 = vmatprep.subr.bf16.mxu0 %v5143_v63 }
0x2ce7   :  { %2727 = vmatpush1.bf16.msra.mxu0 %v5155_v1 }
0x2ce8   :  { %2728 = vmatprep.subr.bf16.mxu0 %v5179_v61 }
0x2ceb   :  { %2729 = vmatpush1.bf16.msra.mxu0 %v5187_v0 }
0x2db1   :  { %v2602_v44 = vpop.f32.mrb[72].mxu0 }
0x2db2   :  { %v2609_v16 = vadd.f32 %v2602_v44, %v2194_v7  ;;  %v2604_v26 = vpop.f32.mrb[73].mxu0 }
0x2db3   :  { %v2610_v48 = vadd.f32 %v2604_v26, %v2196_v52  ;;  %v2606_v22 = vpop.f32.mrb[74].mxu0 }
0x2db4   :  { %v2607_v20 = vpop.f32.mrb[75].mxu0  ;;  %v3443_v24 = vmul.f32 -1.442695, %v2609_v16  ;;  %v2204_v22 = vadd.f32 %v5366_v36, %v5243_v6 }
0x2db5   :  { %4030 = vtanh.f32 %v2610_v48  ;;  %v3444_v23 = vmul.f32 -1.442695, %v2610_v48  ;;  %v2206_v20 = vadd.f32 %v5368_v10, %v5246_v12 }
0x2db6   :  { %4032 = vpow2.f32 %v3443_v24 }
0x2dbf   :  { %v4031_v55 = vpop.eup %4030 }
0x2dc0   :  { %2626 = vrot.lane.b32.xlu1 %v4031_v55, %s4108_s3  ;;  %v4033_v57 = vpop.eup %4032 }
0x2dc1   :  { %v2617_v59 = vadd.f32 1.0, %v4033_v57 }
0x2dc3   :  { %4034 = vrcp.f32 %v2617_v59 }
0x2dcd   :  { %v4035_v3 = vpop.eup %4034 }
0x2dce   :  { %v2624_v14 = vmul.f32 %v4035_v3, %v2557_v37 }
0x2e32   :  { %v2627_v27 = vpop.permute.xlu1 %2626 }
0x2e33   :  { %v2629_v39 = vmul.f32 %v4035_v3, %v2627_v27 }
0x2e35   :  { %2631 = vrot.lane.b32.xlu0 %v2629_v39, %s4108_s3 }
0x2ea7   :  { %v2632_v50 = vpop.permute.xlu0 %2631 }
0x2ea8   :  { %v2634_v35 = vadd.f32 %v2632_v50, %v2624_v14 }
0x2eaa   :  { %4036 = vtanh.f32 %v2634_v35 }
0x2eab   :  { %4038 = vpow2.f32 %v3444_v23 }
0x2eb4   :  { %v4037_v11 = vpop.eup %4036 }
0x2eb5   :  { %2637 = vrot.lane.b32.xlu1 %v4037_v11, %s4108_s3  ;;  %v4039_v40 = vpop.eup %4038 }
0x2eb6   :  { %v2618_v29 = vadd.f32 1.0, %v4039_v40 }
0x2eb8   :  { %4040 = vrcp.f32 %v2618_v29 }
0x2ec2   :  { %v4041_v43 = vpop.eup %4040 }
0x2f27   :  { %v2638_v33 = vpop.permute.xlu1 %2637 }
0x2f28   :  { %v5402_v28 = vmul.f32 %v4041_v43, %v2638_v33 }
0x2f2a   :  { %v2641_v47 = vpack.c.bf16 %v5402_v28, %v5402_v28 }
0x2f2c   :  { %3445 = vmatmul.mubr.msk.bf16.vlgmr.msra.gmra.mrb[60].mxu1 %vm489_vm11, %v2641_v47 }
0x2f2d   :  { %2800 = vmatpush1.bf16.msra.mxu1 %v5122_v45  ;;  %2831 = vmatprep.mubr.bf16.mxu1 %v4107_v46 }
0x2f2e   :  { %2801 = vmatprep.subr.bf16.mxu1 %v5128_v4 }
0x2f31   :  { %2802 = vmatpush1.bf16.msra.mxu1 %v5138_v17 }
0x2f32   :  { %2803 = vmatprep.subr.bf16.mxu1 %v5143_v63 }
0x2f35   :  { %2804 = vmatpush1.bf16.msra.mxu1 %v5155_v1 }
0x2f36   :  { %2805 = vmatprep.subr.bf16.mxu1 %v5179_v61 }
0x2f39   :  { %2806 = vmatpush1.bf16.msra.mxu1 %v5187_v0 }
0x2f3a   :  { %2876 = vmatprep.subr.bf16.mxu1 %v5113_v56 }
0x2fff   :  { %v2679_v32 = vpop.f32.mrb[60].mxu1 }
0x3000   :  { %v2686_v5 = vadd.f32 %v2679_v32, %v2198_v8  ;;  %v2681_v31 = vpop.f32.mrb[61].mxu1 }
0x3001   :  { %v2687_v60 = vadd.f32 %v2681_v31, %v2200_v34  ;;  %v2683_v49 = vpop.f32.mrb[62].mxu1 }
0x3002   :  { %v2684_v15 = vpop.f32.mrb[63].mxu1  ;;  %v3446_v37 = vmul.f32 -1.442695, %v2686_v5 }
0x3003   :  { %4042 = vtanh.f32 %v2687_v60  ;;  %v3447_v19 = vmul.f32 -1.442695, %v2687_v60  ;;  %v2208_v60 = vadd.f32 %v5370_v18, %v5243_v6 }
0x3004   :  { %4044 = vpow2.f32 %v3446_v37 }
0x300d   :  { %v4043_v53 = vpop.eup %4042 }
0x300e   :  { %2703 = vrot.lane.b32.xlu0 %v4043_v53, %s4108_s3  ;;  %v4045_v42 = vpop.eup %4044 }
0x300f   :  { %v2694_v56 = vadd.f32 1.0, %v4045_v42 }
0x3011   :  { %4046 = vrcp.f32 %v2694_v56 }
0x301b   :  { %v4047_v62 = vpop.eup %4046 }
0x301c   :  { %v2701_v9 = vmul.f32 %v4047_v62, %v2634_v35 }
0x3080   :  { %v2704_v54 = vpop.permute.xlu0 %2703 }
0x3081   :  { %v2706_v21 = vmul.f32 %v4047_v62, %v2704_v54 }
0x3083   :  { %2708 = vrot.lane.b32.xlu1 %v2706_v21, %s4108_s3 }
0x30f5   :  { %v2709_v51 = vpop.permute.xlu1 %2708 }
0x30f6   :  { %v2711_v2 = vadd.f32 %v2709_v51, %v2701_v9 }
0x30f8   :  { %4048 = vtanh.f32 %v2711_v2 }
0x30f9   :  { %4050 = vpow2.f32 %v3447_v19 }
0x3102   :  { %v4049_v41 = vpop.eup %4048 }
0x3103   :  { %2714 = vrot.lane.b32.xlu0 %v4049_v41, %s4108_s3  ;;  %v4051_v7 = vpop.eup %4050 }
0x3104   :  { %v2695_v52 = vadd.f32 1.0, %v4051_v7 }
0x3106   :  { %4052 = vrcp.f32 %v2695_v52 }
0x3110   :  { %v4053_v44 = vpop.eup %4052 }
0x3175   :  { %v2715_v16 = vpop.permute.xlu0 %2714 }
0x3176   :  { %v5423_v26 = vmul.f32 %v4053_v44, %v2715_v16 }
0x3178   :  { %v2718_v48 = vpack.c.bf16 %v5423_v26, %v5423_v26 }
0x317a   :  { %3448 = vmatmul.mubr.msk.bf16.vlgmr.msra.gmra.mrb[76].mxu0 %vm489_vm11, %v2718_v48 }
0x324d   :  { %v2756_v55 = vpop.f32.mrb[76].mxu0 }
0x324e   :  { %v2763_v24 = vadd.f32 %v2756_v55, %v2204_v22  ;;  %v2758_v57 = vpop.f32.mrb[77].mxu0 }
0x324f   :  { %v2764_v59 = vadd.f32 %v2758_v57, %v2206_v20  ;;  %v2760_v3 = vpop.f32.mrb[78].mxu0 }
0x3250   :  { %v2761_v27 = vpop.f32.mrb[79].mxu0  ;;  %v3449_v14 = vmul.f32 -1.442695, %v2763_v24 }
0x3251   :  { %4054 = vtanh.f32 %v2764_v59  ;;  %v3450_v33 = vmul.f32 -1.442695, %v2764_v59 }
0x3252   :  { %4056 = vpow2.f32 %v3449_v14  ;;  %v2995_v14 = vld [vmem:[%s5769_s10 + $0x88] sm:$0xff] }
0x325b   :  { %v4055_v39 = vpop.eup %4054 }
0x325c   :  { %2780 = vrot.lane.b32.xlu1 %v4055_v39, %s4108_s3  ;;  %v4057_v50 = vpop.eup %4056  ;;  %v3720_v39 = vpack.i.bf16 %v5301_v30, %v5382_v58  ;;  %v3026_v30 = vld [vmem:[%s5769_s10 + $0x180] sm:$0xff]  ;;  %v3027_v58 = vld [vmem:[%s5769_s10 + $0x188] sm:$0xff] }
0x325d   :  { %v2771_v35 = vadd.f32 1.0, %v4057_v50  ;;  %v2978_v50 = vld [vmem:[%s5769_s10] sm:$0xff] }
0x325f   :  { %4058 = vrcp.f32 %v2771_v35 }
0x3269   :  { %v4059_v11 = vpop.eup %4058 }
0x326a   :  { %v2778_v10 = vmul.f32 %v4059_v11, %v2711_v2 }
0x32ce   :  { %v2781_v36 = vpop.permute.xlu1 %2780 }
0x32cf   :  { %v2783_v23 = vmul.f32 %v4059_v11, %v2781_v36  ;;  %v2979_v11 = vld [vmem:[%s5769_s10 + $0x8] sm:$0xff] }
0x32d0   :  { %v3559_v36 = vpack.c.bf16 %v2979_v11, %v2978_v50  ;;  %v3019_v50 = vld [vmem:[%s5769_s10 + $0x148] sm:$0xff]  ;;  %v3005_v11 = vld [vmem:[%s5769_s10 + $0xd8] sm:$0xff] }
0x32d1   :  { %2785 = vrot.lane.b32.xlu0 %v2783_v23, %s4108_s3  ;;  %v3589_v23 = vpack.c.bf16 %v3027_v58, %v3026_v30  ;;  %v3036_v30 = vld [vmem:[%s5769_s10 + $0x1d0] sm:$0xff]  ;;  %v3037_v58 = vld [vmem:[%s5769_s10 + $0x1d8] sm:$0xff] }
0x3343   :  { %v2786_v40 = vpop.permute.xlu0 %2785 }
0x3344   :  { %v2788_v29 = vadd.f32 %v2786_v40, %v2778_v10  ;;  %v3010_v10 = vld [vmem:[%s5769_s10 + $0x100] sm:$0xff]  ;;  %v3011_v40 = vld [vmem:[%s5769_s10 + $0x108] sm:$0xff] }
0x3346   :  { %4060 = vtanh.f32 %v2788_v29 }
0x3347   :  { %4062 = vpow2.f32 %v3450_v33  ;;  %v2997_v33 = vld [vmem:[%s5769_s10 + $0x98] sm:$0xff] }
0x3350   :  { %v4061_v43 = vpop.eup %4060 }
0x3351   :  { %2791 = vrot.lane.b32.xlu1 %v4061_v43, %s4108_s3  ;;  %v4063_v47 = vpop.eup %4062  ;;  %v3591_v43 = vpack.c.bf16 %v3011_v40, %v3010_v10  ;;  %v2988_v40 = vld [vmem:[%s5769_s10 + $0x50] sm:$0xff] }
0x3352   :  { %v2772_v8 = vadd.f32 1.0, %v4063_v47  ;;  %v2980_v47 = vld [vmem:[%s5769_s10 + $0x10] sm:$0xff] }
0x3354   :  { %4064 = vrcp.f32 %v2772_v8  ;;  %v2981_v8 = vld [vmem:[%s5769_s10 + $0x18] sm:$0xff] }
0x335e   :  { %v4065_v34 = vpop.eup %4064 }
0x33c3   :  { %v2792_v32 = vpop.permute.xlu1 %2791 }
0x33c4   :  { %v5435_v5 = vmul.f32 %v4065_v34, %v2792_v32  ;;  %v3563_v32 = vpack.c.bf16 %v2981_v8, %v2980_v47  ;;  %v3021_v47 = vld [vmem:[%s5769_s10 + $0x158] sm:$0xff]  ;;  %v3006_v8 = vld [vmem:[%s5769_s10 + $0xe0] sm:$0xff] }
0x33c6   :  { %v2795_v31 = vpack.c.bf16 %v5435_v5, %v5435_v5 }
0x33c8   :  { %3451 = vmatmul.mubr.msk.bf16.vlgmr.msra.gmra.mrb[64].mxu1 %vm489_vm11, %v2795_v31  ;;  %v3028_v31 = vld [vmem:[%s5769_s10 + $0x190] sm:$0xff] }
0x33c9   :  { %2877 = vmatpush1.bf16.msra.mxu1 %v5122_v45  ;;  %2908 = vmatprep.mubr.bf16.mxu1 %v4107_v46  ;;  %v2210_v45 = vadd.f32 %v5372_v13, %v5246_v12 }
0x33ca   :  { %2878 = vmatprep.subr.bf16.mxu1 %v5128_v4 }
0x33cd   :  { %2879 = vmatpush1.bf16.msra.mxu1 %v5138_v17 }
0x33ce   :  { %2880 = vmatprep.subr.bf16.mxu1 %v5143_v63 }
0x33d1   :  { %2881 = vmatpush1.bf16.msra.mxu1 %v5155_v1 }
0x33d2   :  { %2882 = vmatprep.subr.bf16.mxu1 %v5179_v61 }
0x33d5   :  { %2883 = vmatpush1.bf16.msra.mxu1 %v5187_v0 }
0x33d6   :  { %3590 = vmatprep.subr.bf16.mxu1 %v3589_v23 }
0x349b   :  { %v2833_v49 = vpop.f32.mrb[64].mxu1 }
0x349c   :  { %v2840_v46 = vadd.f32 %v2833_v49, %v2208_v60  ;;  %v2835_v15 = vpop.f32.mrb[65].mxu1  ;;  %v3029_v60 = vld [vmem:[%s5769_s10 + $0x198] sm:$0xff] }
0x349d   :  { %v2841_v4 = vadd.f32 %v2835_v15, %v2210_v45  ;;  %v2837_v53 = vpop.f32.mrb[66].mxu1  ;;  %v3012_v45 = vld [vmem:[%s5769_s10 + $0x110] sm:$0xff]  ;;  %v3593_v49 = vpack.c.bf16 %v3029_v60, %v3028_v31  ;;  %v2998_v15 = vld [vmem:[%s5769_s10 + $0xa0] sm:$0xff] }
0x349e   :  { %v2838_v17 = vpop.f32.mrb[67].mxu1  ;;  %v3452_v1 = vmul.f32 -1.442695, %v2840_v46  ;;  %v3013_v46 = vld [vmem:[%s5769_s10 + $0x118] sm:$0xff] }
0x349f   :  { %4066 = vtanh.f32 %v2841_v4  ;;  %v3453_v21 = vmul.f32 -1.442695, %v2841_v4  ;;  %v2999_v4 = vld [vmem:[%s5769_s10 + $0xa8] sm:$0xff]  ;;  %v3595_v53 = vpack.c.bf16 %v3013_v46, %v3012_v45  ;;  %v2990_v45 = vld [vmem:[%s5769_s10 + $0x60] sm:$0xff] }
0x34a0   :  { %4068 = vpow2.f32 %v3452_v1  ;;  %v3565_v17 = vpack.c.bf16 %v2999_v4, %v2998_v15  ;;  %v2983_v1 = vld [vmem:[%s5769_s10 + $0x28] sm:$0xff]  ;;  %v3038_v4 = vld [vmem:[%s5769_s10 + $0x1e0] sm:$0xff] }
0x34a9   :  { %v4067_v63 = vpop.eup %4066 }
0x34aa   :  { %2857 = vrot.lane.b32.xlu0 %v4067_v63, %s4108_s3  ;;  %v4069_v61 = vpop.eup %4068  ;;  %v2982_v63 = vld [vmem:[%s5769_s10 + $0x20] sm:$0xff] }
0x34ab   :  { %v2848_v0 = vadd.f32 1.0, %v4069_v61  ;;  %v3030_v61 = vld [vmem:[%s5769_s10 + $0x1a0] sm:$0xff] }
0x34ad   :  { %4070 = vrcp.f32 %v2848_v0  ;;  %v3031_v0 = vld [vmem:[%s5769_s10 + $0x1a8] sm:$0xff] }
0x34b7   :  { %v4071_v37 = vpop.eup %4070 }
0x34b8   :  { %v2855_v13 = vmul.f32 %v4071_v37, %v2788_v29  ;;  %v2996_v29 = vld [vmem:[%s5769_s10 + $0x90] sm:$0xff] }
0x34b9   :  { %v3561_v34 = vpack.c.bf16 %v2997_v33, %v2996_v29  ;;  %v2989_v29 = vld [vmem:[%s5769_s10 + $0x58] sm:$0xff]  ;;  %v3609_v33 = vpack.c.bf16 %v3037_v58, %v3036_v30 }
0x351c   :  { %v2858_v18 = vpop.permute.xlu0 %2857 }
0x351d   :  { %v2860_v42 = vmul.f32 %v4071_v37, %v2858_v18  ;;  %v3014_v37 = vld [vmem:[%s5769_s10 + $0x120] sm:$0xff]  ;;  %v3015_v18 = vld [vmem:[%s5769_s10 + $0x128] sm:$0xff] }
0x351f   :  { %2862 = vrot.lane.b32.xlu1 %v2860_v42, %s4108_s3  ;;  %v3567_v42 = vpack.c.bf16 %v2983_v1, %v2982_v63  ;;  %v3022_v1 = vld [vmem:[%s5769_s10 + $0x160] sm:$0xff] }
0x3591   :  { %v2863_v56 = vpop.permute.xlu1 %2862 }
0x3592   :  { %v5454_v62 = vadd.f32 %v2863_v56, %v2855_v13  ;;  %v3597_v13 = vpack.c.bf16 %v3031_v0, %v3030_v61  ;;  %v3000_v56 = vld [vmem:[%s5769_s10 + $0xb0] sm:$0xff]  ;;  %v3023_v61 = vld [vmem:[%s5769_s10 + $0x168] sm:$0xff] }
0x3593   :  { %v3008_v0 = vld [vmem:[%s5769_s10 + $0xf0] sm:$0xff] }
0x3594   :  { %4072 = vtanh.f32 %v5454_v62 }
0x3595   :  { %4074 = vpow2.f32 %v3453_v21  ;;  %v2984_v21 = vld [vmem:[%s5769_s10 + $0x30] sm:$0xff] }
0x359e   :  { %v4073_v54 = vpop.eup %4072 }
0x359f   :  { %2868 = vrot.lane.b32.xlu0 %v4073_v54, %s4108_s3  ;;  %v4075_v9 = vpop.eup %4074  ;;  %v3001_v54 = vld [vmem:[%s5769_s10 + $0xb8] sm:$0xff] }
0x35a0   :  { %v2849_v51 = vadd.f32 1.0, %v4075_v9  ;;  %v3599_v9 = vpack.c.bf16 %v3015_v18, %v3014_v37  ;;  %v3009_v37 = vld [vmem:[%s5769_s10 + $0xf8] sm:$0xff] }
0x35a1   :  { %v3585_v18 = vpack.c.bf16 %v3009_v37, %v3008_v0 }
0x35a2   :  { %4076 = vrcp.f32 %v2849_v51  ;;  %v3569_v51 = vpack.c.bf16 %v3001_v54, %v3000_v56  ;;  %v3040_v54 = vld [vmem:[%s5769_s10 + $0x1f0] sm:$0xff] }
0x35ac   :  { %v4077_v2 = vpop.eup %4076 }
0x3611   :  { %v2869_v41 = vpop.permute.xlu0 %2868 }
0x3612   :  { %v5458_v19 = vmul.f32 %v4077_v2, %v2869_v41  ;;  %v2985_v2 = vld [vmem:[%s5769_s10 + $0x38] sm:$0xff]  ;;  %v3032_v41 = vld [vmem:[%s5769_s10 + $0x1b0] sm:$0xff] }
0x3614   :  { %v2872_v7 = vpack.c.bf16 %v5458_v19, %v5458_v19 }
0x3616   :  { %3454 = vmatmul.mubr.msk.bf16.vlgmr.msra.gmra.mrb[52].mxu1 %vm489_vm11, %v2872_v7  ;;  %v3033_v7 = vld [vmem:[%s5769_s10 + $0x1b8] sm:$0xff] }
0x3617   :  { %3592 = vmatpush3.bf16.msra.mxu1 %v3591_v43  ;;  %v3020_v43 = vld [vmem:[%s5769_s10 + $0x150] sm:$0xff] }
0x3618   :  { %3594 = vmatprep.subr.bf16.mxu1 %v3593_v49  ;;  %v3611_v31 = vpack.c.bf16 %v3021_v47, %v3020_v43  ;;  %v2991_v49 = vld [vmem:[%s5769_s10 + $0x68] sm:$0xff] }
0x3619   :  { %v3583_v15 = vpack.c.bf16 %v2991_v49, %v2990_v45  ;;  %v3047_v47 = vld [vmem:[%s5769_s10 + $0x228] sm:$0xff] }
0x361b   :  { %3596 = vmatpush3.bf16.msra.mxu1 %v3595_v53  ;;  %v3039_v53 = vld [vmem:[%s5769_s10 + $0x1e8] sm:$0xff] }
0x361c   :  { %3598 = vmatprep.subr.bf16.mxu1 %v3597_v13  ;;  %v3613_v63 = vpack.c.bf16 %v3039_v53, %v3038_v4  ;;  %v2993_v13 = vld [vmem:[%s5769_s10 + $0x78] sm:$0xff] }
0x361f   :  { %3600 = vmatpush3.bf16.msra.mxu1 %v3599_v9 }
0x36e9   :  { %v2910_v52 = vpop.f32.mrb[52].mxu1 }
0x36ea   :  { %v2912_v44 = vpop.f32.mrb[53].mxu1  ;;  %v3633_v55 = vadd.f32 %v2910_v52, %v5243_v6  ;;  %v2994_v6 = vld [vmem:[%s5769_s10 + $0x80] sm:$0xff]  ;;  %v3601_v52 = vpack.c.bf16 %v3033_v7, %v3032_v41  ;;  %v4109_v7 = vmov 0.0|0.0  }
0x36eb   :  { %v5464_v16 = vadd.f32 %v2912_v44, %v5246_v12  ;;  %v2914_v48 = vpop.f32.mrb[54].mxu1  ;;  %v3557_v35 = vpack.c.bf16 %v2995_v14, %v2994_v6  ;;  %v3016_v44 = vld [vmem:[%s5769_s10 + $0x130] sm:$0xff]  ;;  %v3018_v6 = vld [vmem:[%s5769_s10 + $0x140] sm:$0xff] }
0x36ec   :  { %v2915_v22 = vpop.f32.mrb[55].mxu1  ;;  %v3455_v24 = vmul.f32 -1.442695, %v3633_v55  ;;  %v3017_v48 = vld [vmem:[%s5769_s10 + $0x138] sm:$0xff]  ;;  %v3571_v55 = vpack.c.bf16 %v2985_v2, %v2984_v21  ;;  %3602 = vmatprep.subr.bf16.mxu1 %v3601_v52  ;;  %v3607_v23 = vpack.c.bf16 %v3019_v50, %v3018_v6  ;;  %v2969_v6 = vsel %vm1963_vm7, %v5352_v25, %v5435_v5 }
0x36ed   :  { %4078 = vtanh.f32 %v5464_v16  ;;  %3558 = vmatprep.subr.bf16.mxu0 %v3557_v35  ;;  %v3002_v22 = vld [vmem:[%s5769_s10 + $0xc0] sm:$0xff]  ;;  %v3004_v35 = vld [vmem:[%s5769_s10 + $0xd0] sm:$0xff]  ;;  %v3041_v21 = vld [vmem:[%s5769_s10 + $0x1f8] sm:$0xff] }
0x36ee   :  { %4080 = vpow2.f32 %v3455_v24  ;;  %3560 = vmatpush3.bf16.msra.mxu0 %v3559_v36  ;;  %v3034_v24 = vld [vmem:[%s5769_s10 + $0x1c0] sm:$0xff]  ;;  %v3577_v10 = vpack.c.bf16 %v3005_v11, %v3004_v35  ;;  %v3617_v9 = vpack.c.bf16 %v3041_v21, %v3040_v54  ;;  %v3025_v2 = vld [vmem:[%s5769_s10 + $0x178] sm:$0xff]  ;;  %v2974_v35 = vsel %vm1963_vm7, %v5435_v5, %v5352_v25  ;;  %v4099_v21 = vld [vmem:[%s5759_s0 + $0x8] sm:$0xff] }
0x36ef   :  { %3562 = vmatprep.subr.bf16.mxu0 %v3561_v34  ;;  %v3007_v34 = vld [vmem:[%s5769_s10 + $0xe8] sm:$0xff]  ;;  %v3045_v25 = vld [vmem:[%s5769_s10 + $0x218] sm:$0xff] }
0x36f0   :  { %v3581_v60 = vpack.c.bf16 %v3007_v34, %v3006_v8  ;;  %v4111_v8 = vmov 0.0  }
0x36f2   :  { %3564 = vmatpush3.bf16.msra.mxu0 %v3563_v32  ;;  %v3579_v32 = vpack.c.bf16 %v2989_v29, %v2988_v40  ;;  %v3044_v29 = vld [vmem:[%s5769_s10 + $0x210] sm:$0xff] }
0x36f3   :  { %3566 = vmatprep.subr.bf16.mxu0 %v3565_v17 }
0x36f6   :  { %3568 = vmatpush3.bf16.msra.mxu0 %v3567_v42  ;;  %v2992_v42 = vld [vmem:[%s5769_s10 + $0x70] sm:$0xff] }
0x36f7   :  { %v4079_v20 = vpop.eup %4078  ;;  %3570 = vmatprep.subr.bf16.mxu0 %v3569_v51  ;;  %v3587_v56 = vpack.c.bf16 %v2993_v13, %v2992_v42  ;;  %v3024_v51 = vld [vmem:[%s5769_s10 + $0x170] sm:$0xff] }
0x36f8   :  { %2934 = vrot.lane.b32.xlu1 %v4079_v20, %s4108_s3  ;;  %v4081_v57 = vpop.eup %4080  ;;  %v3003_v20 = vld [vmem:[%s5769_s10 + $0xc8] sm:$0xff]  ;;  %v3619_v41 = vpack.c.bf16 %v3025_v2, %v3024_v51  ;;  %v4100_v51 = vld [vmem:[%s5759_s0 + $0x10] sm:$0xff] }
0x36f9   :  { %v2925_v59 = vadd.f32 1.0, %v4081_v57  ;;  %v3035_v57 = vld [vmem:[%s5769_s10 + $0x1c8] sm:$0xff] }
0x36fa   :  { %v3605_v14 = vpack.c.bf16 %v3035_v57, %v3034_v24  ;;  %3572 = vmatpush3.bf16.msra.mxu0 %v3571_v55 }
0x36fb   :  { %4082 = vrcp.f32 %v2925_v59  ;;  %v3603_v59 = vpack.c.bf16 %v3017_v48, %v3016_v44  ;;  %v3725_v44 = vpack.i.bf16 %v5458_v19, %v5423_v26  ;;  %v3456_v48 = vmul.f32 -1.442695, %v5464_v16  ;;  %v3042_v26 = vld [vmem:[%s5769_s10 + $0x200] sm:$0xff]  ;;  %v3043_v19 = vld [vmem:[%s5769_s10 + $0x208] sm:$0xff] }
0x36fc   :  { %v3622_v58 = vpack.c.bf16 %v3043_v19, %v3042_v26 }
0x36fd   :  { %3604 = vmatpush3.bf16.msra.mxu1 %v3603_v59 }
0x36fe   :  { %3606 = vmatprep.subr.bf16.mxu1 %v3605_v14 }
0x3701   :  { %3608 = vmatpush3.bf16.msra.mxu1 %v3607_v23 }
0x3702   :  { %3610 = vmatprep.subr.bf16.mxu1 %v3609_v33  ;;  %v3046_v33 = vld [vmem:[%s5769_s10 + $0x220] sm:$0xff] }
0x3703   :  { %v3628_v34 = vpack.c.bf16 %v3047_v47, %v3046_v33 }
0x3705   :  { %v5469_v3 = vpop.eup %4082  ;;  %3612 = vmatpush3.bf16.msra.mxu1 %v3611_v31  ;;  %v3049_v31 = vld [vmem:[%s5769_s10 + $0x238] sm:$0xff] }
0x3706   :  { %v2932_v46 = vmul.f32 %v5469_v3, %v5454_v62  ;;  %3614 = vmatprep.subr.bf16.mxu1 %v3613_v63 }
0x376a   :  { %v2935_v27 = vpop.permute.xlu1 %2934 }
0x376b   :  { %v2937_v12 = vmul.f32 %v5469_v3, %v2935_v27  ;;  %v3573_v27 = vpack.c.bf16 %v3003_v20, %v3002_v22  ;;  %v3615_v3 = vpack.c.bf16 %v3023_v61, %v3022_v1 }
0x376d   :  { %2939 = vrot.lane.b32.xlu0 %v2937_v12, %s4108_s3  ;;  %v2986_v12 = vld [vmem:[%s5769_s10 + $0x40] sm:$0xff]  ;;  %3574 = vmatprep.subr.bf16.mxu0 %v3573_v27 }
0x376e   :  { %3616 = vmatpush3.bf16.msra.mxu1 %v3615_v3 }
0x376f   :  { %3618 = vmatprep.subr.bf16.mxu1 %v3617_v9 }
0x3771   :  { %3721 = vrot.lane.b32.xlu0 %v3720_v39, %s4108_s3  ;;  %v2987_v39 = vld [vmem:[%s5769_s10 + $0x48] sm:$0xff] }
0x3772   :  { %v3575_v36 = vpack.c.bf16 %v2987_v39, %v2986_v12  ;;  %3620 = vmatpush3.bf16.msra.mxu1 %v3619_v41  ;;  %v4101_v41 = vld [vmem:[%s5759_s0 + $0x18] sm:$0xff] }
0x3774   :  { %3576 = vmatpush3.bf16.msra.mxu0 %v3575_v36 }
0x3775   :  { %3578 = vmatprep.subr.bf16.mxu0 %v3577_v10 }
0x3778   :  { %3580 = vmatpush3.bf16.msra.mxu0 %v3579_v32  ;;  %v3048_v32 = vld [vmem:[%s5769_s10 + $0x230] sm:$0xff] }
0x3779   :  { %3582 = vmatprep.subr.bf16.mxu0 %v3581_v60  ;;  %v3631_v60 = vpack.c.bf16 %v3049_v31, %v3048_v32 }
0x377c   :  { %3584 = vmatpush3.bf16.msra.mxu0 %v3583_v15 }
0x377d   :  { %3586 = vmatprep.subr.bf16.mxu0 %v3585_v18 }
0x3780   :  { %3588 = vmatpush3.bf16.msra.mxu0 %v3587_v56 }
0x3781   :  { %3621 = vmatprep.subr.bf16.mxu0 %v4109_v7 }
0x37df   :  { %v2940_v17 = vpop.permute.xlu0 %2939 }
0x37e0   :  { %v2942_v62 = vadd.f32 %v2940_v17, %v2932_v46 }
0x37e2   :  { %4084 = vtanh.f32 %v2942_v62 }
0x37e3   :  { %4086 = vpow2.f32 %v3456_v48  ;;  %v3722_v55 = vpop.permute.xlu0 %3721 }
0x37e4   :  { %v3723_v27 = vunpack.i.l.bf16 %v3722_v55  ;;  %v3724_v16 = vunpack.i.h.bf16 %v3722_v55  ;;  %v4104_v55 = vld [vmem:[%s5759_s0 + $0x30] sm:$0xff] }
0x37e6   :  { %v2970_v11 = vsel %vm489_vm11, %v2969_v6, %v3723_v27 }
0x37ec   :  { %v4085_v52 = vpop.eup %4084 }
0x37ed   :  { %2945 = vrot.lane.b32.xlu1 %v4085_v52, %s4108_s3  ;;  %v4087_v22 = vpop.eup %4086  ;;  %v3458_v52 = vld [vmem:[%s5770_s11] ss:$0 sm:$0xff] }
0x37ee   :  { %v2926_v20 = vadd.f32 1.0, %v4087_v22  ;;  %v4103_v22 = vld [vmem:[%s5759_s0 + $0x28] sm:$0xff] }
0x37f0   :  { %4088 = vrcp.f32 %v2926_v20 }
0x37f1   :  { %3726 = vrot.lane.b32.xlu1 %v3725_v44, %s4108_s3  ;;  %v4102_v44 = vld [vmem:[%s5759_s0 + $0x20] sm:$0xff] }
0x37fa   :  { %v4089_v24 = vpop.eup %4088 }
0x385f   :  { %v2946_v57 = vpop.permute.xlu1 %2945 }
0x3860   :  { %v2948_v59 = vmul.f32 %v4089_v24, %v2946_v57  ;;  %v4105_v57 = vld [vmem:[%s5759_s0 + $0x38] sm:$0xff] }
0x3862   :  { %v2965_v12 = vsel %vm1963_vm7, %v5253_v38, %v2948_v59  ;;  %v2977_v45 = vsel %vm1963_vm7, %v2948_v59, %v5253_v38  ;;  %v4098_v38 = vld [vmem:[%s5759_s0] sm:$0xff] }
0x3863   :  { %v3727_v39 = vpop.permute.xlu1 %3726  ;;  %v2966_v30 = vsel %vm489_vm11, %v2965_v12, %v3724_v16 }
0x3864   :  { %v3729_v14 = vunpack.i.h.bf16 %v3727_v39  ;;  %v3728_v50 = vunpack.i.l.bf16 %v3727_v39 }
0x3866   :  { %v2972_v36 = vsel %vm489_vm11, %v5402_v28, %v3728_v50  ;;  %v2971_v23 = vsel %vm2967_vm8, %v2970_v11, %v3728_v50  ;;  %v2968_v10 = vsel %vm2967_vm8, %v2966_v30, %v3729_v14  ;;  %v2975_v40 = vsel %vm489_vm11, %v2974_v35, %v3729_v14 }
0x3867   :  { %3118 = vmatprep.mubr.f32.mxu0 %v2971_v23  ;;  %v2976_v5 = vsel %vm2967_vm8, %v2975_v40, %v3724_v16  ;;  %v2973_v43 = vsel %vm2967_vm8, %v2972_v36, %v3723_v27  ;;  %v3625_v28 = vpack.c.bf16 %v3045_v25, %v3044_v29 }
0x3868   :  { %3119 = vmatmul.mubr.f32.vlgmr.msra.gmra.mrb[80].mxu0 %v2968_v10  ;;  %3188 = vmatprep.mubr.f32.mxu1 %v2976_v5 }
0x3869   :  { %3623 = vmatpush3.bf16.msra.mxu0 %v3622_v58  ;;  %3189 = vmatmul.mubr.f32.vlgmr.msra.gmra.mrb[68].mxu1 %v2973_v43 }
0x386a   :  { %3624 = vmatprep.subr.bf16.mxu0 %v4109_v7  ;;  %3554 = vmatprep.mubr.msk.f32.mxu0 %vm4110_vm9, %v4111_v8 }
0x386d   :  { %3626 = vmatpush3.bf16.msra.mxu0 %v3625_v28 }
0x386e   :  { %3627 = vmatprep.subr.bf16.mxu0 %v4109_v7 }
0x3871   :  { %3629 = vmatpush3.bf16.msra.mxu0 %v3628_v34 }
0x3872   :  { %3630 = vmatprep.subr.bf16.mxu0 %v4109_v7 }
0x3875   :  { %3632 = vmatpush3.bf16.msra.mxu0 %v3631_v60 }
0x3878   :  { %3555 = vmatmul.mubr.msk.f32.vlgmr.msra.gmra.mrb[82].mxu0 %vm489_vm11, %v2977_v45  ;;  %vm3327_vm11 = vcmask 14336  }
0x393b   :  { %v3491_v49 = vpop.f32.mrb[80].mxu0 }
0x393c   :  { %v3492_v46 = vpop.f32.mrb[81].mxu0  ;;  %v3526_v15 = vpop.f32.mrb[68].mxu1 }
0x393d   :  { %v3493_v4 = vadd.f32 %v3492_v46, %v3491_v49  ;;  %v3527_v53 = vpop.f32.mrb[69].mxu1 }
0x393e   :  { %v3528_v17 = vadd.f32 %v3527_v53, %v3526_v15 }
0x3940   :  { %v3191_v63 = vadd.f32 %v3528_v17, %v3493_v4 }
0x394b   :  { %v3260_v1 = vpop.f32.mrb[82].mxu0 }
0x394c   :  { %v3261_v61 = vadd.f32 %v3260_v1, %v3191_v63  ;;  %v3556_v62 = vpop.f32.mrb[83].mxu0 }
0x394e   :  { %v3265_v3 = vrot.slane %v3261_v61, 1  ;;  %v3266_v0 = vrot.slane %v3261_v61, 2  ;;  %v3267_v37 = vrot.slane %v3261_v61, 3  ;;  %v3268_v18 = vrot.slane %v3261_v61, 4 }
0x394f   :  { %v3269_v42 = vrot.slane %v3261_v61, 5  ;;  %v3270_v13 = vrot.slane %v3261_v61, 6  ;;  %v3271_v56 = vrot.slane %v3261_v61, 7  ;;  %v3287_v59 = vadd.f32 %v4105_v57, %v3261_v61 }
0x3950   :  { %v3280_v54 = vadd.f32 %v4098_v38, %v3265_v3  ;;  %v3281_v9 = vadd.f32 %v4099_v21, %v3266_v0  ;;  %v3282_v2 = vadd.f32 %v4100_v51, %v3267_v37  ;;  %v3283_v7 = vadd.f32 %v4101_v41, %v3268_v18 }
0x3951   :  { %v3284_v48 = vadd.f32 %v4102_v44, %v3269_v42  ;;  %v3285_v20 = vadd.f32 %v4103_v22, %v3270_v13  ;;  %v3286_v24 = vadd.f32 %v4104_v55, %v3271_v56  ;;  %v3301_v11 = vadd.f32 %v3458_v52, %v3287_v59 }
0x3952   :  { %v3294_v27 = vadd.f32 %v3458_v52, %v3280_v54  ;;  %v3295_v12 = vadd.f32 %v3458_v52, %v3281_v9  ;;  %v3296_v26 = vadd.f32 %v3458_v52, %v3282_v2  ;;  %v3297_v19 = vadd.f32 %v3458_v52, %v3283_v7 }
0x3953   :  { %v3298_v16 = vadd.f32 %v3458_v52, %v3284_v48  ;;  %v3299_v39 = vadd.f32 %v3458_v52, %v3285_v20  ;;  %v3300_v6 = vadd.f32 %v3458_v52, %v3286_v24  ;;  %v3321_v25 = vrot.slane %v3301_v11, 1 }
0x3954   :  { %v3310_v14 = vrot.slane %v3295_v12, 7  ;;  %v3311_v50 = vrot.slane %v3296_v26, 6  ;;  %v3313_v35 = vrot.slane %v3297_v19, 5  ;;  %3326 = vst.msk [vmem:[%s5771_s12 - $0x7] sm:$0x80] %vm3325_vm10, %v3294_v27 }
0x3955   :  { %v3315_v58 = vrot.slane %v3298_v16, 4  ;;  %v3317_v23 = vrot.slane %v3299_v39, 3  ;;  %v3319_v40 = vrot.slane %v3300_v6, 2 }
0x3956   :  { %v3312_v30 = vsel %vm59_vm6, %v3311_v50, %v3310_v14 }
0x3957   :  { %v3314_v36 = vsel %vm62_vm0, %v3313_v35, %v3312_v30 }
0x3958   :  { %v3316_v10 = vsel %vm65_vm1, %v3315_v58, %v3314_v36 }
0x3959   :  { %v3318_v29 = vsel %vm68_vm2, %v3317_v23, %v3316_v10 }
0x395a   :  { %v3320_v5 = vsel %vm71_vm3, %v3319_v40, %v3318_v29 }
0x395b   :  { %v3322_v43 = vsel %vm74_vm4, %v3321_v25, %v3320_v5 }
0x395c   :  { %3328 = vst.msk [vmem:[%s5771_s12 + $0x1] sm:$0x7f] %vm3327_vm11, %v3322_v43 }

</bundles_post_ra>
